<compile_context>
chip_gen: v7x
topology: tpu7x:2x2x1
jax: 0.10.0
libtpu: 0.0.40
codegen_flags: <defaults>
</compile_context>

<pallas_src>
import functools

import jax
import jax.numpy as jnp
import numpy as np
from jax.experimental import pallas as pl
from jax.experimental.pallas import tpu as pltpu


# --------------------------------------------------------------------------
# Fused Pallas kernel: lin1 -> FeaSt -> FeaSt -> lin2 -> lin3 -> lin4
# --------------------------------------------------------------------------
def _fused_forward_kernel(x_ref, a_ref,
                          w1_ref, b1_ref,
                          cwu0_ref, cc0_ref, cb0_ref,
                          cwu1_ref, cc1_ref, cb1_ref,
                          w2_ref, b2_ref,
                          w3_ref, b3_ref,
                          w4_ref, b4_ref,
                          o_ref,
                          p_ref,
                          *, heads, out_channels):
    NP = a_ref.shape[0]
    C = out_channels
    HC = heads * C

    def dense(h, w_ref, b_ref, relu=True):
        y = jnp.dot(h, w_ref[...], preferred_element_type=jnp.float32) + b_ref[...]
        return jnp.maximum(y, 0.0) if relu else y

    def feast_relu(h, wu_ref, c_ref, b_ref):
        # Dense FeaStConv (aggr='mean' pre-folded into A_hat, self-loops added):
        #   out_i = relu( sum_j A_hat[i,j] * sum_h q_h(i,j) * (x_j W)_h + bias )
        #   q(i,j) = softmax_h( u_h.(x_j - x_i) + c_h ) = softmax_h(xuc[j] - xu[i])
        # Fused projection [W | U] -> single MXU pass; slice the two pieces.
        xwu = jnp.dot(h, wu_ref[...], preferred_element_type=jnp.float32)  # [NP, HC+H]
        xw = xwu[:, :HC]                            # [NP, H*C]
        xu = xwu[:, HC:HC + heads]                  # [NP, H]
        xuc = xu + c_ref[...]                       # fold c into the source term

        # Shift-invariant softmax with a per-node upper bound (no per-head max
        # pass over [NP,NP] slabs):
        #   m[i,j] = max_h xuc[j,:] - min_h xu[i,:] >= logit_h[i,j]
        #   logit_h - m = xuc_adj[j,h] - xu_adj[i,h] <= 0
        xuc_adj = xuc - jnp.max(xuc, axis=1, keepdims=True)   # [NP,H], <= 0
        xu_adj = xu - jnp.min(xu, axis=1, keepdims=True)      # [NP,H], >= 0
        xuc_adj_t = jnp.transpose(xuc_adj)                    # [H,NP]: ONE XLU transpose

        # Pass 1: compute each exp slab once, cache it in VMEM, accumulate denom.
        denom = None
        for hh in range(heads):
            e = jnp.exp(xuc_adj_t[hh:hh + 1, :] - xu_adj[:, hh:hh + 1])   # [NP,NP]
            p_ref[hh] = e
            denom = e if denom is None else denom + e

        inv = pl.reciprocal(denom, approx=True)     # EUP slot
        inv = inv * (2.0 - denom * inv)             # one Newton step -> ~f32 accuracy
        a_scaled = a_ref[...] * inv                 # A_hat * inv_denom

        # Pass 2: per-head accumulating K=NP dots straight from the cached
        # slabs (no xw restack, no stacked K=H*NP matmul, no extra scratch).
        acc = None
        for hh in range(heads):
            term = jnp.dot(a_scaled * p_ref[hh], xw[:, hh * C:(hh + 1) * C],
                           preferred_element_type=jnp.float32)
            acc = term if acc is None else acc + term
        return jnp.maximum(acc + b_ref[...], 0.0)

    h = dense(x_ref[...], w1_ref, b1_ref)                    # lin1 + relu
    h = feast_relu(h, cwu0_ref, cc0_ref, cb0_ref)            # top conv 0 + relu
    h = feast_relu(h, cwu1_ref, cc1_ref, cb1_ref)            # top conv 1 + relu
    h = dense(h, w2_ref, b2_ref)                             # lin2 + relu
    h = dense(h, w3_ref, b3_ref)                             # lin3 + relu
    o_ref[...] = dense(h, w4_ref, b4_ref, relu=False)        # lin4


def net_conv_edge_pool_forward(x_pad, a_hat_pad, params, *, heads, out_channels):
    """Single fused pallas_call over the padded (lane-dense) node set."""
    NP = x_pad.shape[0]
    nOut = params["lin4"][0].shape[1]
    c0, c1 = params["top_convs"]

    inputs = [
        x_pad, a_hat_pad,
        params["lin1"][0], params["lin1"][1],
        c0["wu"], c0["c"], c0["b"],
        c1["wu"], c1["c"], c1["b"],
        params["lin2"][0], params["lin2"][1],
        params["lin3"][0], params["lin3"][1],
        params["lin4"][0], params["lin4"][1],
    ]
    in_specs = [pl.BlockSpec(a.shape, lambda i: (0, 0)) for a in inputs]

    kernel = functools.partial(_fused_forward_kernel, heads=heads,
                               out_channels=out_channels)
    return pl.pallas_call(
        kernel,
        out_shape=jax.ShapeDtypeStruct((NP, nOut), jnp.float32),
        grid=(1,),
        in_specs=in_specs,
        out_specs=pl.BlockSpec((NP, nOut), lambda i: (0, 0)),
        scratch_shapes=[
            pltpu.VMEM((heads, NP, NP), jnp.float32),   # cached exp slabs e_h
        ],
        compiler_params=pltpu.CompilerParams(dimension_semantics=("arbitrary",)),
    )(*inputs)


# --------------------------------------------------------------------------
# Pure-JAX reference (unpadded) for correctness check
# --------------------------------------------------------------------------
def _feast_ref(x, A, deg_inv, w, u, c, b, heads):
    n = x.shape[0]
    C = w.shape[1] // heads
    xw = (x @ w).reshape(n, heads, C)
    xu = x @ u
    logits = xu[None, :, :] - xu[:, None, :] + c          # [N, N, H]
    q = jax.nn.softmax(logits, axis=-1)
    out = jnp.einsum("ij,ijh,jhc->ic", A, q, xw) * deg_inv + b
    return jnp.maximum(out, 0.0)


def _ref_forward(x, A, deg_inv, params, heads):
    relu = lambda v: jnp.maximum(v, 0.0)
    x = relu(x @ params["lin1"][0] + params["lin1"][1])
    for p in params["top_convs"]:
        x = _feast_ref(x, A, deg_inv, p["w"], p["u"], p["c"], p["b"], heads)
    x = relu(x @ params["lin2"][0] + params["lin2"][1])
    x = relu(x @ params["lin3"][0] + params["lin3"][1])
    x = x @ params["lin4"][0] + params["lin4"][1]
    return x


# --------------------------------------------------------------------------
# Main
# --------------------------------------------------------------------------
if __name__ == "__main__":
    N = 64          # number of graph nodes
    NP = 128        # padded node count -> lane-dense (x,128) tiles
    nIn = 16        # input node-feature dim
    nhidden = 32
    nOut = 2
    heads = 4       # conv_args['num_heads']

    key = jax.random.PRNGKey(0)
    keys = jax.random.split(key, 12)

    # Node features
    x = jax.random.normal(keys[0], (N, nIn), jnp.float32)

    # Graph: directed ring (both directions) + 64 random edges (deterministic).
    idx = jnp.arange(N)
    rnd_src = jax.random.randint(keys[1], (64,), 0, N)
    rnd_tgt = jax.random.randint(keys[2], (64,), 0, N)
    src = jnp.concatenate([idx, (idx + 1) % N, rnd_src])
    tgt = jnp.concatenate([(idx + 1) % N, idx, rnd_tgt])
    A = jnp.zeros((N, N), jnp.float32).at[tgt, src].set(1.0)   # A[target, source]
    A = jnp.maximum(A, jnp.eye(N, dtype=jnp.float32))          # add_self_loops=True
    deg = jnp.sum(A, axis=1, keepdims=True)                    # >= 1 (self loops)
    deg_inv = 1.0 / deg
    A_hat = A * deg_inv                                        # fold mean-aggr into A

    # Pad to lane-dense 128 rows; padded rows/cols of A_hat are zero, so the
    # real-node outputs are unchanged (padded-row garbage never mixes in).
    A_hat_pad = jnp.zeros((NP, NP), jnp.float32).at[:N, :N].set(A_hat)
    x_pad = jnp.zeros((NP, nIn), jnp.float32).at[:N, :].set(x)

    # Deterministic parameter init (shapes from the module's __init__).
    def lin_init(k, nin, nout):
        kw, kb = jax.random.split(k)
        s = 1.0 / np.sqrt(nin)
        w = jax.random.uniform(kw, (nin, nout), jnp.float32, -s, s)
        b = jax.random.uniform(kb, (1, nout), jnp.float32, -s, s)
        return (w, b)

    def feast_init(k, nin, nout, nheads):
        kw, ku, kc = jax.random.split(k, 3)
        s = 1.0 / np.sqrt(nin)
        w = jax.random.normal(kw, (nin, nheads * nout), jnp.float32) * s
        u = jax.random.normal(ku, (nin, nheads), jnp.float32) * s
        return dict(
            w=w,
            u=u,
            wu=jnp.concatenate([w, u], axis=1),      # fused [W | U] projection
            c=jax.random.normal(kc, (1, nheads), jnp.float32) * 0.1,
            b=jnp.zeros((1, nout), jnp.float32),
        )

    params = {
        "lin1": lin_init(keys[3], nIn, nhidden),
        "top_convs": [
            feast_init(keys[4], nhidden, nhidden, heads),
            feast_init(keys[5], nhidden, nhidden, heads),
        ],
        "lin2": lin_init(keys[6], nhidden, nhidden),
        "lin3": lin_init(keys[7], nhidden, nhidden),
        "lin4": lin_init(keys[8], nhidden, nOut),
    }

    out_pad = net_conv_edge_pool_forward(x_pad, A_hat_pad, params,
                                         heads=heads, out_channels=nhidden)
    out_pad = jax.block_until_ready(out_pad)
    out = out_pad[:N]

    ref = _ref_forward(x, A, deg_inv, params, heads)
    np.testing.assert_allclose(np.asarray(out), np.asarray(ref),
                               rtol=2e-3, atol=2e-3)
    assert out.shape == (N, nOut)

    print("KERNEL_OK")
</pallas_src>

<mosaic_0001>
module attributes {stable_mosaic.version = 11 : i64} {
  func.func @_fused_forward_kernel(%arg0: i32, %arg1: memref<128x16xf32, #tpu.memory_space<vmem>>, %arg2: memref<128x128xf32, #tpu.memory_space<vmem>>, %arg3: memref<16x32xf32, #tpu.memory_space<vmem>>, %arg4: memref<1x32xf32, #tpu.memory_space<vmem>>, %arg5: memref<32x132xf32, #tpu.memory_space<vmem>>, %arg6: memref<1x4xf32, #tpu.memory_space<vmem>>, %arg7: memref<1x32xf32, #tpu.memory_space<vmem>>, %arg8: memref<32x132xf32, #tpu.memory_space<vmem>>, %arg9: memref<1x4xf32, #tpu.memory_space<vmem>>, %arg10: memref<1x32xf32, #tpu.memory_space<vmem>>, %arg11: memref<32x32xf32, #tpu.memory_space<vmem>>, %arg12: memref<1x32xf32, #tpu.memory_space<vmem>>, %arg13: memref<32x32xf32, #tpu.memory_space<vmem>>, %arg14: memref<1x32xf32, #tpu.memory_space<vmem>>, %arg15: memref<32x2xf32, #tpu.memory_space<vmem>>, %arg16: memref<1x2xf32, #tpu.memory_space<vmem>>, %arg17: memref<128x2xf32, #tpu.memory_space<vmem>>, %arg18: memref<4x128x128xf32, #tpu.memory_space<vmem>>) attributes {dimension_semantics = [#tpu.dimension_semantics<arbitrary>], iteration_bounds = array<i64: 1>, scalar_prefetch = 0 : i64, scratch_operands = 1 : i64, tpu.core_type = #tpu.core_type<tc>, window_params = [{pipeline_mode = #tpu.pipeline_mode<synchronous>, transform_indices = @transform_0, window_bounds = array<i64: 128, 16>}, {pipeline_mode = #tpu.pipeline_mode<synchronous>, transform_indices = @transform_1, window_bounds = array<i64: 128, 128>}, {pipeline_mode = #tpu.pipeline_mode<synchronous>, transform_indices = @transform_2, window_bounds = array<i64: 16, 32>}, {pipeline_mode = #tpu.pipeline_mode<synchronous>, transform_indices = @transform_3, window_bounds = array<i64: 1, 32>}, {pipeline_mode = #tpu.pipeline_mode<synchronous>, transform_indices = @transform_4, window_bounds = array<i64: 32, 132>}, {pipeline_mode = #tpu.pipeline_mode<synchronous>, transform_indices = @transform_5, window_bounds = array<i64: 1, 4>}, {pipeline_mode = #tpu.pipeline_mode<synchronous>, transform_indices = @transform_6, window_bounds = array<i64: 1, 32>}, {pipeline_mode = #tpu.pipeline_mode<synchronous>, transform_indices = @transform_7, window_bounds = array<i64: 32, 132>}, {pipeline_mode = #tpu.pipeline_mode<synchronous>, transform_indices = @transform_8, window_bounds = array<i64: 1, 4>}, {pipeline_mode = #tpu.pipeline_mode<synchronous>, transform_indices = @transform_9, window_bounds = array<i64: 1, 32>}, {pipeline_mode = #tpu.pipeline_mode<synchronous>, transform_indices = @transform_10, window_bounds = array<i64: 32, 32>}, {pipeline_mode = #tpu.pipeline_mode<synchronous>, transform_indices = @transform_11, window_bounds = array<i64: 1, 32>}, {pipeline_mode = #tpu.pipeline_mode<synchronous>, transform_indices = @transform_12, window_bounds = array<i64: 32, 32>}, {pipeline_mode = #tpu.pipeline_mode<synchronous>, transform_indices = @transform_13, window_bounds = array<i64: 1, 32>}, {pipeline_mode = #tpu.pipeline_mode<synchronous>, transform_indices = @transform_14, window_bounds = array<i64: 32, 2>}, {pipeline_mode = #tpu.pipeline_mode<synchronous>, transform_indices = @transform_15, window_bounds = array<i64: 1, 2>}, {pipeline_mode = #tpu.pipeline_mode<synchronous>, transform_indices = @transform_16, window_bounds = array<i64: 128, 2>}]} {
    %c0 = arith.constant 0 : index
    %c0_0 = arith.constant 0 : index
    %0 = vector.load %arg1[%c0, %c0_0] : memref<128x16xf32, #tpu.memory_space<vmem>>, vector<128x16xf32>
    %c0_1 = arith.constant 0 : index
    %c0_2 = arith.constant 0 : index
    %1 = vector.load %arg3[%c0_1, %c0_2] : memref<16x32xf32, #tpu.memory_space<vmem>>, vector<16x32xf32>
    %cst = arith.constant dense<0.000000e+00> : vector<128x32xf32>
    %2 = tpu.matmul %0, %1, %cst {dimension_numbers = #tpu.dot_dimension_numbers<[1], [0], [0], [1], [0, 0, 1, 1], [], []>} : vector<128x16xf32>, vector<16x32xf32>, vector<128x32xf32> -> vector<128x32xf32>
    %c0_3 = arith.constant 0 : index
    %c0_4 = arith.constant 0 : index
    %3 = vector.load %arg4[%c0_3, %c0_4] : memref<1x32xf32, #tpu.memory_space<vmem>>, vector<1x32xf32>
    %4 = vector.broadcast %3 : vector<1x32xf32> to vector<128x32xf32>
    %5 = arith.addf %2, %4 : vector<128x32xf32>
    %cst_5 = arith.constant 0.000000e+00 : f32
    %6 = vector.broadcast %cst_5 : f32 to vector<128x32xf32>
    %7 = arith.maximumf %5, %6 : vector<128x32xf32>
    %c0_6 = arith.constant 0 : index
    %c0_7 = arith.constant 0 : index
    %8 = vector.load %arg5[%c0_6, %c0_7] : memref<32x132xf32, #tpu.memory_space<vmem>>, vector<32x132xf32>
    %cst_8 = arith.constant dense<0.000000e+00> : vector<128x132xf32>
    %9 = tpu.matmul %7, %8, %cst_8 {dimension_numbers = #tpu.dot_dimension_numbers<[1], [0], [0], [1], [0, 0, 1, 1], [], []>} : vector<128x32xf32>, vector<32x132xf32>, vector<128x132xf32> -> vector<128x132xf32>
    %10 = vector.extract_strided_slice %9 {offsets = [0, 0], sizes = [128, 128], strides = [1, 1]} : vector<128x132xf32> to vector<128x128xf32>
    %11 = vector.extract_strided_slice %9 {offsets = [0, 128], sizes = [128, 4], strides = [1, 1]} : vector<128x132xf32> to vector<128x4xf32>
    %c0_9 = arith.constant 0 : index
    %c0_10 = arith.constant 0 : index
    %12 = vector.load %arg6[%c0_9, %c0_10] : memref<1x4xf32, #tpu.memory_space<vmem>>, vector<1x4xf32>
    %13 = vector.broadcast %12 : vector<1x4xf32> to vector<128x4xf32>
    %14 = arith.addf %11, %13 : vector<128x4xf32>
    %cst_11 = arith.constant dense<0xFF800000> : vector<128xf32>
    %15 = vector.multi_reduction <maximumf>, %14, %cst_11 [1] : vector<128x4xf32> to vector<128xf32>
    %16 = vector.shape_cast %15 : vector<128xf32> to vector<128x1xf32>
    %17 = vector.broadcast %16 : vector<128x1xf32> to vector<128x4xf32>
    %18 = arith.subf %14, %17 : vector<128x4xf32>
    %cst_12 = arith.constant dense<0x7F800000> : vector<128xf32>
    %19 = vector.multi_reduction <minimumf>, %11, %cst_12 [1] : vector<128x4xf32> to vector<128xf32>
    %20 = vector.shape_cast %19 : vector<128xf32> to vector<128x1xf32>
    %21 = vector.broadcast %20 : vector<128x1xf32> to vector<128x4xf32>
    %22 = arith.subf %11, %21 : vector<128x4xf32>
    %23 = tpu.transpose %18, [1, 0] : vector<128x4xf32> -> vector<4x128xf32>
    %24 = vector.extract_strided_slice %23 {offsets = [0, 0], sizes = [1, 128], strides = [1, 1]} : vector<4x128xf32> to vector<1x128xf32>
    %25 = vector.extract_strided_slice %22 {offsets = [0, 0], sizes = [128, 1], strides = [1, 1]} : vector<128x4xf32> to vector<128x1xf32>
    %26 = vector.broadcast %24 : vector<1x128xf32> to vector<128x128xf32>
    %27 = vector.broadcast %25 : vector<128x1xf32> to vector<128x128xf32>
    %28 = arith.subf %26, %27 : vector<128x128xf32>
    %29 = math.exp %28 : vector<128x128xf32>
    %c0_13 = arith.constant 0 : index
    %c0_14 = arith.constant 0 : index
    %c0_15 = arith.constant 0 : index
    %30 = vector.load %arg18[%c0_13, %c0_14, %c0_15] : memref<4x128x128xf32, #tpu.memory_space<vmem>>, vector<1x128x128xf32>
    %31 = vector.shape_cast %30 : vector<1x128x128xf32> to vector<128x128xf32>
    %32 = vector.shape_cast %29 : vector<128x128xf32> to vector<1x128x128xf32>
    tpu.vector_store %arg18[%c0_13, %c0_14, %c0_15], %32 {strides = array<i32>} : memref<4x128x128xf32, #tpu.memory_space<vmem>>, vector<1x128x128xf32>,
    %33 = vector.extract_strided_slice %23 {offsets = [1, 0], sizes = [1, 128], strides = [1, 1]} : vector<4x128xf32> to vector<1x128xf32>
    %34 = vector.extract_strided_slice %22 {offsets = [0, 1], sizes = [128, 1], strides = [1, 1]} : vector<128x4xf32> to vector<128x1xf32>
    %35 = vector.broadcast %33 : vector<1x128xf32> to vector<128x128xf32>
    %36 = vector.broadcast %34 : vector<128x1xf32> to vector<128x128xf32>
    %37 = arith.subf %35, %36 : vector<128x128xf32>
    %38 = math.exp %37 : vector<128x128xf32>
    %c1 = arith.constant 1 : index
    %c0_16 = arith.constant 0 : index
    %c0_17 = arith.constant 0 : index
    %39 = vector.load %arg18[%c1, %c0_16, %c0_17] : memref<4x128x128xf32, #tpu.memory_space<vmem>>, vector<1x128x128xf32>
    %40 = vector.shape_cast %39 : vector<1x128x128xf32> to vector<128x128xf32>
    %41 = vector.shape_cast %38 : vector<128x128xf32> to vector<1x128x128xf32>
    tpu.vector_store %arg18[%c1, %c0_16, %c0_17], %41 {strides = array<i32>} : memref<4x128x128xf32, #tpu.memory_space<vmem>>, vector<1x128x128xf32>,
    %42 = arith.addf %29, %38 : vector<128x128xf32>
    %43 = vector.extract_strided_slice %23 {offsets = [2, 0], sizes = [1, 128], strides = [1, 1]} : vector<4x128xf32> to vector<1x128xf32>
    %44 = vector.extract_strided_slice %22 {offsets = [0, 2], sizes = [128, 1], strides = [1, 1]} : vector<128x4xf32> to vector<128x1xf32>
    %45 = vector.broadcast %43 : vector<1x128xf32> to vector<128x128xf32>
    %46 = vector.broadcast %44 : vector<128x1xf32> to vector<128x128xf32>
    %47 = arith.subf %45, %46 : vector<128x128xf32>
    %48 = math.exp %47 : vector<128x128xf32>
    %c2 = arith.constant 2 : index
    %c0_18 = arith.constant 0 : index
    %c0_19 = arith.constant 0 : index
    %49 = vector.load %arg18[%c2, %c0_18, %c0_19] : memref<4x128x128xf32, #tpu.memory_space<vmem>>, vector<1x128x128xf32>
    %50 = vector.shape_cast %49 : vector<1x128x128xf32> to vector<128x128xf32>
    %51 = vector.shape_cast %48 : vector<128x128xf32> to vector<1x128x128xf32>
    tpu.vector_store %arg18[%c2, %c0_18, %c0_19], %51 {strides = array<i32>} : memref<4x128x128xf32, #tpu.memory_space<vmem>>, vector<1x128x128xf32>,
    %52 = arith.addf %42, %48 : vector<128x128xf32>
    %53 = vector.extract_strided_slice %23 {offsets = [3, 0], sizes = [1, 128], strides = [1, 1]} : vector<4x128xf32> to vector<1x128xf32>
    %54 = vector.extract_strided_slice %22 {offsets = [0, 3], sizes = [128, 1], strides = [1, 1]} : vector<128x4xf32> to vector<128x1xf32>
    %55 = vector.broadcast %53 : vector<1x128xf32> to vector<128x128xf32>
    %56 = vector.broadcast %54 : vector<128x1xf32> to vector<128x128xf32>
    %57 = arith.subf %55, %56 : vector<128x128xf32>
    %58 = math.exp %57 : vector<128x128xf32>
    %c3 = arith.constant 3 : index
    %c0_20 = arith.constant 0 : index
    %c0_21 = arith.constant 0 : index
    %59 = vector.load %arg18[%c3, %c0_20, %c0_21] : memref<4x128x128xf32, #tpu.memory_space<vmem>>, vector<1x128x128xf32>
    %60 = vector.shape_cast %59 : vector<1x128x128xf32> to vector<128x128xf32>
    %61 = vector.shape_cast %58 : vector<128x128xf32> to vector<1x128x128xf32>
    tpu.vector_store %arg18[%c3, %c0_20, %c0_21], %61 {strides = array<i32>} : memref<4x128x128xf32, #tpu.memory_space<vmem>>, vector<1x128x128xf32>,
    %62 = arith.addf %52, %58 : vector<128x128xf32>
    %63 = tpu.reciprocal %62 {approx = true} : vector<128x128xf32> -> vector<128x128xf32>
    %64 = arith.mulf %62, %63 : vector<128x128xf32>
    %cst_22 = arith.constant 2.000000e+00 : f32
    %65 = vector.broadcast %cst_22 : f32 to vector<128x128xf32>
    %66 = arith.subf %65, %64 : vector<128x128xf32>
    %67 = arith.mulf %63, %66 : vector<128x128xf32>
    %c0_23 = arith.constant 0 : index
    %c0_24 = arith.constant 0 : index
    %68 = vector.load %arg2[%c0_23, %c0_24] : memref<128x128xf32, #tpu.memory_space<vmem>>, vector<128x128xf32>
    %69 = arith.mulf %68, %67 : vector<128x128xf32>
    %c0_25 = arith.constant 0 : index
    %c0_26 = arith.constant 0 : index
    %c0_27 = arith.constant 0 : index
    %70 = vector.load %arg18[%c0_25, %c0_26, %c0_27] : memref<4x128x128xf32, #tpu.memory_space<vmem>>, vector<1x128x128xf32>
    %71 = vector.shape_cast %70 : vector<1x128x128xf32> to vector<128x128xf32>
    %72 = arith.mulf %69, %71 : vector<128x128xf32>
    %73 = vector.extract_strided_slice %10 {offsets = [0, 0], sizes = [128, 32], strides = [1, 1]} : vector<128x128xf32> to vector<128x32xf32>
    %cst_28 = arith.constant dense<0.000000e+00> : vector<128x32xf32>
    %74 = tpu.matmul %72, %73, %cst_28 {dimension_numbers = #tpu.dot_dimension_numbers<[1], [0], [0], [1], [0, 0, 1, 1], [], []>} : vector<128x128xf32>, vector<128x32xf32>, vector<128x32xf32> -> vector<128x32xf32>
    %c1_29 = arith.constant 1 : index
    %c0_30 = arith.constant 0 : index
    %c0_31 = arith.constant 0 : index
    %75 = vector.load %arg18[%c1_29, %c0_30, %c0_31] : memref<4x128x128xf32, #tpu.memory_space<vmem>>, vector<1x128x128xf32>
    %76 = vector.shape_cast %75 : vector<1x128x128xf32> to vector<128x128xf32>
    %77 = arith.mulf %69, %76 : vector<128x128xf32>
    %78 = vector.extract_strided_slice %10 {offsets = [0, 32], sizes = [128, 32], strides = [1, 1]} : vector<128x128xf32> to vector<128x32xf32>
    %cst_32 = arith.constant dense<0.000000e+00> : vector<128x32xf32>
    %79 = tpu.matmul %77, %78, %cst_32 {dimension_numbers = #tpu.dot_dimension_numbers<[1], [0], [0], [1], [0, 0, 1, 1], [], []>} : vector<128x128xf32>, vector<128x32xf32>, vector<128x32xf32> -> vector<128x32xf32>
    %80 = arith.addf %74, %79 : vector<128x32xf32>
    %c2_33 = arith.constant 2 : index
    %c0_34 = arith.constant 0 : index
    %c0_35 = arith.constant 0 : index
    %81 = vector.load %arg18[%c2_33, %c0_34, %c0_35] : memref<4x128x128xf32, #tpu.memory_space<vmem>>, vector<1x128x128xf32>
    %82 = vector.shape_cast %81 : vector<1x128x128xf32> to vector<128x128xf32>
    %83 = arith.mulf %69, %82 : vector<128x128xf32>
    %84 = vector.extract_strided_slice %10 {offsets = [0, 64], sizes = [128, 32], strides = [1, 1]} : vector<128x128xf32> to vector<128x32xf32>
    %cst_36 = arith.constant dense<0.000000e+00> : vector<128x32xf32>
    %85 = tpu.matmul %83, %84, %cst_36 {dimension_numbers = #tpu.dot_dimension_numbers<[1], [0], [0], [1], [0, 0, 1, 1], [], []>} : vector<128x128xf32>, vector<128x32xf32>, vector<128x32xf32> -> vector<128x32xf32>
    %86 = arith.addf %80, %85 : vector<128x32xf32>
    %c3_37 = arith.constant 3 : index
    %c0_38 = arith.constant 0 : index
    %c0_39 = arith.constant 0 : index
    %87 = vector.load %arg18[%c3_37, %c0_38, %c0_39] : memref<4x128x128xf32, #tpu.memory_space<vmem>>, vector<1x128x128xf32>
    %88 = vector.shape_cast %87 : vector<1x128x128xf32> to vector<128x128xf32>
    %89 = arith.mulf %69, %88 : vector<128x128xf32>
    %90 = vector.extract_strided_slice %10 {offsets = [0, 96], sizes = [128, 32], strides = [1, 1]} : vector<128x128xf32> to vector<128x32xf32>
    %cst_40 = arith.constant dense<0.000000e+00> : vector<128x32xf32>
    %91 = tpu.matmul %89, %90, %cst_40 {dimension_numbers = #tpu.dot_dimension_numbers<[1], [0], [0], [1], [0, 0, 1, 1], [], []>} : vector<128x128xf32>, vector<128x32xf32>, vector<128x32xf32> -> vector<128x32xf32>
    %92 = arith.addf %86, %91 : vector<128x32xf32>
    %c0_41 = arith.constant 0 : index
    %c0_42 = arith.constant 0 : index
    %93 = vector.load %arg7[%c0_41, %c0_42] : memref<1x32xf32, #tpu.memory_space<vmem>>, vector<1x32xf32>
    %94 = vector.broadcast %93 : vector<1x32xf32> to vector<128x32xf32>
    %95 = arith.addf %92, %94 : vector<128x32xf32>
    %cst_43 = arith.constant 0.000000e+00 : f32
    %96 = vector.broadcast %cst_43 : f32 to vector<128x32xf32>
    %97 = arith.maximumf %95, %96 : vector<128x32xf32>
    %c0_44 = arith.constant 0 : index
    %c0_45 = arith.constant 0 : index
    %98 = vector.load %arg8[%c0_44, %c0_45] : memref<32x132xf32, #tpu.memory_space<vmem>>, vector<32x132xf32>
    %cst_46 = arith.constant dense<0.000000e+00> : vector<128x132xf32>
    %99 = tpu.matmul %97, %98, %cst_46 {dimension_numbers = #tpu.dot_dimension_numbers<[1], [0], [0], [1], [0, 0, 1, 1], [], []>} : vector<128x32xf32>, vector<32x132xf32>, vector<128x132xf32> -> vector<128x132xf32>
    %100 = vector.extract_strided_slice %99 {offsets = [0, 0], sizes = [128, 128], strides = [1, 1]} : vector<128x132xf32> to vector<128x128xf32>
    %101 = vector.extract_strided_slice %99 {offsets = [0, 128], sizes = [128, 4], strides = [1, 1]} : vector<128x132xf32> to vector<128x4xf32>
    %c0_47 = arith.constant 0 : index
    %c0_48 = arith.constant 0 : index
    %102 = vector.load %arg9[%c0_47, %c0_48] : memref<1x4xf32, #tpu.memory_space<vmem>>, vector<1x4xf32>
    %103 = vector.broadcast %102 : vector<1x4xf32> to vector<128x4xf32>
    %104 = arith.addf %101, %103 : vector<128x4xf32>
    %cst_49 = arith.constant dense<0xFF800000> : vector<128xf32>
    %105 = vector.multi_reduction <maximumf>, %104, %cst_49 [1] : vector<128x4xf32> to vector<128xf32>
    %106 = vector.shape_cast %105 : vector<128xf32> to vector<128x1xf32>
    %107 = vector.broadcast %106 : vector<128x1xf32> to vector<128x4xf32>
    %108 = arith.subf %104, %107 : vector<128x4xf32>
    %cst_50 = arith.constant dense<0x7F800000> : vector<128xf32>
    %109 = vector.multi_reduction <minimumf>, %101, %cst_50 [1] : vector<128x4xf32> to vector<128xf32>
    %110 = vector.shape_cast %109 : vector<128xf32> to vector<128x1xf32>
    %111 = vector.broadcast %110 : vector<128x1xf32> to vector<128x4xf32>
    %112 = arith.subf %101, %111 : vector<128x4xf32>
    %113 = tpu.transpose %108, [1, 0] : vector<128x4xf32> -> vector<4x128xf32>
    %114 = vector.extract_strided_slice %113 {offsets = [0, 0], sizes = [1, 128], strides = [1, 1]} : vector<4x128xf32> to vector<1x128xf32>
    %115 = vector.extract_strided_slice %112 {offsets = [0, 0], sizes = [128, 1], strides = [1, 1]} : vector<128x4xf32> to vector<128x1xf32>
    %116 = vector.broadcast %114 : vector<1x128xf32> to vector<128x128xf32>
    %117 = vector.broadcast %115 : vector<128x1xf32> to vector<128x128xf32>
    %118 = arith.subf %116, %117 : vector<128x128xf32>
    %119 = math.exp %118 : vector<128x128xf32>
    %c0_51 = arith.constant 0 : index
    %c0_52 = arith.constant 0 : index
    %c0_53 = arith.constant 0 : index
    %120 = vector.load %arg18[%c0_51, %c0_52, %c0_53] : memref<4x128x128xf32, #tpu.memory_space<vmem>>, vector<1x128x128xf32>
    %121 = vector.shape_cast %120 : vector<1x128x128xf32> to vector<128x128xf32>
    %122 = vector.shape_cast %119 : vector<128x128xf32> to vector<1x128x128xf32>
    tpu.vector_store %arg18[%c0_51, %c0_52, %c0_53], %122 {strides = array<i32>} : memref<4x128x128xf32, #tpu.memory_space<vmem>>, vector<1x128x128xf32>,
    %123 = vector.extract_strided_slice %113 {offsets = [1, 0], sizes = [1, 128], strides = [1, 1]} : vector<4x128xf32> to vector<1x128xf32>
    %124 = vector.extract_strided_slice %112 {offsets = [0, 1], sizes = [128, 1], strides = [1, 1]} : vector<128x4xf32> to vector<128x1xf32>
    %125 = vector.broadcast %123 : vector<1x128xf32> to vector<128x128xf32>
    %126 = vector.broadcast %124 : vector<128x1xf32> to vector<128x128xf32>
    %127 = arith.subf %125, %126 : vector<128x128xf32>
    %128 = math.exp %127 : vector<128x128xf32>
    %c1_54 = arith.constant 1 : index
    %c0_55 = arith.constant 0 : index
    %c0_56 = arith.constant 0 : index
    %129 = vector.load %arg18[%c1_54, %c0_55, %c0_56] : memref<4x128x128xf32, #tpu.memory_space<vmem>>, vector<1x128x128xf32>
    %130 = vector.shape_cast %129 : vector<1x128x128xf32> to vector<128x128xf32>
    %131 = vector.shape_cast %128 : vector<128x128xf32> to vector<1x128x128xf32>
    tpu.vector_store %arg18[%c1_54, %c0_55, %c0_56], %131 {strides = array<i32>} : memref<4x128x128xf32, #tpu.memory_space<vmem>>, vector<1x128x128xf32>,
    %132 = arith.addf %119, %128 : vector<128x128xf32>
    %133 = vector.extract_strided_slice %113 {offsets = [2, 0], sizes = [1, 128], strides = [1, 1]} : vector<4x128xf32> to vector<1x128xf32>
    %134 = vector.extract_strided_slice %112 {offsets = [0, 2], sizes = [128, 1], strides = [1, 1]} : vector<128x4xf32> to vector<128x1xf32>
    %135 = vector.broadcast %133 : vector<1x128xf32> to vector<128x128xf32>
    %136 = vector.broadcast %134 : vector<128x1xf32> to vector<128x128xf32>
    %137 = arith.subf %135, %136 : vector<128x128xf32>
    %138 = math.exp %137 : vector<128x128xf32>
    %c2_57 = arith.constant 2 : index
    %c0_58 = arith.constant 0 : index
    %c0_59 = arith.constant 0 : index
    %139 = vector.load %arg18[%c2_57, %c0_58, %c0_59] : memref<4x128x128xf32, #tpu.memory_space<vmem>>, vector<1x128x128xf32>
    %140 = vector.shape_cast %139 : vector<1x128x128xf32> to vector<128x128xf32>
    %141 = vector.shape_cast %138 : vector<128x128xf32> to vector<1x128x128xf32>
    tpu.vector_store %arg18[%c2_57, %c0_58, %c0_59], %141 {strides = array<i32>} : memref<4x128x128xf32, #tpu.memory_space<vmem>>, vector<1x128x128xf32>,
    %142 = arith.addf %132, %138 : vector<128x128xf32>
    %143 = vector.extract_strided_slice %113 {offsets = [3, 0], sizes = [1, 128], strides = [1, 1]} : vector<4x128xf32> to vector<1x128xf32>
    %144 = vector.extract_strided_slice %112 {offsets = [0, 3], sizes = [128, 1], strides = [1, 1]} : vector<128x4xf32> to vector<128x1xf32>
    %145 = vector.broadcast %143 : vector<1x128xf32> to vector<128x128xf32>
    %146 = vector.broadcast %144 : vector<128x1xf32> to vector<128x128xf32>
    %147 = arith.subf %145, %146 : vector<128x128xf32>
    %148 = math.exp %147 : vector<128x128xf32>
    %c3_60 = arith.constant 3 : index
    %c0_61 = arith.constant 0 : index
    %c0_62 = arith.constant 0 : index
    %149 = vector.load %arg18[%c3_60, %c0_61, %c0_62] : memref<4x128x128xf32, #tpu.memory_space<vmem>>, vector<1x128x128xf32>
    %150 = vector.shape_cast %149 : vector<1x128x128xf32> to vector<128x128xf32>
    %151 = vector.shape_cast %148 : vector<128x128xf32> to vector<1x128x128xf32>
    tpu.vector_store %arg18[%c3_60, %c0_61, %c0_62], %151 {strides = array<i32>} : memref<4x128x128xf32, #tpu.memory_space<vmem>>, vector<1x128x128xf32>,
    %152 = arith.addf %142, %148 : vector<128x128xf32>
    %153 = tpu.reciprocal %152 {approx = true} : vector<128x128xf32> -> vector<128x128xf32>
    %154 = arith.mulf %152, %153 : vector<128x128xf32>
    %cst_63 = arith.constant 2.000000e+00 : f32
    %155 = vector.broadcast %cst_63 : f32 to vector<128x128xf32>
    %156 = arith.subf %155, %154 : vector<128x128xf32>
    %157 = arith.mulf %153, %156 : vector<128x128xf32>
    %c0_64 = arith.constant 0 : index
    %c0_65 = arith.constant 0 : index
    %158 = vector.load %arg2[%c0_64, %c0_65] : memref<128x128xf32, #tpu.memory_space<vmem>>, vector<128x128xf32>
    %159 = arith.mulf %158, %157 : vector<128x128xf32>
    %c0_66 = arith.constant 0 : index
    %c0_67 = arith.constant 0 : index
    %c0_68 = arith.constant 0 : index
    %160 = vector.load %arg18[%c0_66, %c0_67, %c0_68] : memref<4x128x128xf32, #tpu.memory_space<vmem>>, vector<1x128x128xf32>
    %161 = vector.shape_cast %160 : vector<1x128x128xf32> to vector<128x128xf32>
    %162 = arith.mulf %159, %161 : vector<128x128xf32>
    %163 = vector.extract_strided_slice %100 {offsets = [0, 0], sizes = [128, 32], strides = [1, 1]} : vector<128x128xf32> to vector<128x32xf32>
    %cst_69 = arith.constant dense<0.000000e+00> : vector<128x32xf32>
    %164 = tpu.matmul %162, %163, %cst_69 {dimension_numbers = #tpu.dot_dimension_numbers<[1], [0], [0], [1], [0, 0, 1, 1], [], []>} : vector<128x128xf32>, vector<128x32xf32>, vector<128x32xf32> -> vector<128x32xf32>
    %c1_70 = arith.constant 1 : index
    %c0_71 = arith.constant 0 : index
    %c0_72 = arith.constant 0 : index
    %165 = vector.load %arg18[%c1_70, %c0_71, %c0_72] : memref<4x128x128xf32, #tpu.memory_space<vmem>>, vector<1x128x128xf32>
    %166 = vector.shape_cast %165 : vector<1x128x128xf32> to vector<128x128xf32>
    %167 = arith.mulf %159, %166 : vector<128x128xf32>
    %168 = vector.extract_strided_slice %100 {offsets = [0, 32], sizes = [128, 32], strides = [1, 1]} : vector<128x128xf32> to vector<128x32xf32>
    %cst_73 = arith.constant dense<0.000000e+00> : vector<128x32xf32>
    %169 = tpu.matmul %167, %168, %cst_73 {dimension_numbers = #tpu.dot_dimension_numbers<[1], [0], [0], [1], [0, 0, 1, 1], [], []>} : vector<128x128xf32>, vector<128x32xf32>, vector<128x32xf32> -> vector<128x32xf32>
    %170 = arith.addf %164, %169 : vector<128x32xf32>
    %c2_74 = arith.constant 2 : index
    %c0_75 = arith.constant 0 : index
    %c0_76 = arith.constant 0 : index
    %171 = vector.load %arg18[%c2_74, %c0_75, %c0_76] : memref<4x128x128xf32, #tpu.memory_space<vmem>>, vector<1x128x128xf32>
    %172 = vector.shape_cast %171 : vector<1x128x128xf32> to vector<128x128xf32>
    %173 = arith.mulf %159, %172 : vector<128x128xf32>
    %174 = vector.extract_strided_slice %100 {offsets = [0, 64], sizes = [128, 32], strides = [1, 1]} : vector<128x128xf32> to vector<128x32xf32>
    %cst_77 = arith.constant dense<0.000000e+00> : vector<128x32xf32>
    %175 = tpu.matmul %173, %174, %cst_77 {dimension_numbers = #tpu.dot_dimension_numbers<[1], [0], [0], [1], [0, 0, 1, 1], [], []>} : vector<128x128xf32>, vector<128x32xf32>, vector<128x32xf32> -> vector<128x32xf32>
    %176 = arith.addf %170, %175 : vector<128x32xf32>
    %c3_78 = arith.constant 3 : index
    %c0_79 = arith.constant 0 : index
    %c0_80 = arith.constant 0 : index
    %177 = vector.load %arg18[%c3_78, %c0_79, %c0_80] : memref<4x128x128xf32, #tpu.memory_space<vmem>>, vector<1x128x128xf32>
    %178 = vector.shape_cast %177 : vector<1x128x128xf32> to vector<128x128xf32>
    %179 = arith.mulf %159, %178 : vector<128x128xf32>
    %180 = vector.extract_strided_slice %100 {offsets = [0, 96], sizes = [128, 32], strides = [1, 1]} : vector<128x128xf32> to vector<128x32xf32>
    %cst_81 = arith.constant dense<0.000000e+00> : vector<128x32xf32>
    %181 = tpu.matmul %179, %180, %cst_81 {dimension_numbers = #tpu.dot_dimension_numbers<[1], [0], [0], [1], [0, 0, 1, 1], [], []>} : vector<128x128xf32>, vector<128x32xf32>, vector<128x32xf32> -> vector<128x32xf32>
    %182 = arith.addf %176, %181 : vector<128x32xf32>
    %c0_82 = arith.constant 0 : index
    %c0_83 = arith.constant 0 : index
    %183 = vector.load %arg10[%c0_82, %c0_83] : memref<1x32xf32, #tpu.memory_space<vmem>>, vector<1x32xf32>
    %184 = vector.broadcast %183 : vector<1x32xf32> to vector<128x32xf32>
    %185 = arith.addf %182, %184 : vector<128x32xf32>
    %cst_84 = arith.constant 0.000000e+00 : f32
    %186 = vector.broadcast %cst_84 : f32 to vector<128x32xf32>
    %187 = arith.maximumf %185, %186 : vector<128x32xf32>
    %c0_85 = arith.constant 0 : index
    %c0_86 = arith.constant 0 : index
    %188 = vector.load %arg11[%c0_85, %c0_86] : memref<32x32xf32, #tpu.memory_space<vmem>>, vector<32x32xf32>
    %cst_87 = arith.constant dense<0.000000e+00> : vector<128x32xf32>
    %189 = tpu.matmul %187, %188, %cst_87 {dimension_numbers = #tpu.dot_dimension_numbers<[1], [0], [0], [1], [0, 0, 1, 1], [], []>} : vector<128x32xf32>, vector<32x32xf32>, vector<128x32xf32> -> vector<128x32xf32>
    %c0_88 = arith.constant 0 : index
    %c0_89 = arith.constant 0 : index
    %190 = vector.load %arg12[%c0_88, %c0_89] : memref<1x32xf32, #tpu.memory_space<vmem>>, vector<1x32xf32>
    %191 = vector.broadcast %190 : vector<1x32xf32> to vector<128x32xf32>
    %192 = arith.addf %189, %191 : vector<128x32xf32>
    %cst_90 = arith.constant 0.000000e+00 : f32
    %193 = vector.broadcast %cst_90 : f32 to vector<128x32xf32>
    %194 = arith.maximumf %192, %193 : vector<128x32xf32>
    %c0_91 = arith.constant 0 : index
    %c0_92 = arith.constant 0 : index
    %195 = vector.load %arg13[%c0_91, %c0_92] : memref<32x32xf32, #tpu.memory_space<vmem>>, vector<32x32xf32>
    %cst_93 = arith.constant dense<0.000000e+00> : vector<128x32xf32>
    %196 = tpu.matmul %194, %195, %cst_93 {dimension_numbers = #tpu.dot_dimension_numbers<[1], [0], [0], [1], [0, 0, 1, 1], [], []>} : vector<128x32xf32>, vector<32x32xf32>, vector<128x32xf32> -> vector<128x32xf32>
    %c0_94 = arith.constant 0 : index
    %c0_95 = arith.constant 0 : index
    %197 = vector.load %arg14[%c0_94, %c0_95] : memref<1x32xf32, #tpu.memory_space<vmem>>, vector<1x32xf32>
    %198 = vector.broadcast %197 : vector<1x32xf32> to vector<128x32xf32>
    %199 = arith.addf %196, %198 : vector<128x32xf32>
    %cst_96 = arith.constant 0.000000e+00 : f32
    %200 = vector.broadcast %cst_96 : f32 to vector<128x32xf32>
    %201 = arith.maximumf %199, %200 : vector<128x32xf32>
    %c0_97 = arith.constant 0 : index
    %c0_98 = arith.constant 0 : index
    %202 = vector.load %arg15[%c0_97, %c0_98] : memref<32x2xf32, #tpu.memory_space<vmem>>, vector<32x2xf32>
    %cst_99 = arith.constant dense<0.000000e+00> : vector<128x2xf32>
    %203 = tpu.matmul %201, %202, %cst_99 {dimension_numbers = #tpu.dot_dimension_numbers<[1], [0], [0], [1], [0, 0, 1, 1], [], []>} : vector<128x32xf32>, vector<32x2xf32>, vector<128x2xf32> -> vector<128x2xf32>
    %c0_100 = arith.constant 0 : index
    %c0_101 = arith.constant 0 : index
    %204 = vector.load %arg16[%c0_100, %c0_101] : memref<1x2xf32, #tpu.memory_space<vmem>>, vector<1x2xf32>
    %205 = vector.broadcast %204 : vector<1x2xf32> to vector<128x2xf32>
    %206 = arith.addf %203, %205 : vector<128x2xf32>
    %c0_102 = arith.constant 0 : index
    %c0_103 = arith.constant 0 : index
    %207 = vector.load %arg17[%c0_102, %c0_103] : memref<128x2xf32, #tpu.memory_space<vmem>>, vector<128x2xf32>
    tpu.vector_store %arg17[%c0_102, %c0_103], %206 {strides = array<i32>} : memref<128x2xf32, #tpu.memory_space<vmem>>, vector<128x2xf32>,
    return
  }
  func.func @transform_0(%arg0: i32) -> (i32, i32) {
    %c0_i32 = arith.constant 0 : i32
    %c0_i32_0 = arith.constant 0 : i32
    %c0_i32_1 = arith.constant 0 : i32
    return %c0_i32, %c0_i32_0 : i32, i32
  }
  func.func @transform_1(%arg0: i32) -> (i32, i32) {
    %c0_i32 = arith.constant 0 : i32
    %c0_i32_0 = arith.constant 0 : i32
    %c0_i32_1 = arith.constant 0 : i32
    return %c0_i32, %c0_i32_0 : i32, i32
  }
  func.func @transform_2(%arg0: i32) -> (i32, i32) {
    %c0_i32 = arith.constant 0 : i32
    %c0_i32_0 = arith.constant 0 : i32
    %c0_i32_1 = arith.constant 0 : i32
    return %c0_i32, %c0_i32_0 : i32, i32
  }
  func.func @transform_3(%arg0: i32) -> (i32, i32) {
    %c0_i32 = arith.constant 0 : i32
    %c0_i32_0 = arith.constant 0 : i32
    %c0_i32_1 = arith.constant 0 : i32
    return %c0_i32, %c0_i32_0 : i32, i32
  }
  func.func @transform_4(%arg0: i32) -> (i32, i32) {
    %c0_i32 = arith.constant 0 : i32
    %c0_i32_0 = arith.constant 0 : i32
    %c0_i32_1 = arith.constant 0 : i32
    return %c0_i32, %c0_i32_0 : i32, i32
  }
  func.func @transform_5(%arg0: i32) -> (i32, i32) {
    %c0_i32 = arith.constant 0 : i32
    %c0_i32_0 = arith.constant 0 : i32
    %c0_i32_1 = arith.constant 0 : i32
    return %c0_i32, %c0_i32_0 : i32, i32
  }
  func.func @transform_6(%arg0: i32) -> (i32, i32) {
    %c0_i32 = arith.constant 0 : i32
    %c0_i32_0 = arith.constant 0 : i32
    %c0_i32_1 = arith.constant 0 : i32
    return %c0_i32, %c0_i32_0 : i32, i32
  }
  func.func @transform_7(%arg0: i32) -> (i32, i32) {
    %c0_i32 = arith.constant 0 : i32
    %c0_i32_0 = arith.constant 0 : i32
    %c0_i32_1 = arith.constant 0 : i32
    return %c0_i32, %c0_i32_0 : i32, i32
  }
  func.func @transform_8(%arg0: i32) -> (i32, i32) {
    %c0_i32 = arith.constant 0 : i32
    %c0_i32_0 = arith.constant 0 : i32
    %c0_i32_1 = arith.constant 0 : i32
    return %c0_i32, %c0_i32_0 : i32, i32
  }
  func.func @transform_9(%arg0: i32) -> (i32, i32) {
    %c0_i32 = arith.constant 0 : i32
    %c0_i32_0 = arith.constant 0 : i32
    %c0_i32_1 = arith.constant 0 : i32
    return %c0_i32, %c0_i32_0 : i32, i32
  }
  func.func @transform_10(%arg0: i32) -> (i32, i32) {
    %c0_i32 = arith.constant 0 : i32
    %c0_i32_0 = arith.constant 0 : i32
    %c0_i32_1 = arith.constant 0 : i32
    return %c0_i32, %c0_i32_0 : i32, i32
  }
  func.func @transform_11(%arg0: i32) -> (i32, i32) {
    %c0_i32 = arith.constant 0 : i32
    %c0_i32_0 = arith.constant 0 : i32
    %c0_i32_1 = arith.constant 0 : i32
    return %c0_i32, %c0_i32_0 : i32, i32
  }
  func.func @transform_12(%arg0: i32) -> (i32, i32) {
    %c0_i32 = arith.constant 0 : i32
    %c0_i32_0 = arith.constant 0 : i32
    %c0_i32_1 = arith.constant 0 : i32
    return %c0_i32, %c0_i32_0 : i32, i32
  }
  func.func @transform_13(%arg0: i32) -> (i32, i32) {
    %c0_i32 = arith.constant 0 : i32
    %c0_i32_0 = arith.constant 0 : i32
    %c0_i32_1 = arith.constant 0 : i32
    return %c0_i32, %c0_i32_0 : i32, i32
  }
  func.func @transform_14(%arg0: i32) -> (i32, i32) {
    %c0_i32 = arith.constant 0 : i32
    %c0_i32_0 = arith.constant 0 : i32
    %c0_i32_1 = arith.constant 0 : i32
    return %c0_i32, %c0_i32_0 : i32, i32
  }
  func.func @transform_15(%arg0: i32) -> (i32, i32) {
    %c0_i32 = arith.constant 0 : i32
    %c0_i32_0 = arith.constant 0 : i32
    %c0_i32_1 = arith.constant 0 : i32
    return %c0_i32, %c0_i32_0 : i32, i32
  }
  func.func @transform_16(%arg0: i32) -> (i32, i32) {
    %c0_i32 = arith.constant 0 : i32
    %c0_i32_0 = arith.constant 0 : i32
    %c0_i32_1 = arith.constant 0 : i32
    return %c0_i32, %c0_i32_0 : i32, i32
  }
}

</mosaic_0001>

<bundles_post_ra>
// kernel: tpu_custom_call.1
= control target key start
LH: loop header
LB: loop body
LE: loop exit
PB: predicated region body
PF: predicated region fallthrough
CT: control target
= control target key end

     0   :  { %s10241_s0 = inlined_call_operand.vmem [shape: f32[128,16], index: 0, kind: input, shape index: {}]   ;;  %s10242_s1 = inlined_call_operand.vmem [shape: f32[128,128], index: 1, kind: input, shape index: {}]   ;;  %s10243_s2 = inlined_call_operand.hbm [shape: f32[16,32], index: 2, kind: input, shape index: {}]   ;;  %s10244_s3 = inlined_call_operand.vmem [shape: f32[1,32], index: 3, kind: input, shape index: {}]   ;;  %s10245_s4 = inlined_call_operand.vmem [shape: f32[32,132], index: 4, kind: input, shape index: {}]   ;;  %s10246_s5 = inlined_call_operand.vmem [shape: f32[1,4], index: 5, kind: input, shape index: {}]   ;;  %s10247_s6 = inlined_call_operand.vmem [shape: f32[1,32], index: 6, kind: input, shape index: {}]   ;;  %s10248_s7 = inlined_call_operand.hbm [shape: f32[32,132], index: 7, kind: input, shape index: {}]   ;;  %s10249_s8 = inlined_call_operand.vmem [shape: f32[1,4], index: 8, kind: input, shape index: {}]   ;;  %s10250_s9 = inlined_call_operand.vmem [shape: f32[1,32], index: 9, kind: input, shape index: {}]   ;;  %s10251_s10 = inlined_call_operand.hbm [shape: f32[32,32], index: 10, kind: input, shape index: {}]   ;;  %s10252_s11 = inlined_call_operand.vmem [shape: f32[1,32], index: 11, kind: input, shape index: {}]   ;;  %s10253_s12 = inlined_call_operand.hbm [shape: f32[32,32], index: 12, kind: input, shape index: {}]   ;;  %s10254_s13 = inlined_call_operand.vmem [shape: f32[1,32], index: 13, kind: input, shape index: {}]   ;;  %s10255_s14 = inlined_call_operand.vmem [shape: f32[32,2], index: 14, kind: input, shape index: {}]   ;;  %s10256_s15 = inlined_call_operand.vmem [shape: f32[1,2], index: 15, kind: input, shape index: {}]   ;;  %s10257_s16 = inlined_call_operand.vmem [shape: f32[128,2], index: 16, kind: output, shape index: {}]  }
   0x1   :  { %10330 = sst [smem:[#allocation44_spill]] %s10241_s0 }
   0x2   :  { %21 = vsyncpa [#allocation4], 0 }
   0x3   :  { %22 = vsyncpa [#allocation6], 0 }
   0x4   :  { %23 = vsyncpa [#allocation9], 0  ;;  %s7226_s21 = smov [#allocation5]   ;;  %s7132_s25 = scalar_lea.hbm %s10248_s7, 1024 }
   0x5   :  { %s53_s22 = sshll.u32 %s7226_s21, 4  ;;  %p7133_p0 = scmp.ne.s32.totalorder %s10248_s7, %s7132_s25  ;;  %s54_s22 = int_to_ptr.vmem [resolvable:$true] %s53_s22 }
   0x6   :  { %p7136_p1 = scmp.lt.u32.totalorder %s7132_s25, %s10248_s7 }
   0x8   :  { %p7138_p2 = pnand %p7136_p1, %p7133_p0 }
   0xa   :  { %7141 = shalt.err (!%p7138_p2)
}
   0xb   :  { %s7142_s30 = scalar_lea.vmem %s54_s22, 1024  ;;  %p7147_p4 = scmp.lt.s32.totalorder %s54_s22, %s54_s22 }
   0xc   :  { %p7143_p3 = scmp.ne.s32.totalorder %s54_s22, %s7142_s30  ;;  %p7148_p5 = scmp.lt.s32.totalorder %s7142_s30, %s7142_s30 }
   0xe   :  { %p7149_p6 = por %p7148_p5, %p7147_p4 }
  0x10   :  { %p7150_p7 = pnand %p7149_p6, %p7143_p3 }
  0x12   :  { %7153 = shalt.err (!%p7150_p7)
}
  0x13   :  { %s7227_s0 = smov 256   ;;  %s7228_s17 = smov 16  }
  0x14   :  { %59 = dma.hbm_to_vmem [thread:$0]  %s10248_s7, 1024, %s54_s22, [#allocation6], %s7227_s0, %s7227_s0, %s7228_s17  }
  0x15   :  { %s7229_s20 = smov [#allocation3]   ;;  %s7154_s25 = scalar_lea.hbm %s10243_s2, 256 }
  0x16   :  { %s33_s21 = sshll.u32 %s7229_s20, 4  ;;  %p7155_p8 = scmp.ne.s32.totalorder %s10243_s2, %s7154_s25  ;;  %s34_s21 = int_to_ptr.vmem [resolvable:$true] %s33_s21 }
  0x17   :  { %p7158_p9 = scmp.lt.u32.totalorder %s7154_s25, %s10243_s2 }
  0x19   :  { %p7160_p10 = pnand %p7158_p9, %p7155_p8 }
  0x1b   :  { %7163 = shalt.err (!%p7160_p10)
}
  0x1c   :  { %s7164_s30 = scalar_lea.vmem %s34_s21, 256  ;;  %p7169_p12 = scmp.lt.s32.totalorder %s34_s21, %s34_s21 }
  0x1d   :  { %p7165_p11 = scmp.ne.s32.totalorder %s34_s21, %s7164_s30  ;;  %p7170_p13 = scmp.lt.s32.totalorder %s7164_s30, %s7164_s30 }
  0x1f   :  { %p7171_p0 = por %p7170_p13, %p7169_p12 }
  0x21   :  { %p7172_p1 = pnand %p7171_p0, %p7165_p11 }
  0x23   :  { %7175 = shalt.err (!%p7172_p1)
}
  0x24   :  { %s7230_s7 = smov 128   ;;  %s7231_s22 = smov 8  }
  0x25   :  { %39 = dma.hbm_to_vmem [thread:$0]  %s10243_s2, 256, %s34_s21, [#allocation4], %s7230_s7, %s7230_s7, %s7231_s22  }
  0x26   :  { %s7232_s18 = smov [#allocation7]   ;;  %s7233_s20 = smov [#allocation8]  }
  0x27   :  { %s69_s19 = sshll.u32 %s7232_s18, 4  ;;  %s83_s23 = sshll.u32 %s7233_s20, 4  ;;  %s70_s19 = int_to_ptr.vmem [resolvable:$true] %s69_s19  ;;  %s7354_s23 = int_to_ptr.vmem [resolvable:$true] %s83_s23 }
  0x28   :  { %s7176_s26 = scalar_lea.hbm %s10251_s10, 512 }
  0x29   :  { %p7177_p2 = scmp.ne.s32.totalorder %s10251_s10, %s7176_s26  ;;  %p7180_p3 = scmp.lt.u32.totalorder %s7176_s26, %s10251_s10 }
  0x2b   :  { %p7182_p4 = pnand %p7180_p3, %p7177_p2 }
  0x2d   :  { %7185 = shalt.err (!%p7182_p4)
}
  0x2e   :  { %s7186_s2 = scalar_lea.vmem %s70_s19, 512  ;;  %p7191_p6 = scmp.lt.s32.totalorder %s70_s19, %s70_s19 }
  0x2f   :  { %p7187_p5 = scmp.ne.s32.totalorder %s70_s19, %s7186_s2  ;;  %p7192_p7 = scmp.lt.s32.totalorder %s7186_s2, %s7186_s2 }
  0x31   :  { %p7193_p8 = por %p7192_p7, %p7191_p6 }
  0x33   :  { %p7194_p9 = pnand %p7193_p8, %p7187_p5 }
  0x35   :  { %7197 = shalt.err (!%p7194_p9)
}
  0x36   :  { %75 = dma.hbm_to_vmem [thread:$0]  %s10251_s10, 512, %s70_s19, [#allocation6], %s7230_s7, %s7230_s7, %s7231_s22  }
  0x37   :  { %s7198_s20 = scalar_lea.hbm %s10253_s12, 512 }
  0x38   :  { %p7199_p10 = scmp.ne.s32.totalorder %s10253_s12, %s7198_s20  ;;  %p7202_p11 = scmp.lt.u32.totalorder %s7198_s20, %s10253_s12 }
  0x3a   :  { %p7204_p12 = pnand %p7202_p11, %p7199_p10 }
  0x3c   :  { %7207 = shalt.err (!%p7204_p12)
}
  0x3d   :  { %s7208_s28 = scalar_lea.vmem %s7354_s23, 512  ;;  %p7213_p0 = scmp.lt.s32.totalorder %s7354_s23, %s7354_s23 }
  0x3e   :  { %p7209_p13 = scmp.ne.s32.totalorder %s7354_s23, %s7208_s28  ;;  %p7214_p1 = scmp.lt.s32.totalorder %s7208_s28, %s7208_s28 }
  0x40   :  { %p7215_p2 = por %p7214_p1, %p7213_p0 }
  0x42   :  { %p7216_p3 = pnand %p7215_p2, %p7209_p13 }
  0x44   :  { %7219 = shalt.err (!%p7216_p3)
}
  0x45   :  { %89 = dma.hbm_to_vmem [thread:$0]  %s10253_s12, 512, %s7354_s23, [#allocation9], %s7230_s7, %s7230_s7, %s7231_s22  }
  0x46   :  { %7220 = dma.done.wait [#allocation4], 256  }
  0x47   :  { %7221 = vsyncadd [#allocation4], 4294967040 }
  0x48   :  { %7222 = dma.done.wait [#allocation6], 1536  }
  0x49   :  { %7223 = vsyncadd [#allocation6], 4294965760 }
  0x4a   :  { %7224 = dma.done.wait [#allocation9], 512  }
  0x4b   :  { %7225 = vsyncadd [#allocation9], 4294966784  ;;  %vm133_vm0 = vcmask 130048   ;;  %v124_v0 = vld [vmem:[#allocation3] sm:$0xff]  ;;  %v125_v1 = vld [vmem:[#allocation3 + $0x8] sm:$0xff]  ;;  %s10331_s2 = sld [smem:[#allocation44_spill]] }
  0x4c   :  { %v6080_v3 = vpack.c.bf16 %v125_v1, %v124_v0  ;;  %v344_v6 = vld [vmem:[%s10245_s4 + $0x8] sm:$0xff]  ;;  %v346_v7 = vld [vmem:[%s10245_s4 + $0x18] sm:$0xff]  ;;  %v343_v8 = vld [vmem:[%s10245_s4] sm:$0xff]  ;;  %v10259_v31 = vmov 0.0   ;;  %vm351_vm1 = vcmask 261120   ;;  %vm584_vm2 = vcmask 31744  }
  0x4d   :  { %v6084_v9 = vpack.c.bf16 %v346_v7, %v344_v6  ;;  %v345_v10 = vld [vmem:[%s10245_s4 + $0x10] sm:$0xff]  ;;  %v348_v25 = vld [vmem:[%s10245_s4 + $0x28] sm:$0xff]  ;;  %v350_v26 = vld [vmem:[%s10245_s4 + $0x38] sm:$0xff]  ;;  %464 = vmatprep.mubr.f32.mxu1 %v10259_v31  ;;  %s7240_s26 = smov 64   ;;  %s7241_s27 = smov 32   ;;  %vm5046_vm3 = vcmask 15360  }
  0x4e   :  { %6081 = vmatprep.subr.bf16.mxu0 %v6080_v3  ;;  %v6086_v12 = vpack.c.bf16 %v345_v10, %v343_v8  ;;  %v6088_v27 = vpack.c.bf16 %v350_v26, %v348_v25  ;;  %v347_v28 = vld [vmem:[%s10245_s4 + $0x20] sm:$0xff]  ;;  %v349_v29 = vld [vmem:[%s10245_s4 + $0x30] sm:$0xff] }
  0x4f   :  { %6083 = vmatpush3.bf16.msra.mxu0 %v6080_v3  ;;  %6085 = vmatprep.subr.bf16.mxu1 %v6084_v9  ;;  %v6090_v30 = vpack.c.bf16 %v349_v29, %v347_v28  ;;  %v7483_v32 = vld [vmem:[%s10244_s3] ss:$0 sm:$0xff] }
  0x50   :  { %6087 = vmatpush1.bf16.msra.mxu1 %v6086_v12 }
  0x51   :  { %v108_v2 = vld [vmem:[%s10331_s2] sm:$0xff]  ;;  %v109_v4 = vld [vmem:[%s10331_s2 + $0x8] sm:$0xff]  ;;  %v110_v5 = vld [vmem:[%s10331_s2 + $0x10] sm:$0xff]  ;;  %6089 = vmatprep.subr.bf16.mxu1 %v6088_v27 }
  0x52   :  { %5512 = vmatprep.mubr.msk.f32.mxu0 %vm133_vm0, %v108_v2  ;;  %v111_v11 = vld [vmem:[%s10331_s2 + $0x18] sm:$0xff]  ;;  %v112_v13 = vld [vmem:[%s10331_s2 + $0x20] sm:$0xff]  ;;  %v113_v14 = vld [vmem:[%s10331_s2 + $0x28] sm:$0xff] }
  0x53   :  { %5513 = vmatmul.mubr.msk.f32.vlgmr.msra.gmra.mrb[0].mxu0 %vm133_vm0, %v109_v4  ;;  %v114_v15 = vld [vmem:[%s10331_s2 + $0x30] sm:$0xff]  ;;  %v115_v16 = vld [vmem:[%s10331_s2 + $0x38] sm:$0xff]  ;;  %v116_v17 = vld [vmem:[%s10331_s2 + $0x40] sm:$0xff] }
  0x54   :  { %5515 = vmatprep.mubr.msk.f32.mxu0 %vm133_vm0, %v110_v5  ;;  %v117_v18 = vld [vmem:[%s10331_s2 + $0x48] sm:$0xff]  ;;  %v118_v19 = vld [vmem:[%s10331_s2 + $0x50] sm:$0xff]  ;;  %v119_v20 = vld [vmem:[%s10331_s2 + $0x58] sm:$0xff]  ;;  %6091 = vmatpush1.bf16.msra.mxu1 %v6090_v30 }
  0x55   :  { %v120_v21 = vld [vmem:[%s10331_s2 + $0x60] sm:$0xff]  ;;  %v121_v22 = vld [vmem:[%s10331_s2 + $0x68] sm:$0xff]  ;;  %v122_v23 = vld [vmem:[%s10331_s2 + $0x70] sm:$0xff] }
  0x56   :  { %v123_v24 = vld [vmem:[%s10331_s2 + $0x78] sm:$0xff] }
  0x57   :  { %5516 = vmatmul.mubr.msk.f32.gmra.mrb[2].mxu0 %vm133_vm0, %v111_v11 }
  0x58   :  { %5518 = vmatprep.mubr.msk.f32.mxu0 %vm133_vm0, %v112_v13 }
  0x5b   :  { %5519 = vmatmul.mubr.msk.f32.gmra.mrb[4].mxu0 %vm133_vm0, %v113_v14 }
  0x5c   :  { %5521 = vmatprep.mubr.msk.f32.mxu0 %vm133_vm0, %v114_v15 }
  0x5f   :  { %5522 = vmatmul.mubr.msk.f32.gmra.mrb[6].mxu0 %vm133_vm0, %v115_v16 }
  0x60   :  { %5524 = vmatprep.mubr.msk.f32.mxu0 %vm133_vm0, %v116_v17  ;;  %v7536_v17 = vld [vmem:[%s10246_s5] ss:$0 sm:$0xff]  ;;  %s7236_s5 = smov 96  }
  0x63   :  { %5525 = vmatmul.mubr.msk.f32.gmra.mrb[8].mxu0 %vm133_vm0, %v117_v18 }
  0x64   :  { %5527 = vmatprep.mubr.msk.f32.mxu0 %vm133_vm0, %v118_v19 }
  0x67   :  { %5528 = vmatmul.mubr.msk.f32.gmra.mrb[10].mxu0 %vm133_vm0, %v119_v20 }
  0x68   :  { %5530 = vmatprep.mubr.msk.f32.mxu0 %vm133_vm0, %v120_v21 }
  0x6b   :  { %5531 = vmatmul.mubr.msk.f32.gmra.mrb[12].mxu0 %vm133_vm0, %v121_v22 }
  0x6c   :  { %5533 = vmatprep.mubr.msk.f32.mxu0 %vm133_vm0, %v122_v23 }
  0x6f   :  { %5534 = vmatmul.mubr.msk.f32.gmra.mrb[14].mxu0 %vm133_vm0, %v123_v24 }
 0x126   :  { %v5514_v33 = vpop.f32.mrb[0].mxu0 }
 0x127   :  { %v248_v34 = vpop.f32.mrb[1].mxu0  ;;  %v254_v36 = vadd.f32 %v5514_v33, %v7483_v32 }
 0x128   :  { %v249_v35 = vadd.f32 %v7483_v32, %v248_v34 }
 0x129   :  { %v328_v41 = vmax.f32 %v254_v36, 0.0 }
 0x12a   :  { %v327_v37 = vmax.f32 %v249_v35, 0.0  ;;  %v5517_v38 = vpop.f32.mrb[2].mxu0 }
 0x12b   :  { %v258_v39 = vpop.f32.mrb[3].mxu0  ;;  %v264_v44 = vadd.f32 %v5517_v38, %v7483_v32  ;;  %v10261_v38 = vmov 0  }
 0x12c   :  { %5087 = vmatmul.mubr.msk.f32.vlgmr.msra.gmra.mrb[0].mxu1 %vm351_vm1, %v327_v37  ;;  %v259_v40 = vadd.f32 %v7483_v32, %v258_v39  ;;  %6507 = vset.pattern.permute.xlu0 %v10261_v38 }
 0x12d   :  { %470 = vmatprep.mubr.f32.mxu1 %v10259_v31  ;;  %v330_v48 = vmax.f32 %v264_v44, 0.0 }
 0x12e   :  { %v5520_v42 = vpop.f32.mrb[4].mxu0  ;;  %v329_v45 = vmax.f32 %v259_v40, 0.0 }
 0x12f   :  { %v268_v43 = vpop.f32.mrb[5].mxu0  ;;  %v274_v52 = vadd.f32 %v5520_v42, %v7483_v32 }
 0x130   :  { %5088 = vmatmul.mubr.msk.f32.gmra.mrb[2].mxu1 %vm351_vm1, %v328_v41  ;;  %v269_v49 = vadd.f32 %v7483_v32, %v268_v43 }
 0x131   :  { %476 = vmatprep.mubr.f32.mxu1 %v10259_v31  ;;  %v332_v56 = vmax.f32 %v274_v52, 0.0 }
 0x132   :  { %v5523_v46 = vpop.f32.mrb[6].mxu0  ;;  %v331_v53 = vmax.f32 %v269_v49, 0.0 }
 0x133   :  { %v278_v47 = vpop.f32.mrb[7].mxu0  ;;  %v284_v60 = vadd.f32 %v5523_v46, %v7483_v32 }
 0x134   :  { %5089 = vmatmul.mubr.msk.f32.gmra.mrb[4].mxu1 %vm351_vm1, %v329_v45  ;;  %v279_v57 = vadd.f32 %v7483_v32, %v278_v47 }
 0x135   :  { %482 = vmatprep.mubr.f32.mxu1 %v10259_v31  ;;  %v334_v0 = vmax.f32 %v284_v60, 0.0 }
 0x136   :  { %v5526_v50 = vpop.f32.mrb[8].mxu0  ;;  %v333_v61 = vmax.f32 %v279_v57, 0.0 }
 0x137   :  { %v288_v51 = vpop.f32.mrb[9].mxu0  ;;  %v294_v2 = vadd.f32 %v5526_v50, %v7483_v32 }
 0x138   :  { %5090 = vmatmul.mubr.msk.f32.gmra.mrb[6].mxu1 %vm351_vm1, %v330_v48  ;;  %v289_v1 = vadd.f32 %v7483_v32, %v288_v51 }
 0x139   :  { %488 = vmatprep.mubr.f32.mxu1 %v10259_v31  ;;  %v336_v4 = vmax.f32 %v294_v2, 0.0 }
 0x13a   :  { %v5529_v54 = vpop.f32.mrb[10].mxu0  ;;  %v335_v3 = vmax.f32 %v289_v1, 0.0 }
 0x13b   :  { %v298_v55 = vpop.f32.mrb[11].mxu0  ;;  %v304_v6 = vadd.f32 %v5529_v54, %v7483_v32 }
 0x13c   :  { %5091 = vmatmul.mubr.msk.f32.gmra.mrb[8].mxu1 %vm351_vm1, %v331_v53  ;;  %v299_v5 = vadd.f32 %v7483_v32, %v298_v55  ;;  %v10265_v55 = vmov 1  }
 0x13d   :  { %494 = vmatprep.mubr.f32.mxu1 %v10259_v31  ;;  %v338_v8 = vmax.f32 %v304_v6, 0.0  ;;  %6508 = vset.pattern.permute.xlu1 %v10265_v55 }
 0x13e   :  { %v5532_v58 = vpop.f32.mrb[12].mxu0  ;;  %v337_v7 = vmax.f32 %v299_v5, 0.0 }
 0x13f   :  { %v308_v59 = vpop.f32.mrb[13].mxu0  ;;  %v314_v10 = vadd.f32 %v5532_v58, %v7483_v32 }
 0x140   :  { %5092 = vmatmul.mubr.msk.f32.gmra.mrb[10].mxu1 %vm351_vm1, %v332_v56  ;;  %v309_v9 = vadd.f32 %v7483_v32, %v308_v59 }
 0x141   :  { %500 = vmatprep.mubr.f32.mxu1 %v10259_v31  ;;  %v340_v12 = vmax.f32 %v314_v10, 0.0 }
 0x142   :  { %v5535_v62 = vpop.f32.mrb[14].mxu0  ;;  %v339_v11 = vmax.f32 %v309_v9, 0.0 }
 0x143   :  { %v318_v63 = vpop.f32.mrb[15].mxu0  ;;  %v324_v14 = vadd.f32 %v5535_v62, %v7483_v32 }
 0x144   :  { %5093 = vmatmul.mubr.msk.f32.gmra.mrb[12].mxu1 %vm351_vm1, %v333_v61  ;;  %v319_v13 = vadd.f32 %v7483_v32, %v318_v63 }
 0x145   :  { %506 = vmatprep.mubr.f32.mxu1 %v10259_v31  ;;  %v342_v16 = vmax.f32 %v324_v14, 0.0 }
 0x146   :  { %v341_v15 = vmax.f32 %v319_v13, 0.0 }
 0x148   :  { %5094 = vmatmul.mubr.msk.f32.gmra.mrb[14].mxu1 %vm351_vm1, %v334_v0 }
 0x149   :  { %512 = vmatprep.mubr.f32.mxu1 %v10259_v31 }
 0x14c   :  { %5095 = vmatmul.mubr.msk.f32.gmra.mrb[16].mxu1 %vm351_vm1, %v335_v3 }
 0x14d   :  { %518 = vmatprep.mubr.f32.mxu1 %v10259_v31 }
 0x150   :  { %5096 = vmatmul.mubr.msk.f32.gmra.mrb[18].mxu1 %vm351_vm1, %v336_v4 }
 0x151   :  { %524 = vmatprep.mubr.f32.mxu1 %v10259_v31 }
 0x154   :  { %5097 = vmatmul.mubr.msk.f32.gmra.mrb[20].mxu1 %vm351_vm1, %v337_v7 }
 0x155   :  { %530 = vmatprep.mubr.f32.mxu1 %v10259_v31 }
 0x158   :  { %5098 = vmatmul.mubr.msk.f32.gmra.mrb[22].mxu1 %vm351_vm1, %v338_v8 }
 0x159   :  { %536 = vmatprep.mubr.f32.mxu1 %v10259_v31 }
 0x15c   :  { %5099 = vmatmul.mubr.msk.f32.gmra.mrb[24].mxu1 %vm351_vm1, %v339_v11 }
 0x15d   :  { %542 = vmatprep.mubr.f32.mxu1 %v10259_v31 }
 0x160   :  { %5100 = vmatmul.mubr.msk.f32.gmra.mrb[26].mxu1 %vm351_vm1, %v340_v12 }
 0x161   :  { %548 = vmatprep.mubr.f32.mxu1 %v10259_v31 }
 0x164   :  { %5101 = vmatmul.mubr.msk.f32.gmra.mrb[28].mxu1 %vm351_vm1, %v341_v15 }
 0x165   :  { %554 = vmatprep.mubr.f32.mxu1 %v10259_v31 }
 0x168   :  { %5102 = vmatmul.mubr.msk.f32.gmra.mrb[30].mxu1 %vm351_vm1, %v342_v16 }
 0x169   :  { %2495 = vmatprep.mubr.f32.mxu1 %v10259_v31 }
 0x1ff   :  { %v466_v18 = vpop.f32.mrb[0].mxu1 }
 0x200   :  { %v7538_v19 = vpop.f32.mrb[1].mxu1 }
 0x201   :  { %v649_v20 = vsel %vm584_vm2, %v7538_v19, inf  ;;  %v7544_v21 = vadd.f32 %v7536_v17, %v7538_v19 }
 0x202   :  { %650 = vmin.xlane.f32.xlu1 %v649_v20 }
 0x203   :  { %v472_v22 = vpop.f32.mrb[2].mxu1  ;;  %v585_v23 = vsel %vm584_vm2, %v7544_v21, -inf }
 0x204   :  { %v7548_v24 = vpack.i.bf16 %v472_v22, %v466_v18  ;;  %586 = vmax.xlane.f32.xlu0 %v585_v23  ;;  %v7550_v25 = vpop.f32.mrb[3].mxu1  ;;  %v7552_v26 = vpack.c.bf16 %v472_v22, %v466_v18 }
 0x205   :  { %v652_v27 = vsel %vm584_vm2, %v7550_v25, inf  ;;  %v7640_v8 = vadd.f32 %v7536_v17, %v7550_v25 }
 0x206   :  { %653 = vmin.xlane.f32.xlu1 %v652_v27 }
 0x207   :  { %v478_v28 = vpop.f32.mrb[4].mxu1  ;;  %v588_v13 = vsel %vm584_vm2, %v7640_v8, -inf }
 0x208   :  { %v7556_v29 = vpop.f32.mrb[5].mxu1 }
 0x209   :  { %v655_v20 = vsel %vm584_vm2, %v7556_v29, inf  ;;  %v7668_v23 = vadd.f32 %v7536_v17, %v7556_v29 }
 0x20b   :  { %v484_v30 = vpop.f32.mrb[6].mxu1 }
 0x20c   :  { %v7558_v32 = vpack.i.bf16 %v484_v30, %v478_v28  ;;  %v7560_v33 = vpop.f32.mrb[7].mxu1  ;;  %v7562_v34 = vpack.c.bf16 %v484_v30, %v478_v28 }
 0x20d   :  { %v658_v16 = vsel %vm584_vm2, %v7560_v33, inf  ;;  %v7662_v18 = vadd.f32 %v7536_v17, %v7560_v33 }
 0x20e   :  { %10332 = vst [vmem:[#allocation13_spill] sm:$0xff] %v7562_v34 }
 0x20f   :  { %v490_v35 = vpop.f32.mrb[8].mxu1 }
 0x210   :  { %v7564_v36 = vpop.f32.mrb[9].mxu1 }
 0x211   :  { %v7568_v37 = vadd.f32 %v7536_v17, %v7564_v36 }
 0x213   :  { %v496_v39 = vpop.f32.mrb[10].mxu1 }
 0x214   :  { %v7571_v40 = vpack.i.bf16 %v496_v39, %v490_v35  ;;  %v7573_v41 = vpop.f32.mrb[11].mxu1  ;;  %v7575_v42 = vpack.c.bf16 %v496_v39, %v490_v35  ;;  %v594_v35 = vsel %vm584_vm2, %v7662_v18, -inf  ;;  %v591_v39 = vsel %vm584_vm2, %v7668_v23, -inf }
 0x215   :  { %v7579_v43 = vadd.f32 %v7536_v17, %v7573_v41 }
 0x216   :  { %10333 = vst [vmem:[#allocation14_spill] sm:$0xff] %v7575_v42 }
 0x217   :  { %6498 = vrot.lane.b32.xlu1 %v7558_v32, %s7236_s5  ;;  %v502_v44 = vpop.f32.mrb[12].mxu1 }
 0x218   :  { %v7583_v45 = vpop.f32.mrb[13].mxu1 }
 0x219   :  { %v7587_v46 = vadd.f32 %v7536_v17, %v7583_v45 }
 0x21a   :  { %6493 = vrot.lane.b32.xlu0 %v7548_v24, %s7236_s5 }
 0x21b   :  { %v508_v47 = vpop.f32.mrb[14].mxu1 }
 0x21c   :  { %v7591_v48 = vpack.i.bf16 %v508_v47, %v502_v44  ;;  %v7593_v49 = vpop.f32.mrb[15].mxu1  ;;  %v7595_v50 = vpack.c.bf16 %v508_v47, %v502_v44  ;;  %v661_v44 = vsel %vm584_vm2, %v7564_v36, inf }
 0x21d   :  { %v7599_v51 = vadd.f32 %v7536_v17, %v7593_v49 }
 0x21e   :  { %10334 = vst [vmem:[#allocation15_spill] sm:$0xff] %v7595_v50 }
 0x21f   :  { %v514_v52 = vpop.f32.mrb[16].mxu1 }
 0x220   :  { %v7601_v53 = vpop.f32.mrb[17].mxu1 }
 0x221   :  { %v7605_v54 = vadd.f32 %v7536_v17, %v7601_v53 }
 0x223   :  { %v520_v56 = vpop.f32.mrb[18].mxu1 }
 0x224   :  { %v7608_v57 = vpack.i.bf16 %v520_v56, %v514_v52  ;;  %v7610_v58 = vpop.f32.mrb[19].mxu1  ;;  %v7632_v5 = vpack.c.bf16 %v520_v56, %v514_v52  ;;  %v597_v52 = vsel %vm584_vm2, %v7568_v37, -inf  ;;  %v603_v56 = vsel %vm584_vm2, %v7587_v46, -inf }
 0x225   :  { %v7614_v59 = vadd.f32 %v7536_v17, %v7610_v58 }
 0x226   :  { %10335 = vst [vmem:[#allocation16_spill] sm:$0xff] %v7632_v5 }
 0x227   :  { %v526_v60 = vpop.f32.mrb[20].mxu1 }
 0x228   :  { %v7616_v61 = vpop.f32.mrb[21].mxu1 }
 0x229   :  { %v7620_v62 = vadd.f32 %v7536_v17, %v7616_v61 }
 0x22b   :  { %v532_v63 = vpop.f32.mrb[22].mxu1 }
 0x22c   :  { %v7622_v0 = vpack.i.bf16 %v532_v63, %v526_v60  ;;  %v7624_v1 = vpop.f32.mrb[23].mxu1  ;;  %v7684_v47 = vpack.c.bf16 %v532_v63, %v526_v60  ;;  %v673_v60 = vsel %vm584_vm2, %v7601_v53, inf }
 0x22d   :  { %v7628_v2 = vadd.f32 %v7536_v17, %v7624_v1 }
 0x22e   :  { %10336 = vst [vmem:[#allocation17_spill] sm:$0xff] %v7684_v47  ;;  %v10340_v47 = vmov 2  }
 0x22f   :  { %v538_v3 = vpop.f32.mrb[24].mxu1 }
 0x230   :  { %v7630_v4 = vpop.f32.mrb[25].mxu1 }
 0x231   :  { %v7636_v6 = vadd.f32 %v7536_v17, %v7630_v4 }
 0x233   :  { %v544_v7 = vpop.f32.mrb[26].mxu1 }
 0x234   :  { %v7642_v9 = vpack.i.bf16 %v544_v7, %v538_v3  ;;  %v7644_v10 = vpop.f32.mrb[27].mxu1  ;;  %v7696_v63 = vpack.c.bf16 %v544_v7, %v538_v3  ;;  %v621_v3 = vsel %vm584_vm2, %v7636_v6, -inf }
 0x235   :  { %v7648_v11 = vadd.f32 %v7536_v17, %v7644_v10 }
 0x236   :  { %10337 = vst [vmem:[#allocation18_spill] sm:$0xff] %v7696_v63 }
 0x237   :  { %v550_v12 = vpop.f32.mrb[28].mxu1 }
 0x238   :  { %v7652_v14 = vpop.f32.mrb[29].mxu1 }
 0x239   :  { %589 = vmax.xlane.f32.xlu0 %v588_v13  ;;  %v7656_v15 = vadd.f32 %v7536_v17, %v7652_v14  ;;  %v609_v13 = vsel %vm584_vm2, %v7605_v54, -inf }
 0x23b   :  { %659 = vmin.xlane.f32.xlu1 %v658_v16  ;;  %v556_v22 = vpop.f32.mrb[30].mxu1  ;;  %v679_v16 = vsel %vm584_vm2, %v7616_v61, inf }
 0x23c   :  { %v7670_v27 = vpack.i.bf16 %v556_v22, %v550_v12  ;;  %v7672_v28 = vpop.f32.mrb[31].mxu1  ;;  %v7708_v7 = vpack.c.bf16 %v556_v22, %v550_v12  ;;  %v670_v12 = vsel %vm584_vm2, %v7593_v49, inf  ;;  %v606_v22 = vsel %vm584_vm2, %v7599_v51, -inf }
 0x23d   :  { %656 = vmin.xlane.f32.xlu0 %v655_v20  ;;  %v7676_v30 = vadd.f32 %v7536_v17, %v7672_v28  ;;  %v667_v17 = vsel %vm584_vm2, %v7583_v45, inf  ;;  %v615_v20 = vsel %vm584_vm2, %v7620_v62, -inf }
 0x23e   :  { %10338 = vst [vmem:[#allocation19_spill] sm:$0xff] %v7708_v7  ;;  %v10339_v7 = vmov 1  }
 0x23f   :  { %595 = vmax.xlane.f32.xlu1 %v594_v35  ;;  %v685_v35 = vsel %vm584_vm2, %v7630_v4, inf }
 0x241   :  { %592 = vmax.xlane.f32.xlu0 %v591_v39  ;;  %v691_v39 = vsel %vm584_vm2, %v7652_v14, inf }
 0x245   :  { %662 = vmin.xlane.f32.xlu0 %v661_v44  ;;  %v627_v44 = vsel %vm584_vm2, %v7656_v15, -inf }
 0x249   :  { %598 = vmax.xlane.f32.xlu0 %v597_v52  ;;  %v664_v52 = vsel %vm584_vm2, %v7573_v41, inf }
 0x24d   :  { %668 = vmin.xlane.f32.xlu0 %v667_v17  ;;  %v600_v17 = vsel %vm584_vm2, %v7579_v43, -inf }
 0x250   :  { %6503 = vrot.lane.b32.xlu1 %v7571_v40, %s7236_s5 }
 0x251   :  { %604 = vmax.xlane.f32.xlu0 %v603_v56  ;;  %v676_v56 = vsel %vm584_vm2, %v7610_v58, inf }
 0x255   :  { %674 = vmin.xlane.f32.xlu0 %v673_v60  ;;  %v612_v60 = vsel %vm584_vm2, %v7614_v59, -inf }
 0x259   :  { %610 = vmax.xlane.f32.xlu0 %v609_v13  ;;  %v682_v13 = vsel %vm584_vm2, %v7624_v1, inf }
 0x25d   :  { %680 = vmin.xlane.f32.xlu0 %v679_v16  ;;  %v618_v16 = vsel %vm584_vm2, %v7628_v2, -inf }
 0x261   :  { %616 = vmax.xlane.f32.xlu0 %v615_v20 }
 0x265   :  { %686 = vmin.xlane.f32.xlu0 %v685_v35 }
 0x269   :  { %622 = vmax.xlane.f32.xlu0 %v621_v3 }
 0x26d   :  { %692 = vmin.xlane.f32.xlu0 %v691_v39  ;;  %v688_v39 = vsel %vm584_vm2, %v7644_v10, inf }
 0x271   :  { %628 = vmax.xlane.f32.xlu0 %v627_v44 }
 0x274   :  { %665 = vmin.xlane.f32.xlu1 %v664_v52 }
 0x278   :  { %601 = vmax.xlane.f32.xlu1 %v600_v17  ;;  %v624_v17 = vsel %vm584_vm2, %v7648_v11, -inf }
 0x27c   :  { %671 = vmin.xlane.f32.xlu1 %v670_v12 }
 0x280   :  { %607 = vmax.xlane.f32.xlu1 %v606_v22 }
 0x284   :  { %677 = vmin.xlane.f32.xlu1 %v676_v56 }
 0x288   :  { %613 = vmax.xlane.f32.xlu1 %v612_v60 }
 0x28c   :  { %683 = vmin.xlane.f32.xlu1 %v682_v13 }
 0x28f   :  { %v651_v20 = vpop.xlane.xlu1 %650 }
 0x290   :  { %v697_v35 = vsub.f32 %v7538_v19, %v651_v20  ;;  %619 = vmax.xlane.f32.xlu1 %v618_v16  ;;  %v694_v16 = vsel %vm584_vm2, %v7672_v28, inf }
 0x291   :  { %v7731_v3 = vpop.xlane.xlu0 %586 }
 0x292   :  { %751 = vperm.xlu0 %6507, %v697_v35  }
 0x293   :  { %v654_v44 = vpop.xlane.xlu1 %653 }
 0x294   :  { %689 = vmin.xlane.f32.xlu1 %v688_v39  ;;  %v630_v39 = vsel %vm584_vm2, %v7676_v30, -inf }
 0x295   :  { %v6494_v52 = vpop.permute.xlu0 %6493 }
 0x296   :  { %v6496_v12 = vunpack.i.h.bf16 %v6494_v52  ;;  %v6495_v22 = vunpack.i.l.bf16 %v6494_v52  ;;  %v10269_v52 = vmov 2  }
 0x297   :  { %v6499_v56 = vpop.permute.xlu1 %6498 }
 0x298   :  { %v6501_v60 = vunpack.i.h.bf16 %v6499_v56  ;;  %v6500_v13 = vunpack.i.l.bf16 %v6499_v56  ;;  %625 = vmax.xlane.f32.xlu1 %v624_v17  ;;  %v6092_v19 = vpack.c.bf16 %v6496_v12, %v6495_v22  ;;  %v10263_v17 = vmov 3  }
 0x299   :  { %v7744_v12 = vsub.f32 %v7550_v25, %v654_v44 }
 0x29a   :  { %6093 = vmatprep.subr.bf16.mxu0 %v6092_v19  ;;  %v6096_v20 = vpack.c.bf16 %v6501_v60, %v6500_v13 }
 0x29b   :  { %6095 = vmatpush3.bf16.msra.mxu0 %v6092_v19 }
 0x29c   :  { %6097 = vmatprep.subr.bf16.mxu0 %v6096_v20  ;;  %695 = vmin.xlane.f32.xlu1 %v694_v16 }
 0x29f   :  { %6099 = vmatpush3.bf16.msra.mxu0 %v6096_v20 }
 0x2a0   :  { %631 = vmax.xlane.f32.xlu1 %v630_v39 }
 0x2b1   :  { %898 = vperm.xlu1 %6508, %v697_v35  }
 0x2b5   :  { %6509 = vset.pattern.permute.xlu1 %v10269_v52 }
 0x2b6   :  { %1047 = vperm.xlu1 %6509, %v697_v35  }
 0x2ba   :  { %6510 = vset.pattern.permute.xlu1 %v10263_v17 }
 0x2bb   :  { %1196 = vperm.xlu1 %6510, %v697_v35  }
 0x2bf   :  { %6511 = vset.pattern.permute.xlu1 %v10261_v38 }
 0x2c0   :  { %756 = vperm.xlu1 %6511, %v7744_v12  }
 0x2c4   :  { %6512 = vset.pattern.permute.xlu1 %v10265_v55 }
 0x2c5   :  { %902 = vperm.xlu1 %6512, %v7744_v12  }
 0x2c6   :  { %v7750_v22 = vpop.xlane.xlu0 %589 }
 0x2c8   :  { %v660_v56 = vpop.xlane.xlu1 %659 }
 0x2c9   :  { %v7753_v60 = vsub.f32 %v7560_v33, %v660_v56  ;;  %6513 = vset.pattern.permute.xlu1 %v10269_v52 }
 0x2ca   :  { %v657_v35 = vpop.xlane.xlu0 %656  ;;  %1051 = vperm.xlu1 %6513, %v7744_v12  }
 0x2cb   :  { %766 = vperm.xlu0 %6507, %v7753_v60   ;;  %v699_v44 = vsub.f32 %v7556_v29, %v657_v35 }
 0x2cc   :  { %v7758_v25 = vpop.xlane.xlu1 %595 }
 0x2ce   :  { %v7761_v13 = vpop.xlane.xlu0 %592  ;;  %6514 = vset.pattern.permute.xlu1 %v10261_v38 }
 0x2cf   :  { %761 = vperm.xlu1 %6514, %v699_v44  }
 0x2d0   :  { %v6504_v19 = vpop.permute.xlu1 %6503 }
 0x2d1   :  { %v6506_v16 = vunpack.i.h.bf16 %v6504_v19  ;;  %v6505_v33 = vunpack.i.l.bf16 %v6504_v19 }
 0x2d2   :  { %v663_v20 = vpop.xlane.xlu0 %662 }
 0x2d3   :  { %v701_v39 = vsub.f32 %v7564_v36, %v663_v20  ;;  %6515 = vset.pattern.permute.xlu1 %v10265_v55  ;;  %v6100_v56 = vpack.c.bf16 %v6506_v16, %v6505_v33 }
 0x2d4   :  { %906 = vperm.xlu1 %6515, %v699_v44  }
 0x2d5   :  { %6101 = vmatprep.subr.bf16.mxu0 %v6100_v56  ;;  %771 = vperm.xlu0 %6507, %v701_v39  }
 0x2d6   :  { %6103 = vmatpush3.bf16.msra.mxu0 %v6100_v56  ;;  %v7767_v29 = vpop.xlane.xlu0 %598 }
 0x2d8   :  { %6516 = vset.pattern.permute.xlu1 %v10269_v52 }
 0x2d9   :  { %1055 = vperm.xlu1 %6516, %v699_v44  }
 0x2da   :  { %v669_v35 = vpop.xlane.xlu0 %668 }
 0x2dd   :  { %6517 = vset.pattern.permute.xlu1 %v10263_v17 }
 0x2de   :  { %1204 = vperm.xlu1 %6517, %v699_v44   ;;  %v7772_v36 = vpop.xlane.xlu0 %604 }
 0x2e2   :  { %6518 = vset.pattern.permute.xlu1 %v10265_v55  ;;  %v675_v19 = vpop.xlane.xlu0 %674 }
 0x2e3   :  { %910 = vperm.xlu1 %6518, %v7753_v60   ;;  %v7805_v63 = vsub.f32 %v7601_v53, %v675_v19 }
 0x2e6   :  { %v7777_v16 = vpop.xlane.xlu0 %610 }
 0x2e7   :  { %6519 = vset.pattern.permute.xlu1 %v10269_v52 }
 0x2e8   :  { %1059 = vperm.xlu1 %6519, %v7753_v60  }
 0x2ea   :  { %v7781_v44 = vpop.xlane.xlu0 %680 }
 0x2ec   :  { %6520 = vset.pattern.permute.xlu1 %v10265_v55 }
 0x2ed   :  { %914 = vperm.xlu1 %6520, %v701_v39  }
 0x2ee   :  { %v7784_v33 = vpop.xlane.xlu0 %616 }
 0x2f1   :  { %6521 = vset.pattern.permute.xlu1 %v10269_v52 }
 0x2f2   :  { %1063 = vperm.xlu1 %6521, %v701_v39   ;;  %v7789_v31 = vpop.xlane.xlu0 %686 }
 0x2f6   :  { %6522 = vset.pattern.permute.xlu1 %v10263_v17  ;;  %v703_v17 = vsub.f32 %v7583_v45, %v669_v35 }
 0x2f7   :  { %1212 = vperm.xlu1 %6522, %v701_v39   ;;  %v7797_v39 = vpop.xlane.xlu0 %622 }
 0x2fb   :  { %6523 = vset.pattern.permute.xlu1 %v10265_v55  ;;  %v693_v45 = vpop.xlane.xlu0 %692 }
 0x301   :  { %v666_v20 = vpop.xlane.xlu1 %665 }
 0x302   :  { %v7787_v56 = vsub.f32 %v7573_v41, %v666_v20 }
 0x304   :  { %776 = vperm.xlu0 %6507, %v7787_v56   ;;  %918 = vperm.xlu1 %6523, %v7787_v56  }
 0x305   :  { %v7793_v38 = vpop.xlane.xlu1 %601 }
 0x308   :  { %781 = vperm.xlu0 %6507, %v703_v17   ;;  %6524 = vset.pattern.permute.xlu1 %v10269_v52  ;;  %v7809_v52 = vsub.f32 %v7652_v14, %v693_v45 }
 0x309   :  { %v672_v55 = vpop.xlane.xlu1 %671  ;;  %1067 = vperm.xlu1 %6524, %v7787_v56  }
 0x30a   :  { %v704_v41 = vsub.f32 %v7593_v49, %v672_v55  ;;  %v10341_v55 = vmov 3  }
 0x30c   :  { %786 = vperm.xlu0 %6507, %v704_v41  }
 0x30d   :  { %v7801_v20 = vpop.xlane.xlu1 %607  ;;  %6525 = vset.pattern.permute.xlu1 %v10339_v7 }
 0x30e   :  { %922 = vperm.xlu1 %6525, %v703_v17  }
 0x310   :  { %791 = vperm.xlu0 %6507, %v7805_v63  }
 0x311   :  { %v678_v35 = vpop.xlane.xlu1 %677 }
 0x312   :  { %6526 = vset.pattern.permute.xlu1 %v10340_v47 }
 0x313   :  { %1071 = vperm.xlu1 %6526, %v703_v17  }
 0x314   :  { %821 = vperm.xlu0 %6507, %v7809_v52  }
 0x315   :  { %v7813_v49 = vpop.xlane.xlu1 %613 }
 0x317   :  { %6527 = vset.pattern.permute.xlu1 %v10341_v55 }
 0x318   :  { %6545 = vrot.lane.b32.xlu0 %v7591_v48, %s7236_s5  ;;  %1220 = vperm.xlu1 %6527, %v703_v17   ;;  %v706_v17 = vsub.f32 %v7610_v58, %v678_v35  ;;  %v707_v35 = vsub.f32 %v7616_v61, %v7781_v44 }
 0x319   :  { %v684_v53 = vpop.xlane.xlu1 %683 }
 0x31c   :  { %6528 = vset.pattern.permute.xlu1 %v10339_v7 }
 0x31d   :  { %v7819_v19 = vpop.xlane.xlu1 %619  ;;  %926 = vperm.xlu1 %6528, %v704_v41  }
 0x321   :  { %v690_v14 = vpop.xlane.xlu1 %689  ;;  %6529 = vset.pattern.permute.xlu1 %v10340_v47 }
 0x322   :  { %1075 = vperm.xlu1 %6529, %v704_v41  }
 0x325   :  { %v7822_v45 = vpop.xlane.xlu1 %625 }
 0x326   :  { %6530 = vset.pattern.permute.xlu1 %v10341_v55 }
 0x327   :  { %1224 = vperm.xlu1 %6530, %v704_v41   ;;  %v708_v41 = vsub.f32 %v7624_v1, %v684_v53  ;;  %v709_v53 = vsub.f32 %v7630_v4, %v7789_v31 }
 0x329   :  { %v696_v5 = vpop.xlane.xlu1 %695 }
 0x32a   :  { %v7826_v50 = vsub.f32 %v7672_v28, %v696_v5  ;;  %v10342_v5 = vmov 0   ;;  %v710_v28 = vsub.f32 %v7644_v10, %v690_v14 }
 0x32b   :  { %6531 = vset.pattern.permute.xlu1 %v10339_v7 }
 0x32c   :  { %826 = vperm.xlu0 %6507, %v7826_v50   ;;  %930 = vperm.xlu1 %6531, %v7805_v63  }
 0x32d   :  { %v7838_v42 = vpop.xlane.xlu1 %631 }
 0x330   :  { %6549 = vset.pattern.permute.xlu0 %v10339_v7  ;;  %6532 = vset.pattern.permute.xlu1 %v10340_v47 }
 0x331   :  { %934 = vperm.xlu0 %6549, %v706_v17   ;;  %1079 = vperm.xlu1 %6532, %v7805_v63   ;;  %v7841_v58 = vpop.permute.xlu1 %898 }
 0x335   :  { %942 = vperm.xlu0 %6549, %v708_v41   ;;  %6533 = vset.pattern.permute.xlu1 %v10342_v5  ;;  %v7848_v1 = vpop.permute.xlu1 %1047 }
 0x336   :  { %796 = vperm.xlu1 %6533, %v706_v17  }
 0x339   :  { %950 = vperm.xlu0 %6549, %v710_v28  }
 0x33a   :  { %6534 = vset.pattern.permute.xlu1 %v10341_v55  ;;  %v7852_v10 = vpop.permute.xlu1 %1196 }
 0x33b   :  { %1232 = vperm.xlu1 %6534, %v706_v17  }
 0x33d   :  { %954 = vperm.xlu0 %6549, %v7809_v52  }
 0x33f   :  { %6535 = vset.pattern.permute.xlu1 %v10342_v5  ;;  %v7856_v61 = vpop.permute.xlu1 %756 }
 0x340   :  { %801 = vperm.xlu1 %6535, %v707_v35  }
 0x341   :  { %958 = vperm.xlu0 %6549, %v7826_v50  }
 0x344   :  { %6536 = vset.pattern.permute.xlu1 %v10339_v7  ;;  %v7860_v44 = vpop.permute.xlu1 %902 }
 0x345   :  { %6550 = vset.pattern.permute.xlu0 %v10340_v47  ;;  %938 = vperm.xlu1 %6536, %v707_v35  }
 0x346   :  { %1083 = vperm.xlu0 %6550, %v706_v17  }
 0x349   :  { %6537 = vset.pattern.permute.xlu1 %v10340_v47  ;;  %v7867_v14 = vpop.permute.xlu1 %1051 }
 0x34a   :  { %1091 = vperm.xlu0 %6550, %v708_v41   ;;  %1087 = vperm.xlu1 %6537, %v707_v35  }
 0x34e   :  { %1099 = vperm.xlu0 %6550, %v710_v28   ;;  %6538 = vset.pattern.permute.xlu1 %v10342_v5  ;;  %v7872_v17 = vpop.permute.xlu1 %761 }
 0x34f   :  { %806 = vperm.xlu1 %6538, %v708_v41  }
 0x352   :  { %1103 = vperm.xlu0 %6550, %v7809_v52  }
 0x353   :  { %6539 = vset.pattern.permute.xlu1 %v10341_v55  ;;  %v7876_v31 = vpop.permute.xlu1 %906 }
 0x354   :  { %1240 = vperm.xlu1 %6539, %v708_v41  }
 0x356   :  { %1107 = vperm.xlu0 %6550, %v7826_v50  }
 0x358   :  { %6540 = vset.pattern.permute.xlu1 %v10342_v5  ;;  %v7880_v4 = vpop.permute.xlu1 %1055 }
 0x359   :  { %811 = vperm.xlu1 %6540, %v709_v53  }
 0x35a   :  { %6551 = vset.pattern.permute.xlu0 %v10341_v55 }
 0x35b   :  { %1200 = vperm.xlu0 %6551, %v7744_v12   ;;  %v7882_v12 = vpop.xlane.xlu0 %628 }
 0x35d   :  { %6541 = vset.pattern.permute.xlu1 %v10339_v7 }
 0x35e   :  { %946 = vperm.xlu1 %6541, %v709_v53  }
 0x35f   :  { %1208 = vperm.xlu0 %6551, %v7753_v60   ;;  %v7884_v60 = vpop.permute.xlu1 %1204  ;;  %v7886_v41 = vpop.permute.xlu0 %751 }
 0x362   :  { %6542 = vset.pattern.permute.xlu1 %v10340_v47 }
 0x363   :  { %1216 = vperm.xlu0 %6551, %v7787_v56   ;;  %1095 = vperm.xlu1 %6542, %v709_v53   ;;  %v7889_v56 = vpop.permute.xlu1 %910  ;;  %v7891_v55 = vpop.permute.xlu0 %766 }
 0x367   :  { %1228 = vperm.xlu0 %6551, %v7805_v63   ;;  %6543 = vset.pattern.permute.xlu1 %v10342_v5  ;;  %v7895_v63 = vpop.permute.xlu0 %771 }
 0x368   :  { %816 = vperm.xlu1 %6543, %v710_v28  }
 0x36b   :  { %1236 = vperm.xlu0 %6551, %v707_v35   ;;  %v7897_v35 = vpop.permute.xlu1 %1059 }
 0x36f   :  { %1244 = vperm.xlu0 %6551, %v709_v53  }
 0x373   :  { %1248 = vperm.xlu0 %6551, %v710_v28  }
 0x377   :  { %1252 = vperm.xlu0 %6551, %v7809_v52   ;;  %v7905_v52 = vpop.permute.xlu1 %914 }
 0x37b   :  { %6553 = vrot.lane.b32.xlu0 %v7608_v57, %s7236_s5  ;;  %v7911_v47 = vpop.permute.xlu1 %1063 }
 0x37c   :  { %10345 = vst [vmem:[#allocation22_spill] sm:$0xff] %v7911_v47 }
 0x37f   :  { %1256 = vperm.xlu0 %6551, %v7826_v50   ;;  %v633_v50 = vsub.f32 %v7544_v21, %v7731_v3  ;;  %v635_v21 = vsub.f32 %v7668_v23, %v7761_v13  ;;  %v637_v23 = vsub.f32 %v7568_v37, %v7767_v29  ;;  %v640_v37 = vsub.f32 %v7599_v51, %v7801_v20 }
 0x380   :  { %v642_v51 = vsub.f32 %v7614_v59, %v7813_v49  ;;  %v644_v59 = vsub.f32 %v7628_v2, %v7819_v19  ;;  %v646_v49 = vsub.f32 %v7648_v11, %v7822_v45 }
 0x383   :  { %v7900_v53 = vpop.permute.xlu0 %776  ;;  %6558 = vrot.lane.b32.xlu0 %v7622_v0, %s7236_s5 }
 0x384   :  { %10343 = vst [vmem:[#allocation20_spill] sm:$0xff] %v7900_v53  ;;  %6667 = vset.pattern.permute.xlu0 %v10342_v5  ;;  %v7923_v5 = vpop.permute.xlu1 %1212 }
 0x385   :  { %10348 = vst [vmem:[#allocation25_spill] sm:$0xff] %v7923_v5 }
 0x387   :  { %v7907_v28 = vpop.permute.xlu0 %781  ;;  %6563 = vrot.lane.b32.xlu0 %v7642_v9, %s7236_s5 }
 0x388   :  { %10344 = vst [vmem:[#allocation21_spill] sm:$0xff] %v7907_v28  ;;  %v634_v28 = vsub.f32 %v7640_v8, %v7750_v22  ;;  %v636_v8 = vsub.f32 %v7662_v18, %v7758_v25  ;;  %v638_v18 = vsub.f32 %v7579_v43, %v7793_v38  ;;  %v639_v25 = vsub.f32 %v7587_v46, %v7772_v36 }
 0x389   :  { %v641_v46 = vsub.f32 %v7605_v54, %v7777_v16  ;;  %v643_v54 = vsub.f32 %v7620_v62, %v7784_v33  ;;  %v645_v62 = vsub.f32 %v7636_v6, %v7797_v39  ;;  %v648_v6 = vsub.f32 %v7676_v30, %v7838_v42 }
 0x38b   :  { %v7913_v34 = vpop.permute.xlu0 %786  ;;  %6568 = vrot.lane.b32.xlu0 %v7670_v27, %s7236_s5 }
 0x38c   :  { %10346 = vst [vmem:[#allocation23_spill] sm:$0xff] %v7913_v34  ;;  %v7931_v34 = vpop.permute.xlu1 %918 }
 0x38f   :  { %v7919_v53 = vpop.permute.xlu0 %791  ;;  %6573 = vrot.lane.b32.xlu0 %v7548_v24, %s7240_s26 }
 0x390   :  { %10347 = vst [vmem:[#allocation24_spill] sm:$0xff] %v7919_v53  ;;  %v7939_v22 = vpop.permute.xlu1 %1067 }
 0x391   :  { %713 = vxpose.xlu1.b32.start [1/16] (narrow) %v633_v50, 8 }
 0x393   :  { %v7927_v47 = vpop.permute.xlu0 %821  ;;  %6583 = vrot.lane.b32.xlu0 %v7571_v40, %s7240_s26 }
 0x394   :  { %10349 = vst [vmem:[#allocation26_spill] sm:$0xff] %v7927_v47  ;;  %v7947_v13 = vpop.permute.xlu1 %922 }
 0x395   :  { %714 = vxpose.xlu1.b32.cont [2/16] (narrow) %v634_v28, 8 }
 0x397   :  { %v6546_v3 = vpop.permute.xlu0 %6545  ;;  %6588 = vrot.lane.b32.xlu0 %v7591_v48, %s7240_s26 }
 0x398   :  { %v6548_v53 = vunpack.i.h.bf16 %v6546_v3  ;;  %v6547_v50 = vunpack.i.l.bf16 %v6546_v3 }
 0x399   :  { %715 = vxpose.xlu1.b32.cont [3/16] (narrow) %v635_v21, 8 }
 0x39a   :  { %v6104_v5 = vpack.c.bf16 %v6548_v53, %v6547_v50 }
 0x39b   :  { %6593 = vrot.lane.b32.xlu0 %v7608_v57, %s7240_s26 }
 0x39c   :  { %6105 = vmatprep.subr.bf16.mxu0 %v6104_v5 }
 0x39d   :  { %6107 = vmatpush3.bf16.msra.mxu0 %v6104_v5  ;;  %716 = vxpose.xlu1.b32.cont [4/16] (narrow) %v636_v8, 8  ;;  %v7955_v5 = vpop.permute.xlu1 %1071 }
 0x39f   :  { %6598 = vrot.lane.b32.xlu0 %v7622_v0, %s7240_s26 }
 0x3a1   :  { %717 = vxpose.xlu1.b32.cont [5/16] (narrow) %v637_v23, 8  ;;  %v7965_v43 = vpop.permute.xlu1 %1220 }
 0x3a3   :  { %6603 = vrot.lane.b32.xlu0 %v7642_v9, %s7240_s26 }
 0x3a5   :  { %718 = vxpose.xlu1.b32.cont [6/16] (narrow) %v638_v18, 8  ;;  %v7975_v36 = vpop.permute.xlu1 %926 }
 0x3a7   :  { %6608 = vrot.lane.b32.xlu0 %v7670_v27, %s7240_s26 }
 0x3a9   :  { %719 = vxpose.xlu1.b32.cont [7/16] (narrow) %v639_v25, 8  ;;  %v7987_v20 = vpop.permute.xlu1 %1075 }
 0x3ab   :  { %6613 = vrot.lane.b32.xlu0 %v7548_v24, %s7241_s27  ;;  %v7963_v38 = vpop.permute.xlu0 %826 }
 0x3ac   :  { %10350 = vst [vmem:[#allocation27_spill] sm:$0xff] %v7963_v38 }
 0x3ad   :  { %720 = vxpose.xlu1.b32.cont [8/16] (narrow) %v640_v37, 8  ;;  %v7997_v33 = vpop.permute.xlu1 %1224 }
 0x3af   :  { %6618 = vrot.lane.b32.xlu0 %v7558_v32, %s7241_s27 }
 0x3b0   :  { %v7971_v29 = vpop.permute.xlu0 %934 }
 0x3b1   :  { %721 = vxpose.xlu1.b32.cont [9/16] (narrow) %v641_v46, 8  ;;  %v8003_v53 = vpop.permute.xlu1 %930 }
 0x3b3   :  { %6628 = vrot.lane.b32.xlu0 %v7591_v48, %s7241_s27 }
 0x3b4   :  { %v7979_v24 = vpop.permute.xlu0 %942 }
 0x3b5   :  { %722 = vxpose.xlu1.b32.cont [10/16] (narrow) %v642_v51, 8  ;;  %v8013_v39 = vpop.permute.xlu1 %1079 }
 0x3b7   :  { %6638 = vrot.lane.b32.xlu0 %v7622_v0, %s7241_s27 }
 0x3b8   :  { %v7985_v16 = vpop.permute.xlu0 %950 }
 0x3b9   :  { %723 = vxpose.xlu1.b32.cont [11/16] (narrow) %v643_v54, 8  ;;  %v8017_v11 = vpop.permute.xlu1 %796 }
 0x3bb   :  { %6648 = vrot.lane.b32.xlu0 %v7670_v27, %s7241_s27  ;;  %v647_v27 = vsub.f32 %v7656_v15, %v7882_v12 }
 0x3bc   :  { %v7993_v48 = vpop.permute.xlu0 %954 }
 0x3bd   :  { %10351 = vst [vmem:[#allocation28_spill] sm:$0xff] %v7993_v48  ;;  %724 = vxpose.xlu1.b32.cont [12/16] (narrow) %v644_v59, 8  ;;  %v8023_v3 = vpop.permute.xlu1 %1232 }
 0x3c0   :  { %v7999_v0 = vpop.permute.xlu0 %958 }
 0x3c1   :  { %10352 = vst [vmem:[#allocation29_spill] sm:$0xff] %v7999_v0  ;;  %725 = vxpose.xlu1.b32.cont [13/16] (narrow) %v645_v62, 8  ;;  %v8027_v12 = vpop.permute.xlu1 %801 }
 0x3c5   :  { %v8005_v2 = vpop.permute.xlu0 %1083  ;;  %726 = vxpose.xlu1.b32.cont [14/16] (narrow) %v646_v49, 8  ;;  %v8033_v30 = vpop.permute.xlu1 %938 }
 0x3c9   :  { %v8009_v19 = vpop.permute.xlu0 %1091  ;;  %727 = vxpose.xlu1.b32.cont [15/16] (narrow) %v647_v27, 8  ;;  %v8037_v23 = vpop.permute.xlu1 %1087 }
 0x3cd   :  { %v8015_v28 = vpop.permute.xlu0 %1099  ;;  %728 = vxpose.xlu1.b32.end [16/16] (narrow) %v648_v6, 8 }
 0x3ce   :  { %v8046_v37 = vpop.permute.xlu1 %806 }
 0x3d1   :  { %v8019_v45 = vpop.permute.xlu0 %1103 }
 0x3d2   :  { %10353 = vst [vmem:[#allocation30_spill] sm:$0xff] %v8019_v45 }
 0x3d3   :  { %v8054_v51 = vpop.permute.xlu1 %1240 }
 0x3d5   :  { %v8021_v21 = vpop.permute.xlu0 %1107 }
 0x3d6   :  { %10354 = vst [vmem:[#allocation31_spill] sm:$0xff] %v8021_v21 }
 0x3d8   :  { %v8060_v59 = vpop.permute.xlu1 %811 }
 0x3da   :  { %v8025_v15 = vpop.permute.xlu0 %1200 }
 0x3de   :  { %v8029_v50 = vpop.permute.xlu0 %1208 }
 0x3e2   :  { %v8031_v42 = vpop.permute.xlu0 %1216 }
 0x3e6   :  { %v8035_v8 = vpop.permute.xlu0 %1228 }
 0x3ea   :  { %v8039_v18 = vpop.permute.xlu0 %1236 }
 0x3eb   :  { %6578 = vrot.lane.b32.xlu1 %v7558_v32, %s7240_s26 }
 0x3ec   :  { %6668 = vset.pattern.permute.xlu1 %v10339_v7 }
 0x3ee   :  { %v8044_v25 = vpop.permute.xlu0 %1244 }
 0x3ef   :  { %6623 = vrot.lane.b32.xlu1 %v7571_v40, %s7241_s27  ;;  %v8064_v40 = vpop.permute.xlu1 %946 }
 0x3f2   :  { %v8050_v46 = vpop.permute.xlu0 %1248 }
 0x3f3   :  { %10355 = vst [vmem:[#allocation32_spill] sm:$0xff] %v8050_v46  ;;  %6633 = vrot.lane.b32.xlu1 %v7608_v57, %s7241_s27  ;;  %v8066_v45 = vpop.permute.xlu1 %1095 }
 0x3f6   :  { %v8056_v54 = vpop.permute.xlu0 %1252 }
 0x3f7   :  { %10356 = vst [vmem:[#allocation33_spill] sm:$0xff] %v8056_v54  ;;  %6643 = vrot.lane.b32.xlu1 %v7642_v9, %s7241_s27  ;;  %v745_v54 = vlaneseq  ;;  %v8070_v47 = vpop.permute.xlu1 %816 }
 0x3fa   :  { %v6554_v32 = vpop.permute.xlu0 %6553 }
 0x3fb   :  { %v6556_v62 = vunpack.i.h.bf16 %v6554_v32  ;;  %v6555_v49 = vunpack.i.l.bf16 %v6554_v32 }
 0x3fd   :  { %v6108_v27 = vpack.c.bf16 %v6556_v62, %v6555_v49  ;;  %v8068_v49 = vshrl.u32 %v745_v54, 7 }
 0x3fe   :  { %v8062_v6 = vpop.permute.xlu0 %1256 }
 0x3ff   :  { %10357 = vst [vmem:[#allocation34_spill] sm:$0xff] %v8062_v6  ;;  %6109 = vmatprep.subr.bf16.mxu0 %v6108_v27  ;;  %10358 = vst [vmem:[#allocation35_spill] sm:$0xff] %v8068_v49  ;;  %v10280_v46 = vsub.s32 2, %v8068_v49 }
 0x400   :  { %6111 = vmatpush3.bf16.msra.mxu0 %v6108_v27 }
 0x402   :  { %v6559_v57 = vpop.permute.xlu0 %6558 }
 0x403   :  { %v6561_v7 = vunpack.i.h.bf16 %v6559_v57  ;;  %v6560_v21 = vunpack.i.l.bf16 %v6559_v57 }
 0x405   :  { %v6112_v0 = vpack.c.bf16 %v6561_v7, %v6560_v21  ;;  %v10283_v7 = vsub.s32 0, %v8068_v49  ;;  %v10281_v21 = vsub.s32 1, %v8068_v49 }
 0x406   :  { %v6564_v38 = vpop.permute.xlu0 %6563 }
 0x407   :  { %v6566_v9 = vunpack.i.h.bf16 %v6564_v38  ;;  %v6565_v48 = vunpack.i.l.bf16 %v6564_v38  ;;  %6113 = vmatprep.subr.bf16.mxu0 %v6112_v0  ;;  %v10282_v38 = vsub.s32 3, %v8068_v49 }
 0x408   :  { %6115 = vmatpush3.bf16.msra.mxu0 %v6112_v0 }
 0x409   :  { %v6116_v32 = vpack.c.bf16 %v6566_v9, %v6565_v48 }
 0x40a   :  { %v6569_v62 = vpop.permute.xlu0 %6568 }
 0x40b   :  { %v6571_v6 = vunpack.i.h.bf16 %v6569_v62  ;;  %v6570_v27 = vunpack.i.l.bf16 %v6569_v62  ;;  %6117 = vmatprep.subr.bf16.mxu0 %v6116_v32 }
 0x40c   :  { %6119 = vmatpush3.bf16.msra.mxu0 %v6116_v32 }
 0x40d   :  { %v6120_v57 = vpack.c.bf16 %v6571_v6, %v6570_v27 }
 0x40f   :  { %6121 = vmatprep.subr.bf16.mxu0 %v6120_v57 }
 0x410   :  { %6123 = vmatpush3.bf16.msra.mxu0 %v6120_v57 }
 0x411   :  { %6125 = vmatprep.subr.bf16.mxu0 %v7552_v26  ;;  %v729_v48 = vpop.trf.xlu1 }
 0x412   :  { %v8079_v0 = vrot.slane %v729_v48, %v10283_v7  ;;  %v8083_v54 = vrot.slane %v729_v48, %v10281_v21  ;;  %v8087_v6 = vrot.slane %v729_v48, %v10280_v46  ;;  %v8091_v9 = vrot.slane %v729_v48, %v10282_v38 }
 0x414   :  { %v829_v32 = vsub.f32 %v8079_v0, %v7886_v41  ;;  %v961_v62 = vsub.f32 %v8083_v54, %v7841_v58  ;;  %v1110_v27 = vsub.f32 %v8087_v6, %v7848_v1  ;;  %v1259_v57 = vsub.f32 %v8091_v9, %v7852_v10 }
 0x415   :  { %v830_v46 = vsub.f32 %v8079_v0, %v7856_v61  ;;  %v962_v21 = vsub.f32 %v8083_v54, %v7860_v44  ;;  %v1111_v41 = vsub.f32 %v8087_v6, %v7867_v14  ;;  %v1260_v58 = vsub.f32 %v8091_v9, %v8025_v15 }
 0x416   :  { %v845_v48 = vmul.f32 1.442695, %v829_v32  ;;  %v977_v38 = vmul.f32 1.442695, %v961_v62  ;;  %v1126_v7 = vmul.f32 1.442695, %v1110_v27  ;;  %v831_v10 = vsub.f32 %v8079_v0, %v7872_v17 }
 0x417   :  { %v1275_v49 = vmul.f32 1.442695, %v1259_v57  ;;  %v847_v1 = vmul.f32 1.442695, %v830_v46  ;;  %v979_v61 = vmul.f32 1.442695, %v962_v21  ;;  %v963_v44 = vsub.f32 %v8083_v54, %v7876_v31 }
 0x418   :  { %6812 = vpow2.f32 %v845_v48  ;;  %v1128_v32 = vmul.f32 1.442695, %v1111_v41  ;;  %v1112_v62 = vsub.f32 %v8087_v6, %v7880_v4  ;;  %v1277_v14 = vmul.f32 1.442695, %v1260_v58  ;;  %v10359_v58 = vld [vmem:[#allocation22_spill] sm:$0xff] }
 0x419   :  { %6814 = vpow2.f32 %v977_v38  ;;  %v1261_v15 = vsub.f32 %v8091_v9, %v7884_v60  ;;  %v849_v46 = vmul.f32 1.442695, %v831_v10  ;;  %v832_v17 = vsub.f32 %v8079_v0, %v7891_v55 }
 0x41a   :  { %6816 = vpow2.f32 %v1126_v7  ;;  %v981_v21 = vmul.f32 1.442695, %v963_v44  ;;  %v964_v31 = vsub.f32 %v8083_v54, %v7889_v56  ;;  %v1130_v7 = vmul.f32 1.442695, %v1112_v62  ;;  %v10363_v62 = vld [vmem:[#allocation20_spill] sm:$0xff] }
 0x41b   :  { %6818 = vpow2.f32 %v1275_v49  ;;  %v1113_v4 = vsub.f32 %v8087_v6, %v7897_v35  ;;  %v1279_v49 = vmul.f32 1.442695, %v1261_v15  ;;  %v1262_v60 = vsub.f32 %v8091_v9, %v8029_v50 }
 0x41c   :  { %6820 = vpow2.f32 %v847_v1  ;;  %v851_v38 = vmul.f32 1.442695, %v832_v17  ;;  %v833_v55 = vsub.f32 %v8079_v0, %v7895_v63  ;;  %v983_v27 = vmul.f32 1.442695, %v964_v31 }
 0x41d   :  { %6822 = vpow2.f32 %v979_v61  ;;  %v965_v56 = vsub.f32 %v8083_v54, %v7905_v52  ;;  %v1132_v48 = vmul.f32 1.442695, %v1113_v4  ;;  %v1281_v41 = vmul.f32 1.442695, %v1262_v60  ;;  %v10361_v61 = vld [vmem:[#allocation25_spill] sm:$0xff] }
 0x41e   :  { %6824 = vpow2.f32 %v1128_v32  ;;  %v1114_v50 = vsub.f32 %v8087_v6, %v10359_v58  ;;  %v853_v10 = vmul.f32 1.442695, %v833_v55  ;;  %v1263_v52 = vsub.f32 %v8091_v9, %v10361_v61  ;;  %v10365_v61 = vld [vmem:[#allocation21_spill] sm:$0xff] }
 0x41f   :  { %6826 = vpow2.f32 %v1277_v14  ;;  %v985_v32 = vmul.f32 1.442695, %v965_v56  ;;  %v834_v14 = vsub.f32 %v8079_v0, %v10363_v62  ;;  %v1115_v4 = vsub.f32 %v8087_v6, %v7939_v22 }
 0x420   :  { %6828 = vpow2.f32 %v849_v46  ;;  %v6574_v46 = vpop.permute.xlu0 %6573  ;;  %v1283_v55 = vmul.f32 1.442695, %v1263_v52  ;;  %v835_v52 = vsub.f32 %v8079_v0, %v10365_v61 }
 0x421   :  { %6830 = vpow2.f32 %v981_v21  ;;  %v966_v21 = vsub.f32 %v8083_v54, %v7931_v34  ;;  %v6576_v34 = vunpack.i.h.bf16 %v6574_v46  ;;  %v855_v56 = vmul.f32 1.442695, %v834_v14 }
 0x422   :  { %v8129_v57 = vpop.eup %6812  ;;  %6832 = vpow2.f32 %v1130_v7  ;;  %v1134_v7 = vmul.f32 1.442695, %v1114_v50  ;;  %v6575_v22 = vunpack.i.l.bf16 %v6574_v46  ;;  %v1116_v46 = vsub.f32 %v8087_v6, %v7955_v5 }
 0x423   :  { %v8131_v35 = vpop.eup %6814  ;;  %6834 = vpow2.f32 %v1279_v49  ;;  %v987_v50 = vmul.f32 1.442695, %v966_v21  ;;  %v857_v5 = vmul.f32 1.442695, %v835_v52  ;;  %v1117_v52 = vsub.f32 %v8087_v6, %v7987_v20 }
 0x424   :  { %v8135_v1 = vpop.eup %6816  ;;  %v1026_v63 = vadd.f32 %v8131_v35, %v8129_v57  ;;  %6836 = vpow2.f32 %v851_v38  ;;  %v1118_v20 = vsub.f32 %v8087_v6, %v8013_v39  ;;  %v838_v39 = vsub.f32 %v8079_v0, %v8017_v11  ;;  %v1404_v11 = vld [vmem:[%s10242_s1] sm:$0xff] }
 0x425   :  { %10360 = vst [vmem:[#allocation22_spill] sm:$0xff] %v8135_v1  ;;  %v8141_v44 = vpop.eup %6818  ;;  %6838 = vpow2.f32 %v983_v27 }
 0x426   :  { %10362 = vst [vmem:[#allocation25_spill] sm:$0xff] %v8141_v44  ;;  %v8145_v15 = vpop.eup %6820  ;;  %v1175_v17 = vadd.f32 %v8135_v1, %v1026_v63  ;;  %6840 = vpow2.f32 %v1132_v48  ;;  %v1264_v48 = vsub.f32 %v8091_v9, %v8031_v42 }
 0x427   :  { %v8150_v31 = vpop.eup %6822  ;;  %6842 = vpow2.f32 %v1281_v41 }
 0x428   :  { %v8154_v49 = vpop.eup %6824  ;;  %v8157_v60 = vadd.f32 %v8141_v44, %v1175_v17  ;;  %v1027_v38 = vadd.f32 %v8150_v31, %v8145_v15  ;;  %6844 = vpow2.f32 %v853_v10  ;;  %v1136_v10 = vmul.f32 1.442695, %v1115_v4 }
 0x429   :  { %v8161_v27 = vpop.eup %6826  ;;  %6846 = vpow2.f32 %v985_v32  ;;  %v967_v32 = vsub.f32 %v8083_v54, %v7947_v13  ;;  %v1285_v21 = vmul.f32 1.442695, %v1264_v48  ;;  %v10368_v13 = vld [vmem:[#allocation23_spill] sm:$0xff]  ;;  %v968_v48 = vsub.f32 %v8083_v54, %v7975_v36 }
 0x42a   :  { %10364 = vst [vmem:[#allocation20_spill] sm:$0xff] %v8161_v27  ;;  %v8165_v41 = vpop.eup %6828  ;;  %6848 = vrcp.f32 %v8157_v60  ;;  %v1176_v58 = vadd.f32 %v8154_v49, %v1027_v38  ;;  %v836_v4 = vsub.f32 %v8079_v0, %v10368_v13 }
 0x42b   :  { %v8169_v63 = vpop.eup %6830  ;;  %6850 = vpow2.f32 %v1134_v7  ;;  %v1265_v7 = vsub.f32 %v8091_v9, %v7965_v43 }
 0x42c   :  { %v8175_v62 = vpop.eup %6832  ;;  %v8178_v42 = vadd.f32 %v8161_v27, %v1176_v58  ;;  %v1028_v14 = vadd.f32 %v8169_v63, %v8165_v41  ;;  %6852 = vpow2.f32 %v1283_v55  ;;  %v8194_v55 = vpack.c.bf16 %v6576_v34, %v6575_v22 }
 0x42d   :  { %10366 = vst [vmem:[#allocation21_spill] sm:$0xff] %v8175_v62  ;;  %v8184_v17 = vpop.eup %6834  ;;  %6854 = vpow2.f32 %v855_v56  ;;  %v989_v56 = vmul.f32 1.442695, %v967_v32  ;;  %v1287_v22 = vmul.f32 1.442695, %v1265_v7  ;;  %v969_v7 = vsub.f32 %v8083_v54, %v8003_v53 }
 0x42e   :  { %10367 = vst [vmem:[#allocation36_spill] sm:$0xff] %v8184_v17  ;;  %v8190_v38 = vpop.eup %6836  ;;  %6856 = vrcp.f32 %v8178_v42  ;;  %v1177_v58 = vadd.f32 %v8175_v62, %v1028_v14  ;;  %v1138_v14 = vmul.f32 1.442695, %v1116_v46  ;;  %v1140_v53 = vmul.f32 1.442695, %v1117_v52 }
 0x42f   :  { %v8196_v61 = vpop.eup %6838  ;;  %6858 = vpow2.f32 %v987_v50  ;;  %v859_v50 = vmul.f32 1.442695, %v836_v4 }
 0x430   :  { %v8200_v43 = vpop.eup %6840  ;;  %v8203_v13 = vadd.f32 %v8184_v17, %v1177_v58  ;;  %v1029_v27 = vadd.f32 %v8196_v61, %v8190_v38  ;;  %6860 = vpow2.f32 %v1136_v10  ;;  %v1266_v58 = vsub.f32 %v8091_v9, %v7997_v33  ;;  %v10371_v17 = vld [vmem:[#allocation24_spill] sm:$0xff] }
 0x431   :  { %10369 = vst [vmem:[#allocation23_spill] sm:$0xff] %v8200_v43  ;;  %v8207_v34 = vpop.eup %6842  ;;  %6862 = vpow2.f32 %v1285_v21  ;;  %v837_v10 = vsub.f32 %v8079_v0, %v10371_v17  ;;  %v991_v21 = vmul.f32 1.442695, %v968_v48 }
 0x432   :  { %10370 = vst [vmem:[#allocation37_spill] sm:$0xff] %v8207_v34  ;;  %v8211_v32 = vpop.eup %6844  ;;  %6864 = vrcp.f32 %v8203_v13  ;;  %v1178_v36 = vadd.f32 %v8200_v43, %v1029_v27  ;;  %v1267_v27 = vsub.f32 %v8091_v9, %v8035_v8  ;;  %v993_v43 = vmul.f32 1.442695, %v969_v7 }
 0x433   :  { %v8219_v46 = vpop.eup %6846  ;;  %6866 = vpow2.f32 %v857_v5  ;;  %v863_v7 = vmul.f32 1.442695, %v838_v39 }
 0x434   :  { %v6849_v4 = vpop.eup %6848  ;;  %v8226_v44 = vadd.f32 %v8207_v34, %v1178_v36  ;;  %v1030_v33 = vadd.f32 %v8219_v46, %v8211_v32  ;;  %6868 = vpow2.f32 %v989_v56  ;;  %v1289_v34 = vmul.f32 1.442695, %v1266_v58 }
 0x435   :  { %v8232_v17 = vpop.eup %6850  ;;  %v1356_v5 = vmul.f32 %v6849_v4, %v8157_v60  ;;  %6870 = vpow2.f32 %v1138_v14  ;;  %v861_v56 = vmul.f32 1.442695, %v837_v10  ;;  %v970_v60 = vsub.f32 %v8083_v54, %v7971_v29 }
 0x436   :  { %10372 = vst [vmem:[#allocation24_spill] sm:$0xff] %v8232_v17  ;;  %v8237_v48 = vpop.eup %6852  ;;  %6872 = vrcp.f32 %v8226_v44  ;;  %v1179_v36 = vadd.f32 %v8232_v17, %v1030_v33  ;;  %v1142_v33 = vmul.f32 1.442695, %v1118_v20  ;;  %v1291_v58 = vmul.f32 1.442695, %v1267_v27 }
 0x437   :  { %10373 = vst [vmem:[#allocation38_spill] sm:$0xff] %v8237_v48  ;;  %v8241_v1 = vpop.eup %6854  ;;  %v1372_v8 = vsub.f32 2.0, %v1356_v5  ;;  %6874 = vpow2.f32 %v1287_v22  ;;  %v839_v27 = vsub.f32 %v8079_v0, %v8027_v12 }
 0x438   :  { %v6857_v14 = vpop.eup %6856  ;;  %v8249_v52 = vadd.f32 %v8237_v48, %v1179_v36  ;;  %6876 = vpow2.f32 %v859_v50  ;;  %v1119_v36 = vsub.f32 %v8087_v6, %v8005_v2  ;;  %v1268_v50 = vsub.f32 %v8091_v9, %v8023_v3 }
 0x439   :  { %v8251_v10 = vpop.eup %6858  ;;  %v1388_v17 = vmul.f32 %v6849_v4, %v1372_v8  ;;  %v1357_v22 = vmul.f32 %v6857_v14, %v8178_v42  ;;  %6878 = vpow2.f32 %v991_v21  ;;  %v995_v21 = vmul.f32 1.442695, %v970_v60  ;;  %v1405_v8 = vld [vmem:[%s10242_s1 + $0x8] sm:$0xff] }
 0x43a   :  { %v8254_v5 = vpop.eup %6860  ;;  %6880 = vrcp.f32 %v8249_v52  ;;  %v1031_v29 = vadd.f32 %v8251_v10, %v8241_v1  ;;  %v971_v2 = vsub.f32 %v8083_v54, %v8033_v30  ;;  %v1120_v3 = vsub.f32 %v8087_v6, %v8037_v23 }
 0x43b   :  { %10374 = vst [vmem:[#allocation39_spill] sm:$0xff] %v8254_v5  ;;  %v8263_v20 = vpop.eup %6862  ;;  %v8265_v4 = vmul.f32 %v1404_v11, %v1388_v17  ;;  %v1373_v42 = vsub.f32 2.0, %v1357_v22  ;;  %6882 = vpow2.f32 %v1140_v53  ;;  %v1144_v53 = vmul.f32 1.442695, %v1119_v36 }
 0x43c   :  { %v6865_v39 = vpop.eup %6864  ;;  %v1180_v48 = vadd.f32 %v8254_v5, %v1031_v29  ;;  %6884 = vpow2.f32 %v1289_v34  ;;  %v1293_v30 = vmul.f32 1.442695, %v1268_v50 }
 0x43d   :  { %10375 = vst [vmem:[#allocation40_spill] sm:$0xff] %v8265_v4  ;;  %v8277_v17 = vpop.eup %6866  ;;  %v1484_v60 = vmul.f32 %v8131_v35, %v8265_v4  ;;  %v1389_v12 = vmul.f32 %v6857_v14, %v1373_v42  ;;  %v1358_v11 = vmul.f32 %v6865_v39, %v8203_v13  ;;  %6886 = vpow2.f32 %v861_v56  ;;  %v1406_v35 = vld [vmem:[%s10242_s1 + $0x10] sm:$0xff] }
 0x43e   :  { %v8282_v22 = vpop.eup %6868  ;;  %v8285_v29 = vadd.f32 %v8263_v20, %v1180_v48  ;;  %6888 = vpow2.f32 %v993_v43  ;;  %v865_v48 = vmul.f32 1.442695, %v839_v27  ;;  %v997_v56 = vmul.f32 1.442695, %v971_v2 }
 0x43f   :  { %v8287_v5 = vpop.eup %6870  ;;  %5568 = vmatprep.mubr.f32.mxu0 %v1484_v60  ;;  %v8289_v23 = vmul.f32 %v1405_v8, %v1389_v12  ;;  %v1374_v62 = vsub.f32 2.0, %v1358_v11  ;;  %v1032_v13 = vadd.f32 %v8282_v22, %v8277_v17  ;;  %v8297_v14 = vmul.f32 1.442695, %v1120_v3  ;;  %v10378_v11 = vld [vmem:[#allocation13_spill] sm:$0xff] }
 0x440   :  { %v6873_v34 = vpop.eup %6872  ;;  %6890 = vrcp.f32 %v8285_v29  ;;  %v1269_v43 = vsub.f32 %v8091_v9, %v8039_v18  ;;  %v840_v27 = vsub.f32 %v8079_v0, %v8046_v37  ;;  %v972_v2 = vsub.f32 %v8083_v54, %v7979_v24  ;;  %v1407_v18 = vld [vmem:[%s10242_s1 + $0x18] sm:$0xff] }
 0x441   :  { %10376 = vst [vmem:[#allocation41_spill] sm:$0xff] %v8289_v23  ;;  %v8299_v36 = vpop.eup %6874  ;;  %v1485_v50 = vmul.f32 %v8150_v31, %v8289_v23  ;;  %v1390_v42 = vmul.f32 %v6865_v39, %v1374_v62  ;;  %v1359_v8 = vmul.f32 %v6873_v34, %v8226_v44  ;;  %v1181_v60 = vadd.f32 %v8287_v5, %v1032_v13 }
 0x442   :  { %v8305_v12 = vpop.eup %6876  ;;  %6892 = vpow2.f32 %v1142_v33  ;;  %v1121_v37 = vsub.f32 %v8087_v6, %v8009_v19  ;;  %v1270_v39 = vsub.f32 %v8091_v9, %v8054_v51 }
 0x443   :  { %v8313_v3 = vpop.eup %6878  ;;  %5569 = vmatmul.mubr.f32.vlgmr.msra.gmra.mrb[16].mxu0 %v1485_v50  ;;  %v8315_v31 = vmul.f32 %v1406_v35, %v1390_v42  ;;  %v1375_v44 = vsub.f32 2.0, %v1359_v8  ;;  %v8318_v62 = vadd.f32 %v8299_v36, %v1181_v60  ;;  %6894 = vpow2.f32 %v1291_v58 }
 0x444   :  { %v6881_v33 = vpop.eup %6880  ;;  %6127 = vmatpush3.bf16.msra.mxu0 %v7552_v26  ;;  %v1033_v24 = vadd.f32 %v8313_v3, %v8305_v12  ;;  %6896 = vpow2.f32 %v863_v7  ;;  %v1295_v7 = vmul.f32 1.442695, %v1269_v43  ;;  %v867_v50 = vmul.f32 1.442695, %v840_v27 }
 0x445   :  { %10377 = vst [vmem:[#allocation42_spill] sm:$0xff] %v8315_v31  ;;  %v1486_v58 = vmul.f32 %v8169_v63, %v8315_v31  ;;  %6129 = vmatprep.subr.bf16.mxu0 %v10378_v11  ;;  %v1391_v26 = vmul.f32 %v6873_v34, %v1375_v44  ;;  %v1360_v35 = vmul.f32 %v6881_v33, %v8249_v52  ;;  %6898 = vrcp.f32 %v8318_v62  ;;  %v8335_v13 = vpop.eup %6882  ;;  %v1408_v52 = vld [vmem:[%s10242_s1 + $0x20] sm:$0xff]  ;;  %v10380_v44 = vld [vmem:[#allocation14_spill] sm:$0xff] }
 0x446   :  { %6900 = vpow2.f32 %v995_v21  ;;  %v999_v42 = vmul.f32 1.442695, %v972_v2  ;;  %v8337_v19 = vpop.eup %6884  ;;  %v1182_v63 = vadd.f32 %v8335_v13, %v1033_v24  ;;  %v1148_v21 = vmul.f32 1.442695, %v1121_v37 }
 0x447   :  { %5571 = vmatprep.mubr.f32.mxu0 %v1486_v58  ;;  %v8339_v51 = vmul.f32 %v1407_v18, %v1391_v26  ;;  %v1376_v8 = vsub.f32 2.0, %v1360_v35  ;;  %6902 = vpow2.f32 %v1144_v53  ;;  %v8342_v34 = vpop.eup %6886  ;;  %v1297_v60 = vmul.f32 1.442695, %v1270_v39 }
 0x448   :  { %6131 = vmatpush3.bf16.msra.mxu0 %v10378_v11  ;;  %6904 = vpow2.f32 %v1293_v30  ;;  %v841_v43 = vsub.f32 %v8079_v0, %v8060_v59  ;;  %v8350_v27 = vpop.eup %6888  ;;  %v8356_v18 = vadd.f32 %v8337_v19, %v1182_v63  ;;  %v973_v59 = vsub.f32 %v8083_v54, %v8064_v40  ;;  %v1409_v11 = vld [vmem:[%s10242_s1 + $0x28] sm:$0xff] }
 0x449   :  { %10379 = vst [vmem:[#allocation13_spill] sm:$0xff] %v8339_v51  ;;  %v1487_v2 = vmul.f32 %v8196_v61, %v8339_v51  ;;  %v1392_v53 = vmul.f32 %v6881_v33, %v1376_v8  ;;  %6133 = vmatprep.subr.bf16.mxu0 %v10380_v44  ;;  %6906 = vpow2.f32 %v865_v48  ;;  %v1034_v30 = vadd.f32 %v8350_v27, %v8342_v34 }
 0x44a   :  { %v6891_v24 = vpop.eup %6890  ;;  %6908 = vpow2.f32 %v997_v56  ;;  %v1122_v37 = vsub.f32 %v8087_v6, %v8066_v45  ;;  %v1271_v48 = vsub.f32 %v8091_v9, %v8044_v25  ;;  %v842_v40 = vsub.f32 %v8079_v0, %v8070_v47 }
 0x44b   :  { %5572 = vmatmul.mubr.f32.gmra.mrb[18].mxu0 %v1487_v2  ;;  %v8364_v61 = vmul.f32 %v1408_v52, %v1392_v53  ;;  %v1361_v33 = vmul.f32 %v6891_v24, %v8285_v29  ;;  %6910 = vrcp.f32 %v8356_v18  ;;  %v974_v45 = vsub.f32 %v8083_v54, %v7985_v16 }
 0x44c   :  { %v8370_v39 = vpop.eup %6892  ;;  %6135 = vmatpush3.bf16.msra.mxu0 %v10380_v44  ;;  %6912 = vpow2.f32 %v8297_v14  ;;  %v1123_v29 = vsub.f32 %v8087_v6, %v8015_v28  ;;  %v10381_v14 = vld [vmem:[#allocation15_spill] sm:$0xff]  ;;  %v869_v16 = vmul.f32 1.442695, %v841_v43  ;;  %v1001_v28 = vmul.f32 1.442695, %v973_v59 }
 0x44d   :  { %v8380_v56 = vpop.eup %6894  ;;  %v1488_v25 = vmul.f32 %v8219_v46, %v8364_v61  ;;  %v1377_v58 = vsub.f32 2.0, %v1361_v33  ;;  %6137 = vmatprep.subr.bf16.mxu0 %v10381_v14  ;;  %v1183_v47 = vadd.f32 %v8370_v39, %v1034_v30  ;;  %6914 = vpow2.f32 %v1295_v7  ;;  %v10385_v33 = vld [vmem:[#allocation26_spill] sm:$0xff] }
 0x44e   :  { %v8389_v26 = vpop.eup %6896  ;;  %6916 = vpow2.f32 %v867_v50  ;;  %v1150_v35 = vmul.f32 1.442695, %v1122_v37  ;;  %v1299_v52 = vmul.f32 1.442695, %v1271_v48  ;;  %v871_v7 = vmul.f32 1.442695, %v842_v40 }
 0x44f   :  { %10382 = vst [vmem:[#allocation14_spill] sm:$0xff] %v8389_v26  ;;  %v6899_v8 = vpop.eup %6898  ;;  %5574 = vmatprep.mubr.f32.mxu0 %v1488_v25  ;;  %v1393_v63 = vmul.f32 %v6891_v24, %v1377_v58  ;;  %v8392_v46 = vadd.f32 %v8380_v56, %v1183_v47  ;;  %6918 = vpow2.f32 %v999_v42  ;;  %v1003_v50 = vmul.f32 1.442695, %v974_v45  ;;  %v10383_v24 = vld [vmem:[#allocation16_spill] sm:$0xff]  ;;  %v1410_v25 = vld [vmem:[%s10242_s1 + $0x30] sm:$0xff]  ;;  %v10388_v47 = vld [vmem:[#allocation30_spill] sm:$0xff] }
 0x450   :  { %v8394_v2 = vpop.eup %6900  ;;  %v1362_v53 = vmul.f32 %v6899_v8, %v8318_v62  ;;  %6139 = vmatpush3.bf16.msra.mxu0 %v10381_v14  ;;  %6920 = vpow2.f32 %v1148_v21  ;;  %v1152_v30 = vmul.f32 1.442695, %v1123_v29  ;;  %v10384_v37 = vld [vmem:[#allocation32_spill] sm:$0xff]  ;;  %v843_v48 = vsub.f32 %v8079_v0, %v10385_v33  ;;  %v10390_v33 = vld [vmem:[#allocation17_spill] sm:$0xff] }
 0x451   :  { %v8398_v43 = vpop.eup %6902  ;;  %v8400_v44 = vmul.f32 %v1409_v11, %v1393_v63  ;;  %6922 = vrcp.f32 %v8392_v46  ;;  %6141 = vmatprep.subr.bf16.mxu0 %v10383_v24  ;;  %v1035_v42 = vadd.f32 %v8394_v2, %v8389_v26  ;;  %v1272_v21 = vsub.f32 %v8091_v9, %v10384_v37  ;;  %v10387_v58 = vld [vmem:[#allocation28_spill] sm:$0xff] }
 0x452   :  { %v8406_v59 = vpop.eup %6904  ;;  %v1378_v62 = vsub.f32 2.0, %v1362_v53  ;;  %6924 = vpow2.f32 %v1297_v60  ;;  %v975_v60 = vsub.f32 %v8083_v54, %v10387_v58  ;;  %v1124_v63 = vsub.f32 %v8087_v6, %v10388_v47 }
 0x453   :  { %v8412_v40 = vpop.eup %6906  ;;  %v1489_v45 = vmul.f32 %v8251_v10, %v8400_v44  ;;  %v1184_v29 = vadd.f32 %v8398_v43, %v1035_v42  ;;  %6926 = vpow2.f32 %v869_v16  ;;  %v10389_v10 = vld [vmem:[#allocation33_spill] sm:$0xff] }
 0x454   :  { %10386 = vst [vmem:[#allocation15_spill] sm:$0xff] %v8412_v40  ;;  %v8422_v11 = vpop.eup %6908  ;;  %v1394_v14 = vmul.f32 %v6899_v8, %v1378_v62  ;;  %6143 = vmatpush3.bf16.msra.mxu0 %v10383_v24  ;;  %6928 = vpow2.f32 %v1001_v28  ;;  %v1273_v53 = vsub.f32 %v8091_v9, %v10389_v10  ;;  %v10391_v8 = vld [vmem:[#allocation27_spill] sm:$0xff]  ;;  %v873_v10 = vmul.f32 1.442695, %v843_v48  ;;  %v10392_v48 = vld [vmem:[#allocation18_spill] sm:$0xff] }
 0x455   :  { %v6911_v37 = vpop.eup %6910  ;;  %5575 = vmatmul.mubr.f32.gmra.mrb[20].mxu0 %v1489_v45  ;;  %v8430_v42 = vadd.f32 %v8406_v59, %v1184_v29  ;;  %v1036_v16 = vadd.f32 %v8422_v11, %v8412_v40  ;;  %6145 = vmatprep.subr.bf16.mxu0 %v10390_v33  ;;  %6930 = vpow2.f32 %v1150_v35  ;;  %v844_v28 = vsub.f32 %v8079_v0, %v10391_v8 }
 0x456   :  { %v8437_v24 = vpop.eup %6912  ;;  %v8439_v62 = vmul.f32 %v1410_v25, %v1394_v14  ;;  %v1363_v58 = vmul.f32 %v6911_v37, %v8356_v18  ;;  %6932 = vpow2.f32 %v1299_v52  ;;  %v1301_v45 = vmul.f32 1.442695, %v1272_v21  ;;  %v1411_v21 = vld [vmem:[%s10242_s1 + $0x38] sm:$0xff] }
 0x457   :  { %v8442_v47 = vpop.eup %6914  ;;  %6934 = vrcp.f32 %v8430_v42  ;;  %v1185_v29 = vadd.f32 %v8437_v24, %v1036_v16  ;;  %v1005_v40 = vmul.f32 1.442695, %v975_v60  ;;  %v1154_v18 = vmul.f32 1.442695, %v1124_v63  ;;  %v10393_v63 = vld [vmem:[#allocation29_spill] sm:$0xff] }
 0x458   :  { %v8446_v35 = vpop.eup %6916  ;;  %v1490_v0 = vmul.f32 %v8282_v22, %v8439_v62  ;;  %v1379_v8 = vsub.f32 2.0, %v1363_v58  ;;  %6147 = vmatpush3.bf16.msra.mxu0 %v10390_v33  ;;  %6936 = vpow2.f32 %v871_v7  ;;  %v1303_v60 = vmul.f32 1.442695, %v1273_v53 }
 0x459   :  { %v8451_v52 = vpop.eup %6918  ;;  %v8457_v25 = vadd.f32 %v8442_v47, %v1185_v29  ;;  %6149 = vmatprep.subr.bf16.mxu0 %v10392_v48  ;;  %6938 = vpow2.f32 %v1003_v50  ;;  %v875_v14 = vmul.f32 1.442695, %v844_v28  ;;  %v976_v33 = vsub.f32 %v8083_v54, %v10393_v63  ;;  %v10394_v29 = vld [vmem:[#allocation31_spill] sm:$0xff] }
 0x45a   :  { %v8460_v22 = vpop.eup %6920  ;;  %5577 = vmatprep.mubr.f32.mxu0 %v1490_v0  ;;  %v1395_v16 = vmul.f32 %v6911_v37, %v1379_v8  ;;  %v1037_v7 = vadd.f32 %v8451_v52, %v8446_v35  ;;  %6940 = vpow2.f32 %v1152_v30  ;;  %v1125_v26 = vsub.f32 %v8087_v6, %v10394_v29 }
 0x45b   :  { %v6923_v58 = vpop.eup %6922  ;;  %6942 = vrcp.f32 %v8457_v25  ;;  %v8471_v50 = vmul.f32 %v8129_v57, %v8265_v4  ;;  %v8475_v53 = vmul.f32 %v8145_v15, %v8289_v23  ;;  %v10396_v57 = vld [vmem:[#allocation19_spill] sm:$0xff]  ;;  %v8489_v15 = vmul.f32 %v8165_v41, %v8315_v31 }
 0x45c   :  { %v8477_v37 = vpop.eup %6924  ;;  %v8479_v30 = vmul.f32 %v1411_v21, %v1395_v16  ;;  %v1364_v54 = vmul.f32 %v6923_v58, %v8392_v46  ;;  %v1186_v28 = vadd.f32 %v8460_v22, %v1037_v7  ;;  %6944 = vpow2.f32 %v1301_v45  ;;  %6151 = vmatpush3.bf16.msra.mxu0 %v10392_v48  ;;  %v1412_v41 = vld [vmem:[%s10242_s1 + $0x40] sm:$0xff]  ;;  %v10397_v16 = vld [vmem:[#allocation34_spill] sm:$0xff] }
 0x45d   :  { %v8484_v6 = vpop.eup %6926  ;;  %6946 = vpow2.f32 %v873_v10  ;;  %6153 = vmatprep.subr.bf16.mxu0 %v10396_v57  ;;  %v8493_v0 = vmul.f32 %v8190_v38, %v8339_v51  ;;  %v8497_v46 = vmul.f32 %v8211_v32, %v8364_v61  ;;  %v1007_v32 = vmul.f32 1.442695, %v976_v33 }
 0x45e   :  { %10395 = vst [vmem:[#allocation16_spill] sm:$0xff] %v8484_v6  ;;  %v8499_v45 = vpop.eup %6928  ;;  %v1491_v8 = vmul.f32 %v8313_v3, %v8479_v30  ;;  %v1380_v10 = vsub.f32 2.0, %v1364_v54  ;;  %v1335_v21 = vadd.f32 %v8477_v37, %v1186_v28  ;;  %6948 = vpow2.f32 %v1005_v40 }
 0x45f   :  { %v8504_v48 = vpop.eup %6930  ;;  %v1038_v38 = vadd.f32 %v8499_v45, %v8484_v6  ;;  %6950 = vpow2.f32 %v1154_v18  ;;  %v1274_v7 = vsub.f32 %v8091_v9, %v10397_v16  ;;  %v1156_v40 = vmul.f32 1.442695, %v1125_v26  ;;  %v10399_v6 = vld [vmem:[#allocation21_spill] sm:$0xff] }
 0x460   :  { %v8513_v63 = vpop.eup %6932  ;;  %5578 = vmatmul.mubr.f32.gmra.mrb[22].mxu0 %v1491_v8  ;;  %v1396_v3 = vmul.f32 %v6923_v58, %v1380_v10  ;;  %6952 = vrcp.f32 %v1335_v21  ;;  %v8517_v29 = vmul.f32 %v8241_v1, %v8400_v44 }
 0x461   :  { %v6935_v54 = vpop.eup %6934  ;;  %v1187_v28 = vadd.f32 %v8504_v48, %v1038_v38  ;;  %6954 = vpow2.f32 %v1303_v60  ;;  %6155 = vmatpush3.bf16.msra.mxu0 %v10396_v57  ;;  %v1305_v58 = vmul.f32 1.442695, %v1274_v7 }
 0x462   :  { %v8521_v18 = vpop.eup %6936  ;;  %v8523_v33 = vmul.f32 %v1412_v41, %v1396_v3  ;;  %v1365_v9 = vmul.f32 %v6935_v54, %v8430_v42  ;;  %6956 = vpow2.f32 %v875_v14  ;;  %6157 = vmatprep.subr.bf16.mxu0 %v8194_v55  ;;  %v1413_v14 = vld [vmem:[%s10242_s1 + $0x48] sm:$0xff] }
 0x463   :  { %v8527_v26 = vpop.eup %6938  ;;  %v1336_v1 = vadd.f32 %v8513_v63, %v1187_v28  ;;  %6958 = vpow2.f32 %v1007_v32 }
 0x464   :  { %v8530_v8 = vpop.eup %6940  ;;  %v1492_v60 = vmul.f32 %v8350_v27, %v8523_v33  ;;  %v1381_v57 = vsub.f32 2.0, %v1365_v9  ;;  %v1039_v10 = vadd.f32 %v8527_v26, %v8521_v18  ;;  %6960 = vpow2.f32 %v1156_v40 }
 0x465   :  { %v6943_v42 = vpop.eup %6942  ;;  %6962 = vrcp.f32 %v1336_v1 }
 0x466   :  { %v8539_v41 = vpop.eup %6944  ;;  %5580 = vmatprep.mubr.f32.mxu0 %v1492_v60  ;;  %v1397_v38 = vmul.f32 %v6935_v54, %v1381_v57  ;;  %v1366_v32 = vmul.f32 %v6943_v42, %v8457_v25  ;;  %v1188_v16 = vadd.f32 %v8530_v8, %v1039_v10  ;;  %6964 = vpow2.f32 %v1305_v58  ;;  %v1414_v54 = vld [vmem:[%s10242_s1 + $0x50] sm:$0xff] }
 0x467   :  { %v8543_v27 = vpop.eup %6946  ;;  %v8559_v60 = vmul.f32 %v8154_v49, %v8289_v23  ;;  %v8572_v49 = vmul.f32 %v10399_v6, %v8315_v31  ;;  %v10400_v23 = vld [vmem:[#allocation23_spill] sm:$0xff]  ;;  %v1415_v6 = vld [vmem:[%s10242_s1 + $0x58] sm:$0xff] }
 0x468   :  { %v8545_v7 = vpop.eup %6948  ;;  %v8547_v3 = vmul.f32 %v1413_v14, %v1397_v38  ;;  %v1382_v40 = vsub.f32 2.0, %v1366_v32  ;;  %v1337_v28 = vadd.f32 %v8539_v41, %v1188_v16 }
 0x469   :  { %v8550_v9 = vpop.eup %6950  ;;  %v1040_v25 = vadd.f32 %v8545_v7, %v8543_v27  ;;  %10398 = vst [vmem:[#allocation32_spill] sm:$0xff] %v8559_v60  ;;  %v8576_v60 = vmul.f32 %v10400_v23, %v8339_v51 }
 0x46a   :  { %v6953_v58 = vpop.eup %6952  ;;  %v1493_v57 = vmul.f32 %v8394_v2, %v8547_v3  ;;  %v1398_v10 = vmul.f32 %v6943_v42, %v1382_v40  ;;  %6966 = vrcp.f32 %v1337_v28  ;;  %v10402_v40 = vld [vmem:[#allocation24_spill] sm:$0xff] }
 0x46b   :  { %v8563_v14 = vpop.eup %6954  ;;  %v1367_v38 = vmul.f32 %v6953_v58, %v1335_v21  ;;  %v1189_v32 = vadd.f32 %v8550_v9, %v1040_v25  ;;  %10401 = vst [vmem:[#allocation26_spill] sm:$0xff] %v8576_v60  ;;  %v8583_v25 = vmul.f32 %v10402_v40, %v8364_v61  ;;  %v8600_v40 = vmul.f32 %v8287_v5, %v8439_v62 }
 0x46c   :  { %v8566_v16 = vpop.eup %6956  ;;  %5581 = vmatmul.mubr.f32.gmra.mrb[24].mxu0 %v1493_v57  ;;  %v8568_v4 = vmul.f32 %v1414_v54, %v1398_v10  ;;  %v10404_v10 = vld [vmem:[#allocation39_spill] sm:$0xff]  ;;  %v8609_v60 = vmul.f32 %v8370_v39, %v8523_v33  ;;  %v8617_v5 = vmul.f32 %v8398_v43, %v8547_v3 }
 0x46d   :  { %v8578_v2 = vpop.eup %6958  ;;  %v1383_v42 = vsub.f32 2.0, %v1367_v38  ;;  %v1338_v21 = vadd.f32 %v8563_v14, %v1189_v32  ;;  %10403 = vst [vmem:[#allocation28_spill] sm:$0xff] %v8583_v25  ;;  %v8596_v38 = vmul.f32 %v10404_v10, %v8400_v44  ;;  %v8605_v25 = vmul.f32 %v8335_v13, %v8479_v30  ;;  %v1416_v39 = vld [vmem:[%s10242_s1 + $0x60] sm:$0xff] }
 0x46e   :  { %v8585_v57 = vpop.eup %6960  ;;  %v1494_v54 = vmul.f32 %v8422_v11, %v8568_v4  ;;  %v1041_v23 = vadd.f32 %v8578_v2, %v8566_v16 }
 0x46f   :  { %v6963_v32 = vpop.eup %6962  ;;  %v1399_v51 = vmul.f32 %v6953_v58, %v1383_v42  ;;  %6968 = vrcp.f32 %v1338_v21 }
 0x470   :  { %5583 = vmatprep.mubr.f32.mxu0 %v1494_v54  ;;  %v1368_v11 = vmul.f32 %v6963_v32, %v1336_v1  ;;  %v1190_v31 = vadd.f32 %v8585_v57, %v1041_v23  ;;  %v8611_v10 = vpop.eup %6964  ;;  %v8621_v1 = vmul.f32 %v8437_v24, %v8568_v4  ;;  %v10406_v23 = vld [vmem:[#allocation38_spill] sm:$0xff] }
 0x471   :  { %v8613_v58 = vmul.f32 %v1415_v6, %v1399_v51 }
 0x472   :  { %10405 = vst [vmem:[#allocation30_spill] sm:$0xff] %v8621_v1  ;;  %v1384_v42 = vsub.f32 2.0, %v1368_v11  ;;  %v1339_v13 = vadd.f32 %v8611_v10, %v1190_v31  ;;  %v8635_v11 = vmul.f32 %v10406_v23, %v8364_v61  ;;  %v2376_v31 = vld [vmem:[#allocation5 + $0x8] sm:$0xff] }
 0x473   :  { %v1495_v54 = vmul.f32 %v8451_v52, %v8613_v58  ;;  %v8631_v51 = vmul.f32 %v8460_v22, %v8613_v58  ;;  %v8641_v52 = vmul.f32 %v8263_v20, %v8400_v44  ;;  %v8645_v22 = vmul.f32 %v8299_v36, %v8439_v62  ;;  %v2380_v44 = vld [vmem:[#allocation5 + $0x28] sm:$0xff] }
 0x474   :  { %v6967_v43 = vpop.eup %6966  ;;  %v1400_v6 = vmul.f32 %v6963_v32, %v1384_v42  ;;  %6970 = vrcp.f32 %v1339_v13  ;;  %10407 = vst [vmem:[#allocation33_spill] sm:$0xff] %v8635_v11  ;;  %v8649_v32 = vmul.f32 %v8337_v19, %v8479_v30  ;;  %v2375_v42 = vld [vmem:[#allocation5] sm:$0xff]  ;;  %v8657_v20 = vmul.f32 %v8406_v59, %v8547_v3 }
 0x475   :  { %5584 = vmatmul.mubr.f32.gmra.mrb[26].mxu0 %v1495_v54  ;;  %v1369_v24 = vmul.f32 %v6967_v43, %v1337_v28  ;;  %10408 = vst [vmem:[#allocation17_spill] sm:$0xff] %v8641_v52  ;;  %10409 = vst [vmem:[#allocation27_spill] sm:$0xff] %v8645_v22  ;;  %v2378_v28 = vld [vmem:[#allocation5 + $0x18] sm:$0xff]  ;;  %v2377_v54 = vld [vmem:[#allocation5 + $0x10] sm:$0xff]  ;;  %v8661_v36 = vmul.f32 %v8442_v47, %v8568_v4  ;;  %v8674_v59 = vmul.f32 %v8477_v37, %v8613_v58 }
 0x476   :  { %v8637_v1 = vmul.f32 %v1416_v39, %v1400_v6  ;;  %10410 = vst [vmem:[#allocation18_spill] sm:$0xff] %v8649_v32  ;;  %v8653_v39 = vmul.f32 %v8380_v56, %v8523_v33  ;;  %10412 = vst [vmem:[#allocation31_spill] sm:$0xff] %v8657_v20  ;;  %v2382_v6 = vld [vmem:[#allocation5 + $0x38] sm:$0xff]  ;;  %v6220_v20 = vpack.c.bf16 %v2378_v28, %v2376_v31  ;;  %v2381_v32 = vld [vmem:[#allocation5 + $0x30] sm:$0xff] }
 0x477   :  { %v1385_v61 = vsub.f32 2.0, %v1369_v24  ;;  %10413 = vst [vmem:[#allocation19_spill] sm:$0xff] %v8661_v36  ;;  %v1417_v24 = vld [vmem:[%s10242_s1 + $0x68] sm:$0xff]  ;;  %10415 = vst [vmem:[#allocation21_spill] sm:$0xff] %v8674_v59  ;;  %v6224_v52 = vpack.c.bf16 %v2382_v6, %v2380_v44 }
 0x478   :  { %10411 = vst [vmem:[#allocation29_spill] sm:$0xff] %v8653_v39  ;;  %v1496_v19 = vmul.f32 %v8499_v45, %v8637_v1  ;;  %v8670_v56 = vmul.f32 %v8504_v48, %v8637_v1  ;;  %v8678_v36 = vmul.f32 %v8513_v63, %v8637_v1  ;;  %v6222_v45 = vpack.c.bf16 %v2377_v54, %v2375_v42  ;;  %v2379_v39 = vld [vmem:[#allocation5 + $0x20] sm:$0xff]  ;;  %v6584_v48 = vpop.permute.xlu0 %6583 }
 0x479   :  { %v6969_v23 = vpop.eup %6968  ;;  %v1401_v47 = vmul.f32 %v6967_v43, %v1385_v61  ;;  %6221 = vmatprep.subr.bf16.mxu1 %v6220_v20  ;;  %v6226_v37 = vpack.c.bf16 %v2381_v32, %v2379_v39  ;;  %v1418_v63 = vld [vmem:[%s10242_s1 + $0x70] sm:$0xff] }
 0x47a   :  { %10414 = vst [vmem:[#allocation34_spill] sm:$0xff] %v8670_v56  ;;  %5586 = vmatprep.mubr.f32.mxu0 %v1496_v19  ;;  %v1370_v22 = vmul.f32 %v6969_v23, %v1338_v21  ;;  %6223 = vmatpush1.bf16.msra.mxu1 %v6222_v45 }
 0x47b   :  { %v1433_v11 = vmul.f32 %v1417_v24, %v1401_v47  ;;  %6225 = vmatprep.subr.bf16.mxu1 %v6224_v52  ;;  %v6579_v52 = vpop.permute.xlu1 %6578  ;;  %v6586_v24 = vunpack.i.h.bf16 %v6584_v48 }
 0x47c   :  { %v1386_v56 = vsub.f32 2.0, %v1370_v22  ;;  %v6589_v54 = vpop.permute.xlu0 %6588  ;;  %v6581_v20 = vunpack.i.h.bf16 %v6579_v52  ;;  %v6580_v44 = vunpack.i.l.bf16 %v6579_v52 }
 0x47d   :  { %v1497_v59 = vmul.f32 %v8527_v26, %v1433_v11  ;;  %v8685_v43 = vmul.f32 %v8521_v18, %v1433_v11  ;;  %v8688_v31 = vmul.f32 %v8530_v8, %v1433_v11  ;;  %v8691_v21 = vmul.f32 %v8539_v41, %v1433_v11  ;;  %v1419_v18 = vld [vmem:[%s10242_s1 + $0x78] sm:$0xff] }
 0x47e   :  { %v6971_v28 = vpop.eup %6970  ;;  %v1402_v22 = vmul.f32 %v6969_v23, %v1386_v56  ;;  %6227 = vmatpush1.bf16.msra.mxu1 %v6226_v37  ;;  %v6585_v56 = vunpack.i.l.bf16 %v6584_v48 }
 0x47f   :  { %5587 = vmatmul.mubr.f32.gmra.mrb[28].mxu0 %v1497_v59  ;;  %v1371_v32 = vmul.f32 %v6971_v28, %v1339_v13 }
 0x480   :  { %v1434_v42 = vmul.f32 %v1418_v63, %v1402_v22  ;;  %v6594_v19 = vpop.permute.xlu0 %6593 }
 0x481   :  { %v1387_v26 = vsub.f32 2.0, %v1371_v32  ;;  %v6595_v23 = vunpack.i.l.bf16 %v6594_v19 }
 0x482   :  { %v1498_v61 = vmul.f32 %v8545_v7, %v1434_v42  ;;  %v8698_v8 = vmul.f32 %v8543_v27, %v1434_v42  ;;  %v8701_v41 = vmul.f32 %v8550_v9, %v1434_v42  ;;  %v8704_v11 = vmul.f32 %v8563_v14, %v1434_v42 }
 0x483   :  { %v1403_v13 = vmul.f32 %v6971_v28, %v1387_v26  ;;  %v6160_v14 = vpack.c.bf16 %v6581_v20, %v6580_v44  ;;  %v10421_v44 = vld [vmem:[#allocation32_spill] sm:$0xff] }
 0x484   :  { %5589 = vmatprep.mubr.f32.mxu0 %v1498_v61  ;;  %v6599_v59 = vpop.permute.xlu0 %6598 }
 0x485   :  { %v1435_v39 = vmul.f32 %v1419_v18, %v1403_v13  ;;  %v6600_v47 = vunpack.i.l.bf16 %v6599_v59 }
 0x487   :  { %v1499_v7 = vmul.f32 %v8578_v2, %v1435_v39  ;;  %v8708_v6 = vmul.f32 %v8566_v16, %v1435_v39  ;;  %v8711_v27 = vmul.f32 %v8585_v57, %v1435_v39  ;;  %v8714_v9 = vmul.f32 %v8611_v10, %v1435_v39  ;;  %v6624_v39 = vpop.permute.xlu1 %6623 }
 0x488   :  { %v6591_v16 = vunpack.i.h.bf16 %v6589_v54  ;;  %v6590_v2 = vunpack.i.l.bf16 %v6589_v54  ;;  %v6164_v57 = vpack.c.bf16 %v6586_v24, %v6585_v56  ;;  %v1458_v10 = vmul.f32 %v8277_v17, %v8439_v62  ;;  %v10416_v17 = vld [vmem:[#allocation14_spill] sm:$0xff] }
 0x489   :  { %5590 = vmatmul.mubr.f32.gmra.mrb[30].mxu0 %v1499_v7  ;;  %v1461_v62 = vmul.f32 %v10416_v17, %v8547_v3  ;;  %v6626_v20 = vunpack.i.h.bf16 %v6624_v39  ;;  %v10422_v24 = vld [vmem:[#allocation26_spill] sm:$0xff]  ;;  %v10428_v17 = vld [vmem:[#allocation20_spill] sm:$0xff] }
 0x48a   :  { %5624 = vmatprep.mubr.f32.mxu0 %v8471_v50  ;;  %v6604_v50 = vpop.permute.xlu0 %6603 }
 0x48b   :  { %v6606_v63 = vunpack.i.h.bf16 %v6604_v50  ;;  %v6605_v28 = vunpack.i.l.bf16 %v6604_v50  ;;  %v6634_v56 = vpop.permute.xlu1 %6633 }
 0x48d   :  { %5625 = vmatmul.mubr.f32.vlgmr.msra.gmra.mrb[16].mxu0 %v8475_v53  ;;  %v6596_v53 = vunpack.i.h.bf16 %v6594_v19  ;;  %v6180_v3 = vpack.c.bf16 %v6606_v63, %v6605_v28  ;;  %v10432_v28 = vld [vmem:[#allocation37_spill] sm:$0xff] }
 0x48e   :  { %6159 = vmatpush3.bf16.msra.mxu0 %v8194_v55  ;;  %5627 = vmatprep.mubr.f32.mxu0 %v8489_v15  ;;  %v6168_v55 = vpack.c.bf16 %v6591_v16, %v6590_v2  ;;  %v1459_v15 = vmul.f32 %v8305_v12, %v8479_v30  ;;  %v6609_v48 = vpop.permute.xlu0 %6608  ;;  %v6636_v16 = vunpack.i.h.bf16 %v6634_v56  ;;  %v6635_v2 = vunpack.i.l.bf16 %v6634_v56 }
 0x48f   :  { %6161 = vmatprep.subr.bf16.mxu0 %v6160_v14  ;;  %v6172_v45 = vpack.c.bf16 %v6596_v53, %v6595_v23  ;;  %v6611_v32 = vunpack.i.h.bf16 %v6609_v48  ;;  %v6610_v42 = vunpack.i.l.bf16 %v6609_v48  ;;  %v6644_v23 = vpop.permute.xlu1 %6643 }
 0x490   :  { %v6204_v53 = vpack.c.bf16 %v6636_v16, %v6635_v2 }
 0x491   :  { %5628 = vmatmul.mubr.f32.gmra.mrb[18].mxu0 %v8493_v0  ;;  %v1460_v0 = vmul.f32 %v8342_v34, %v8523_v33  ;;  %v1463_v34 = vmul.f32 %v8446_v35, %v8613_v58  ;;  %v10418_v33 = vld [vmem:[#allocation16_spill] sm:$0xff]  ;;  %v6184_v54 = vpack.c.bf16 %v6611_v32, %v6610_v42  ;;  %v10420_v58 = vld [vmem:[#allocation22_spill] sm:$0xff]  ;;  %v10439_v32 = vld [vmem:[#allocation19_spill] sm:$0xff] }
 0x492   :  { %6163 = vmatpush3.bf16.msra.mxu0 %v6160_v14  ;;  %5630 = vmatprep.mubr.f32.mxu0 %v8497_v46  ;;  %v6601_v46 = vunpack.i.h.bf16 %v6599_v59  ;;  %v6614_v30 = vpop.permute.xlu0 %6613  ;;  %v1464_v22 = vmul.f32 %v10418_v33, %v8637_v1  ;;  %v10419_v35 = vld [vmem:[#allocation40_spill] sm:$0xff]  ;;  %v10437_v33 = vld [vmem:[#allocation29_spill] sm:$0xff] }
 0x493   :  { %6165 = vmatprep.subr.bf16.mxu0 %v6164_v57  ;;  %v6615_v26 = vunpack.i.l.bf16 %v6614_v30  ;;  %v1870_v1 = vmul.f32 %v10420_v58, %v10419_v35  ;;  %v10423_v59 = vld [vmem:[#allocation28_spill] sm:$0xff]  ;;  %v10440_v42 = vld [vmem:[#allocation21_spill] sm:$0xff] }
 0x494   :  { %v6176_v12 = vpack.c.bf16 %v6601_v46, %v6600_v47  ;;  %v10424_v46 = vld [vmem:[#allocation30_spill] sm:$0xff] }
 0x495   :  { %5631 = vmatmul.mubr.f32.gmra.mrb[20].mxu0 %v8517_v29  ;;  %v10417_v29 = vld [vmem:[#allocation15_spill] sm:$0xff] }
 0x496   :  { %6167 = vmatpush3.bf16.msra.mxu0 %v6164_v57  ;;  %5633 = vmatprep.mubr.f32.mxu0 %v1458_v10  ;;  %v1462_v37 = vmul.f32 %v10417_v29, %v8568_v4  ;;  %v6616_v4 = vunpack.i.h.bf16 %v6614_v30  ;;  %v6619_v61 = vpop.permute.xlu0 %6618  ;;  %v10429_v29 = vld [vmem:[#allocation42_spill] sm:$0xff]  ;;  %v10435_v30 = vld [vmem:[#allocation27_spill] sm:$0xff] }
 0x497   :  { %6169 = vmatprep.subr.bf16.mxu0 %v6168_v55  ;;  %v6621_v18 = vunpack.i.h.bf16 %v6619_v61  ;;  %v6620_v13 = vunpack.i.l.bf16 %v6619_v61 }
 0x498   :  { %v6188_v52 = vpack.c.bf16 %v6616_v4, %v6615_v26 }
 0x499   :  { %5634 = vmatmul.mubr.f32.gmra.mrb[22].mxu0 %v1459_v15  ;;  %v6192_v7 = vpack.c.bf16 %v6621_v18, %v6620_v13  ;;  %v6645_v15 = vunpack.i.l.bf16 %v6644_v23 }
 0x49a   :  { %6171 = vmatpush3.bf16.msra.mxu0 %v6168_v55  ;;  %5636 = vmatprep.mubr.f32.mxu0 %v1460_v0  ;;  %v6629_v19 = vpop.permute.xlu0 %6628  ;;  %v6646_v55 = vunpack.i.h.bf16 %v6644_v23 }
 0x49b   :  { %6173 = vmatprep.subr.bf16.mxu0 %v6172_v45  ;;  %v6630_v14 = vunpack.i.l.bf16 %v6629_v19 }
 0x49d   :  { %5637 = vmatmul.mubr.f32.gmra.mrb[24].mxu0 %v1461_v62 }
 0x49e   :  { %6175 = vmatpush3.bf16.msra.mxu0 %v6172_v45  ;;  %5639 = vmatprep.mubr.f32.mxu0 %v1462_v37  ;;  %v6639_v50 = vpop.permute.xlu0 %6638  ;;  %v10425_v45 = vld [vmem:[#allocation34_spill] sm:$0xff]  ;;  %v10430_v37 = vld [vmem:[#allocation36_spill] sm:$0xff] }
 0x49f   :  { %6177 = vmatprep.subr.bf16.mxu0 %v6176_v12  ;;  %v6640_v10 = vunpack.i.l.bf16 %v6639_v50  ;;  %v2113_v63 = vmul.f32 %v10430_v37, %v10429_v29  ;;  %v8832_v29 = vld [vmem:[%s10249_s8] ss:$0 sm:$0xff] }
 0x4a1   :  { %5640 = vmatmul.mubr.f32.gmra.mrb[26].mxu0 %v1463_v34  ;;  %v10434_v34 = vld [vmem:[#allocation17_spill] sm:$0xff] }
 0x4a2   :  { %6179 = vmatpush3.bf16.msra.mxu0 %v6176_v12  ;;  %5642 = vmatprep.mubr.f32.mxu0 %v1464_v22  ;;  %v6649_v0 = vpop.permute.xlu0 %6648  ;;  %v10438_v22 = vld [vmem:[#allocation31_spill] sm:$0xff] }
 0x4a3   :  { %6181 = vmatprep.subr.bf16.mxu0 %v6180_v3  ;;  %v6650_v47 = vunpack.i.l.bf16 %v6649_v0 }
 0x4a5   :  { %5643 = vmatmul.mubr.f32.gmra.mrb[28].mxu0 %v8685_v43  ;;  %v6625_v43 = vunpack.i.l.bf16 %v6624_v39 }
 0x4a6   :  { %6183 = vmatpush3.bf16.msra.mxu0 %v6180_v3  ;;  %5645 = vmatprep.mubr.f32.mxu0 %v8698_v8  ;;  %v6631_v8 = vunpack.i.h.bf16 %v6629_v19  ;;  %v8780_v3 = vld [vmem:[%s10247_s6] ss:$0 sm:$0xff] }
 0x4a7   :  { %6185 = vmatprep.subr.bf16.mxu0 %v6184_v54 }
 0x4a8   :  { %v6200_v57 = vpack.c.bf16 %v6631_v8, %v6630_v14 }
 0x4a9   :  { %5646 = vmatmul.mubr.f32.gmra.mrb[30].mxu0 %v8708_v6  ;;  %v6196_v6 = vpack.c.bf16 %v6626_v20, %v6625_v43 }
 0x4aa   :  { %6187 = vmatpush3.bf16.msra.mxu0 %v6184_v54  ;;  %5680 = vmatprep.mubr.f32.mxu0 %v1870_v1 }
 0x4ab   :  { %6189 = vmatprep.subr.bf16.mxu0 %v6188_v52 }
 0x4ad   :  { %5681 = vmatmul.mubr.f32.vlgmr.msra.gmra.mrb[16].mxu0 %v10421_v44 }
 0x4ae   :  { %6191 = vmatpush3.bf16.msra.mxu0 %v6188_v52  ;;  %5683 = vmatprep.mubr.f32.mxu0 %v8572_v49  ;;  %v6641_v49 = vunpack.i.h.bf16 %v6639_v50 }
 0x4af   :  { %6193 = vmatprep.subr.bf16.mxu0 %v6192_v7 }
 0x4b1   :  { %5684 = vmatmul.mubr.f32.gmra.mrb[18].mxu0 %v10422_v24 }
 0x4b2   :  { %6195 = vmatpush3.bf16.msra.mxu0 %v6192_v7  ;;  %5686 = vmatprep.mubr.f32.mxu0 %v10423_v59 }
 0x4b3   :  { %6197 = vmatprep.subr.bf16.mxu0 %v6196_v6 }
 0x4b5   :  { %5687 = vmatmul.mubr.f32.gmra.mrb[20].mxu0 %v8596_v38  ;;  %v6208_v38 = vpack.c.bf16 %v6641_v49, %v6640_v10 }
 0x4b6   :  { %6199 = vmatpush3.bf16.msra.mxu0 %v6196_v6  ;;  %5689 = vmatprep.mubr.f32.mxu0 %v8600_v40  ;;  %v6651_v40 = vunpack.i.h.bf16 %v6649_v0 }
 0x4b7   :  { %6201 = vmatprep.subr.bf16.mxu0 %v6200_v57 }
 0x4b9   :  { %5690 = vmatmul.mubr.f32.gmra.mrb[22].mxu0 %v8605_v25  ;;  %v6212_v25 = vpack.c.bf16 %v6646_v55, %v6645_v15 }
 0x4ba   :  { %6203 = vmatpush3.bf16.msra.mxu0 %v6200_v57  ;;  %5692 = vmatprep.mubr.f32.mxu0 %v8609_v60  ;;  %v6216_v60 = vpack.c.bf16 %v6651_v40, %v6650_v47 }
 0x4bb   :  { %6205 = vmatprep.subr.bf16.mxu0 %v6204_v53 }
 0x4bd   :  { %5693 = vmatmul.mubr.f32.gmra.mrb[24].mxu0 %v8617_v5  ;;  %v10426_v5 = vld [vmem:[#allocation25_spill] sm:$0xff] }
 0x4be   :  { %6207 = vmatpush3.bf16.msra.mxu0 %v6204_v53  ;;  %5695 = vmatprep.mubr.f32.mxu0 %v10424_v46  ;;  %v2111_v48 = vmul.f32 %v10426_v5, %v10419_v35 }
 0x4bf   :  { %6209 = vmatprep.subr.bf16.mxu0 %v6208_v38 }
 0x4c1   :  { %5696 = vmatmul.mubr.f32.gmra.mrb[26].mxu0 %v8631_v51  ;;  %v10427_v51 = vld [vmem:[#allocation41_spill] sm:$0xff] }
 0x4c2   :  { %6211 = vmatpush3.bf16.msra.mxu0 %v6208_v38  ;;  %5698 = vmatprep.mubr.f32.mxu0 %v10425_v45  ;;  %v2112_v62 = vmul.f32 %v10428_v17, %v10427_v51 }
 0x4c3   :  { %6213 = vmatprep.subr.bf16.mxu0 %v6212_v25 }
 0x4c5   :  { %5699 = vmatmul.mubr.f32.gmra.mrb[28].mxu0 %v8688_v31  ;;  %v10431_v31 = vld [vmem:[#allocation13_spill] sm:$0xff] }
 0x4c6   :  { %6215 = vmatpush3.bf16.msra.mxu0 %v6212_v25  ;;  %5701 = vmatprep.mubr.f32.mxu0 %v8701_v41  ;;  %v2114_v12 = vmul.f32 %v10432_v28, %v10431_v31  ;;  %v10433_v41 = vld [vmem:[#allocation33_spill] sm:$0xff] }
 0x4c7   :  { %6217 = vmatprep.subr.bf16.mxu0 %v6216_v60 }
 0x4c9   :  { %5702 = vmatmul.mubr.f32.gmra.mrb[30].mxu0 %v8711_v27  ;;  %v10436_v27 = vld [vmem:[#allocation18_spill] sm:$0xff] }
 0x4ca   :  { %6219 = vmatpush3.bf16.msra.mxu0 %v6216_v60  ;;  %5736 = vmatprep.mubr.f32.mxu0 %v2111_v48 }
 0x4cd   :  { %5737 = vmatmul.mubr.f32.vlgmr.msra.gmra.mrb[16].mxu0 %v2112_v62 }
 0x4ce   :  { %5739 = vmatprep.mubr.f32.mxu0 %v2113_v63 }
 0x4d1   :  { %5740 = vmatmul.mubr.f32.gmra.mrb[18].mxu0 %v2114_v12 }
 0x4d2   :  { %5742 = vmatprep.mubr.f32.mxu0 %v10433_v41 }
 0x4d5   :  { %5743 = vmatmul.mubr.f32.gmra.mrb[20].mxu0 %v10434_v34 }
 0x4d6   :  { %5745 = vmatprep.mubr.f32.mxu0 %v10435_v30 }
 0x4d9   :  { %5746 = vmatmul.mubr.f32.gmra.mrb[22].mxu0 %v10436_v27 }
 0x4da   :  { %5748 = vmatprep.mubr.f32.mxu0 %v10437_v33 }
 0x4dd   :  { %5749 = vmatmul.mubr.f32.gmra.mrb[24].mxu0 %v10438_v22 }
 0x4de   :  { %5751 = vmatprep.mubr.f32.mxu0 %v10439_v32 }
 0x4e1   :  { %5752 = vmatmul.mubr.f32.gmra.mrb[26].mxu0 %v10440_v42 }
 0x4e2   :  { %5754 = vmatprep.mubr.f32.mxu0 %v8678_v36 }
 0x4e5   :  { %5755 = vmatmul.mubr.f32.gmra.mrb[28].mxu0 %v8691_v21  ;;  %v10441_v21 = vmov 0.0  }
 0x4e6   :  { %5757 = vmatprep.mubr.f32.mxu0 %v8704_v11 }
 0x4e9   :  { %5758 = vmatmul.mubr.f32.gmra.mrb[30].mxu0 %v8714_v9 }
 0x5a0   :  { %v5738_v4 = vpop.f32.mrb[16].mxu0 }
 0x5a1   :  { %v2241_v26 = vpop.f32.mrb[17].mxu0  ;;  %v2344_v61 = vadd.f32 %v5738_v4, %v8780_v3 }
 0x5a2   :  { %v2343_v54 = vadd.f32 %v8780_v3, %v2241_v26 }
 0x5a3   :  { %v2360_v11 = vmax.f32 %v2344_v61, 0.0 }
 0x5a4   :  { %v2359_v35 = vmax.f32 %v2343_v54, 0.0  ;;  %v5741_v58 = vpop.f32.mrb[18].mxu0 }
 0x5a5   :  { %v2251_v36 = vpop.f32.mrb[19].mxu0  ;;  %v2346_v13 = vadd.f32 %v5741_v58, %v8780_v3 }
 0x5a6   :  { %5105 = vmatmul.mubr.msk.f32.vlgmr.msra.gmra.mrb[32].mxu1 %vm351_vm1, %v2359_v35  ;;  %v2345_v9 = vadd.f32 %v8780_v3, %v2251_v36 }
 0x5a7   :  { %2501 = vmatprep.mubr.f32.mxu1 %v10441_v21  ;;  %v2362_v43 = vmax.f32 %v2346_v13, 0.0 }
 0x5a8   :  { %v5744_v1 = vpop.f32.mrb[20].mxu0  ;;  %v2361_v52 = vmax.f32 %v2345_v9, 0.0 }
 0x5a9   :  { %v2261_v18 = vpop.f32.mrb[21].mxu0  ;;  %v2348_v8 = vadd.f32 %v5744_v1, %v8780_v3 }
 0x5aa   :  { %5106 = vmatmul.mubr.msk.f32.gmra.mrb[34].mxu1 %vm351_vm1, %v2360_v11  ;;  %v2347_v44 = vadd.f32 %v8780_v3, %v2261_v18 }
 0x5ab   :  { %2507 = vmatprep.mubr.f32.mxu1 %v10441_v21  ;;  %v2364_v56 = vmax.f32 %v2348_v8, 0.0 }
 0x5ac   :  { %v5747_v39 = vpop.f32.mrb[22].mxu0  ;;  %v2363_v14 = vmax.f32 %v2347_v44, 0.0 }
 0x5ad   :  { %v2271_v20 = vpop.f32.mrb[23].mxu0  ;;  %v2350_v57 = vadd.f32 %v5747_v39, %v8780_v3 }
 0x5ae   :  { %5107 = vmatmul.mubr.msk.f32.gmra.mrb[36].mxu1 %vm351_vm1, %v2361_v52  ;;  %v2349_v59 = vadd.f32 %v8780_v3, %v2271_v20 }
 0x5af   :  { %2513 = vmatprep.mubr.f32.mxu1 %v10441_v21  ;;  %v2366_v53 = vmax.f32 %v2350_v57, 0.0 }
 0x5b0   :  { %v5750_v7 = vpop.f32.mrb[24].mxu0  ;;  %v2365_v50 = vmax.f32 %v2349_v59, 0.0 }
 0x5b1   :  { %v2281_v19 = vpop.f32.mrb[25].mxu0  ;;  %v2352_v55 = vadd.f32 %v5750_v7, %v8780_v3 }
 0x5b2   :  { %5108 = vmatmul.mubr.msk.f32.gmra.mrb[38].mxu1 %vm351_vm1, %v2362_v43  ;;  %v2351_v23 = vadd.f32 %v8780_v3, %v2281_v19 }
 0x5b3   :  { %2519 = vmatprep.mubr.f32.mxu1 %v10441_v21  ;;  %v2368_v38 = vmax.f32 %v2352_v55, 0.0 }
 0x5b4   :  { %v5753_v24 = vpop.f32.mrb[26].mxu0  ;;  %v2367_v15 = vmax.f32 %v2351_v23, 0.0 }
 0x5b5   :  { %v2291_v6 = vpop.f32.mrb[27].mxu0  ;;  %v2354_v46 = vadd.f32 %v5753_v24, %v8780_v3 }
 0x5b6   :  { %5109 = vmatmul.mubr.msk.f32.gmra.mrb[40].mxu1 %vm351_vm1, %v2363_v14  ;;  %v2353_v0 = vadd.f32 %v8780_v3, %v2291_v6 }
 0x5b7   :  { %2525 = vmatprep.mubr.f32.mxu1 %v10441_v21  ;;  %v2370_v47 = vmax.f32 %v2354_v46, 0.0 }
 0x5b8   :  { %v5756_v16 = vpop.f32.mrb[28].mxu0  ;;  %v2369_v40 = vmax.f32 %v2353_v0, 0.0 }
 0x5b9   :  { %v2301_v2 = vpop.f32.mrb[29].mxu0  ;;  %v2356_v45 = vadd.f32 %v5756_v16, %v8780_v3 }
 0x5ba   :  { %5110 = vmatmul.mubr.msk.f32.gmra.mrb[42].mxu1 %vm351_vm1, %v2364_v56  ;;  %v2355_v25 = vadd.f32 %v8780_v3, %v2301_v2 }
 0x5bb   :  { %2531 = vmatprep.mubr.f32.mxu1 %v10441_v21  ;;  %v2372_v5 = vmax.f32 %v2356_v45, 0.0 }
 0x5bc   :  { %v5759_v49 = vpop.f32.mrb[30].mxu0  ;;  %v2371_v60 = vmax.f32 %v2355_v25, 0.0 }
 0x5bd   :  { %v2311_v10 = vpop.f32.mrb[31].mxu0  ;;  %v2358_v51 = vadd.f32 %v5759_v49, %v8780_v3 }
 0x5be   :  { %5111 = vmatmul.mubr.msk.f32.gmra.mrb[44].mxu1 %vm351_vm1, %v2365_v50  ;;  %v2357_v48 = vadd.f32 %v8780_v3, %v2311_v10 }
 0x5bf   :  { %2537 = vmatprep.mubr.f32.mxu1 %v10441_v21  ;;  %v2374_v62 = vmax.f32 %v2358_v51, 0.0 }
 0x5c0   :  { %v2373_v17 = vmax.f32 %v2357_v48, 0.0 }
 0x5c2   :  { %5112 = vmatmul.mubr.msk.f32.gmra.mrb[46].mxu1 %vm351_vm1, %v2366_v53 }
 0x5c3   :  { %2543 = vmatprep.mubr.f32.mxu1 %v10441_v21 }
 0x5c6   :  { %5113 = vmatmul.mubr.msk.f32.gmra.mrb[48].mxu1 %vm351_vm1, %v2367_v15 }
 0x5c7   :  { %2549 = vmatprep.mubr.f32.mxu1 %v10441_v21 }
 0x5ca   :  { %5114 = vmatmul.mubr.msk.f32.gmra.mrb[50].mxu1 %vm351_vm1, %v2368_v38 }
 0x5cb   :  { %2555 = vmatprep.mubr.f32.mxu1 %v10441_v21 }
 0x5ce   :  { %5115 = vmatmul.mubr.msk.f32.gmra.mrb[52].mxu1 %vm351_vm1, %v2369_v40 }
 0x5cf   :  { %2561 = vmatprep.mubr.f32.mxu1 %v10441_v21 }
 0x5d2   :  { %5116 = vmatmul.mubr.msk.f32.gmra.mrb[54].mxu1 %vm351_vm1, %v2370_v47 }
 0x5d3   :  { %2567 = vmatprep.mubr.f32.mxu1 %v10441_v21 }
 0x5d6   :  { %5117 = vmatmul.mubr.msk.f32.gmra.mrb[56].mxu1 %vm351_vm1, %v2371_v60 }
 0x5d7   :  { %2573 = vmatprep.mubr.f32.mxu1 %v10441_v21 }
 0x5da   :  { %5118 = vmatmul.mubr.msk.f32.gmra.mrb[58].mxu1 %vm351_vm1, %v2372_v5 }
 0x5db   :  { %2579 = vmatprep.mubr.f32.mxu1 %v10441_v21 }
 0x5de   :  { %5119 = vmatmul.mubr.msk.f32.gmra.mrb[60].mxu1 %vm351_vm1, %v2373_v17 }
 0x5df   :  { %2585 = vmatprep.mubr.f32.mxu1 %v10441_v21 }
 0x5e2   :  { %5120 = vmatmul.mubr.msk.f32.gmra.mrb[62].mxu1 %vm351_vm1, %v2374_v62 }
 0x679   :  { %v2497_v37 = vpop.f32.mrb[32].mxu1 }
 0x67a   :  { %v8834_v63 = vpop.f32.mrb[33].mxu1 }
 0x67b   :  { %v8838_v31 = vadd.f32 %v8832_v29, %v8834_v63  ;;  %v2679_v28 = vsel %vm584_vm2, %v8834_v63, inf }
 0x67c   :  { %2680 = vmin.xlane.f32.xlu0 %v2679_v28 }
 0x67d   :  { %v2503_v12 = vpop.f32.mrb[34].mxu1  ;;  %v2615_v41 = vsel %vm584_vm2, %v8838_v31, -inf }
 0x67e   :  { %v8844_v34 = vpack.i.bf16 %v2503_v12, %v2497_v37  ;;  %2616 = vmax.xlane.f32.xlu1 %v2615_v41  ;;  %v8846_v30 = vpop.f32.mrb[35].mxu1  ;;  %v8848_v27 = vpack.c.bf16 %v2503_v12, %v2497_v37 }
 0x67f   :  { %v2682_v22 = vsel %vm584_vm2, %v8846_v30, inf  ;;  %v8936_v0 = vadd.f32 %v8832_v29, %v8846_v30 }
 0x681   :  { %v2509_v33 = vpop.f32.mrb[36].mxu1  ;;  %v2618_v60 = vsel %vm584_vm2, %v8936_v0, -inf }
 0x682   :  { %2683 = vmin.xlane.f32.xlu1 %v2682_v22  ;;  %v8852_v32 = vpop.f32.mrb[37].mxu1 }
 0x683   :  { %v8958_v17 = vadd.f32 %v8832_v29, %v8852_v32  ;;  %v2685_v62 = vsel %vm584_vm2, %v8852_v32, inf }
 0x685   :  { %v2515_v42 = vpop.f32.mrb[38].mxu1 }
 0x686   :  { %v8854_v3 = vpack.i.bf16 %v2515_v42, %v2509_v33  ;;  %v8856_v4 = vpop.f32.mrb[39].mxu1  ;;  %v8858_v26 = vpack.c.bf16 %v2515_v42, %v2509_v33 }
 0x687   :  { %v8964_v37 = vadd.f32 %v8832_v29, %v8856_v4  ;;  %v2688_v12 = vsel %vm584_vm2, %v8856_v4, inf }
 0x688   :  { %10442 = vst [vmem:[#allocation23_spill] sm:$0xff] %v8858_v26 }
 0x689   :  { %v2521_v54 = vpop.f32.mrb[40].mxu1 }
 0x68a   :  { %v8860_v61 = vpop.f32.mrb[41].mxu1 }
 0x68b   :  { %v8864_v35 = vadd.f32 %v8832_v29, %v8860_v61 }
 0x68d   :  { %v2527_v58 = vpop.f32.mrb[42].mxu1 }
 0x68e   :  { %v8866_v36 = vpack.i.bf16 %v2527_v58, %v2521_v54  ;;  %v8868_v21 = vpop.f32.mrb[43].mxu1  ;;  %v8870_v11 = vpack.c.bf16 %v2527_v58, %v2521_v54  ;;  %v2621_v54 = vsel %vm584_vm2, %v8958_v17, -inf  ;;  %v2624_v58 = vsel %vm584_vm2, %v8964_v37, -inf }
 0x68f   :  { %v8874_v9 = vadd.f32 %v8832_v29, %v8868_v21 }
 0x690   :  { %10443 = vst [vmem:[#allocation24_spill] sm:$0xff] %v8870_v11 }
 0x691   :  { %v2533_v1 = vpop.f32.mrb[44].mxu1 }
 0x692   :  { %6653 = vrot.lane.b32.xlu0 %v8844_v34, %s7236_s5  ;;  %v8878_v18 = vpop.f32.mrb[45].mxu1 }
 0x693   :  { %v8882_v13 = vadd.f32 %v8832_v29, %v8878_v18  ;;  %6658 = vrot.lane.b32.xlu1 %v8854_v3, %s7236_s5 }
 0x695   :  { %v2539_v52 = vpop.f32.mrb[46].mxu1 }
 0x696   :  { %v8886_v39 = vpack.i.bf16 %v2539_v52, %v2533_v1  ;;  %v8888_v20 = vpop.f32.mrb[47].mxu1  ;;  %v8890_v43 = vpack.c.bf16 %v2539_v52, %v2533_v1  ;;  %v2691_v1 = vsel %vm584_vm2, %v8860_v61, inf  ;;  %v2627_v52 = vsel %vm584_vm2, %v8864_v35, -inf }
 0x697   :  { %v8894_v44 = vadd.f32 %v8832_v29, %v8888_v20 }
 0x698   :  { %10444 = vst [vmem:[#allocation39_spill] sm:$0xff] %v8890_v43 }
 0x699   :  { %v2545_v7 = vpop.f32.mrb[48].mxu1 }
 0x69a   :  { %v8896_v19 = vpop.f32.mrb[49].mxu1 }
 0x69b   :  { %v8900_v8 = vadd.f32 %v8832_v29, %v8896_v19 }
 0x69d   :  { %v2551_v14 = vpop.f32.mrb[50].mxu1 }
 0x69e   :  { %v8902_v24 = vpack.i.bf16 %v2551_v14, %v2545_v7  ;;  %v8904_v6 = vpop.f32.mrb[51].mxu1  ;;  %v8906_v56 = vpack.c.bf16 %v2551_v14, %v2545_v7  ;;  %v2633_v7 = vsel %vm584_vm2, %v8882_v13, -inf  ;;  %v2703_v14 = vsel %vm584_vm2, %v8896_v19, inf }
 0x69f   :  { %v8910_v59 = vadd.f32 %v8832_v29, %v8904_v6 }
 0x6a0   :  { %10445 = vst [vmem:[#allocation38_spill] sm:$0xff] %v8906_v56 }
 0x6a1   :  { %v2557_v16 = vpop.f32.mrb[52].mxu1 }
 0x6a2   :  { %v8912_v2 = vpop.f32.mrb[53].mxu1 }
 0x6a3   :  { %v8916_v57 = vadd.f32 %v8832_v29, %v8912_v2 }
 0x6a5   :  { %v2563_v50 = vpop.f32.mrb[54].mxu1 }
 0x6a6   :  { %v8918_v49 = vpack.i.bf16 %v2563_v50, %v2557_v16  ;;  %v8920_v10 = vpop.f32.mrb[55].mxu1  ;;  %v8922_v53 = vpack.c.bf16 %v2563_v50, %v2557_v16  ;;  %v2639_v16 = vsel %vm584_vm2, %v8900_v8, -inf  ;;  %v2709_v50 = vsel %vm584_vm2, %v8912_v2, inf }
 0x6a7   :  { %v8926_v23 = vadd.f32 %v8832_v29, %v8920_v10 }
 0x6a8   :  { %10446 = vst [vmem:[#allocation14_spill] sm:$0xff] %v8922_v53 }
 0x6a9   :  { %v2569_v55 = vpop.f32.mrb[56].mxu1 }
 0x6aa   :  { %v8928_v15 = vpop.f32.mrb[57].mxu1 }
 0x6ab   :  { %v8932_v38 = vadd.f32 %v8832_v29, %v8928_v15 }
 0x6ad   :  { %v2575_v46 = vpop.f32.mrb[58].mxu1 }
 0x6ae   :  { %v8938_v40 = vpack.i.bf16 %v2575_v46, %v2569_v55  ;;  %v8940_v47 = vpop.f32.mrb[59].mxu1  ;;  %v8942_v25 = vpack.c.bf16 %v2575_v46, %v2569_v55  ;;  %v2645_v55 = vsel %vm584_vm2, %v8916_v57, -inf  ;;  %v2715_v46 = vsel %vm584_vm2, %v8928_v15, inf }
 0x6af   :  { %v8946_v45 = vadd.f32 %v8832_v29, %v8940_v47 }
 0x6b0   :  { %10447 = vst [vmem:[#allocation15_spill] sm:$0xff] %v8942_v25 }
 0x6b1   :  { %2619 = vmax.xlane.f32.xlu0 %v2618_v60  ;;  %v2581_v5 = vpop.f32.mrb[60].mxu1  ;;  %v2651_v60 = vsel %vm584_vm2, %v8932_v38, -inf }
 0x6b2   :  { %v8950_v48 = vpop.f32.mrb[61].mxu1 }
 0x6b3   :  { %v8954_v51 = vadd.f32 %v8832_v29, %v8950_v48 }
 0x6b5   :  { %2686 = vmin.xlane.f32.xlu0 %v2685_v62  ;;  %v2587_v28 = vpop.f32.mrb[62].mxu1  ;;  %v2657_v62 = vsel %vm584_vm2, %v8954_v51, -inf }
 0x6b6   :  { %v8968_v41 = vpack.i.bf16 %v2587_v28, %v2581_v5  ;;  %v8970_v33 = vpop.f32.mrb[63].mxu1  ;;  %v8972_v22 = vpack.c.bf16 %v2587_v28, %v2581_v5  ;;  %v2721_v5 = vsel %vm584_vm2, %v8950_v48, inf  ;;  %v2694_v28 = vsel %vm584_vm2, %v8868_v21, inf }
 0x6b7   :  { %v8976_v42 = vadd.f32 %v8832_v29, %v8970_v33  ;;  %2689 = vmin.xlane.f32.xlu1 %v2688_v12  ;;  %v2697_v29 = vsel %vm584_vm2, %v8878_v18, inf  ;;  %v2630_v12 = vsel %vm584_vm2, %v8874_v9, -inf }
 0x6b8   :  { %10448 = vst [vmem:[#allocation16_spill] sm:$0xff] %v8972_v22 }
 0x6b9   :  { %2622 = vmax.xlane.f32.xlu0 %v2621_v54  ;;  %v2700_v54 = vsel %vm584_vm2, %v8888_v20, inf }
 0x6bb   :  { %2625 = vmax.xlane.f32.xlu1 %v2624_v58  ;;  %v2636_v58 = vsel %vm584_vm2, %v8894_v44, -inf }
 0x6bd   :  { %2692 = vmin.xlane.f32.xlu0 %v2691_v1  ;;  %v2706_v1 = vsel %vm584_vm2, %v8904_v6, inf }
 0x6c1   :  { %2628 = vmax.xlane.f32.xlu0 %v2627_v52  ;;  %v2642_v52 = vsel %vm584_vm2, %v8910_v59, -inf }
 0x6c5   :  { %2698 = vmin.xlane.f32.xlu0 %v2697_v29  ;;  %v2712_v29 = vsel %vm584_vm2, %v8920_v10, inf }
 0x6c9   :  { %2634 = vmax.xlane.f32.xlu0 %v2633_v7 }
 0x6cc   :  { %6663 = vrot.lane.b32.xlu1 %v8866_v36, %s7236_s5 }
 0x6cd   :  { %2704 = vmin.xlane.f32.xlu0 %v2703_v14 }
 0x6d1   :  { %2640 = vmax.xlane.f32.xlu0 %v2639_v16 }
 0x6d5   :  { %2710 = vmin.xlane.f32.xlu0 %v2709_v50  ;;  %v2648_v50 = vsel %vm584_vm2, %v8926_v23, -inf }
 0x6d9   :  { %2646 = vmax.xlane.f32.xlu0 %v2645_v55 }
 0x6dd   :  { %2716 = vmin.xlane.f32.xlu0 %v2715_v46 }
 0x6e1   :  { %2652 = vmax.xlane.f32.xlu0 %v2651_v60 }
 0x6e5   :  { %2722 = vmin.xlane.f32.xlu0 %v2721_v5 }
 0x6e9   :  { %2658 = vmax.xlane.f32.xlu0 %v2657_v62  ;;  %v2718_v62 = vsel %vm584_vm2, %v8940_v47, inf }
 0x6f0   :  { %2695 = vmin.xlane.f32.xlu1 %v2694_v28 }
 0x6f4   :  { %2631 = vmax.xlane.f32.xlu1 %v2630_v12 }
 0x6f8   :  { %2701 = vmin.xlane.f32.xlu1 %v2700_v54 }
 0x6fc   :  { %2637 = vmax.xlane.f32.xlu1 %v2636_v58 }
 0x700   :  { %2707 = vmin.xlane.f32.xlu1 %v2706_v1 }
 0x704   :  { %2643 = vmax.xlane.f32.xlu1 %v2642_v52  ;;  %v2724_v52 = vsel %vm584_vm2, %v8970_v33, inf }
 0x708   :  { %2713 = vmin.xlane.f32.xlu1 %v2712_v29  ;;  %v2660_v29 = vsel %vm584_vm2, %v8976_v42, -inf }
 0x709   :  { %v2681_v7 = vpop.xlane.xlu0 %2680 }
 0x70a   :  { %v2727_v14 = vsub.f32 %v8834_v63, %v2681_v7  ;;  %v2654_v63 = vsel %vm584_vm2, %v8946_v45, -inf  ;;  %v10449_v7 = vmov 2  }
 0x70b   :  { %v9023_v16 = vpop.xlane.xlu1 %2616 }
 0x70c   :  { %2649 = vmax.xlane.f32.xlu1 %v2648_v50  ;;  %2781 = vperm.xlu0 %6667, %v2727_v14   ;;  %v10450_v50 = vmov 3  }
 0x70d   :  { %v6654_v55 = vpop.permute.xlu0 %6653 }
 0x70e   :  { %v6656_v46 = vunpack.i.h.bf16 %v6654_v55  ;;  %v6655_v60 = vunpack.i.l.bf16 %v6654_v55 }
 0x70f   :  { %v2684_v5 = vpop.xlane.xlu1 %2683 }
 0x710   :  { %2719 = vmin.xlane.f32.xlu1 %v2718_v62  ;;  %v6228_v28 = vpack.c.bf16 %v6656_v46, %v6655_v60  ;;  %v9038_v55 = vsub.f32 %v8846_v30, %v2684_v5  ;;  %v10451_v46 = vmov 0   ;;  %v10452_v62 = vmov 1  }
 0x712   :  { %6229 = vmatprep.subr.bf16.mxu1 %v6228_v28 }
 0x713   :  { %6231 = vmatpush3.bf16.msra.mxu1 %v6228_v28  ;;  %v6659_v12 = vpop.permute.xlu1 %6658 }
 0x714   :  { %v6661_v54 = vunpack.i.h.bf16 %v6659_v12  ;;  %v6660_v58 = vunpack.i.l.bf16 %v6659_v12  ;;  %2655 = vmax.xlane.f32.xlu1 %v2654_v63 }
 0x716   :  { %v6232_v1 = vpack.c.bf16 %v6661_v54, %v6660_v58 }
 0x718   :  { %6233 = vmatprep.subr.bf16.mxu1 %v6232_v1  ;;  %2725 = vmin.xlane.f32.xlu1 %v2724_v52 }
 0x719   :  { %6235 = vmatpush3.bf16.msra.mxu1 %v6232_v1 }
 0x71c   :  { %2661 = vmax.xlane.f32.xlu1 %v2660_v29 }
 0x72d   :  { %2928 = vperm.xlu1 %6668, %v2727_v14  }
 0x731   :  { %6669 = vset.pattern.permute.xlu1 %v10449_v7 }
 0x732   :  { %3076 = vperm.xlu1 %6669, %v2727_v14  }
 0x736   :  { %6670 = vset.pattern.permute.xlu1 %v10450_v50 }
 0x737   :  { %3224 = vperm.xlu1 %6670, %v2727_v14  }
 0x73b   :  { %6671 = vset.pattern.permute.xlu1 %v10451_v46 }
 0x73c   :  { %2786 = vperm.xlu1 %6671, %v9038_v55  }
 0x73e   :  { %v9042_v60 = vpop.xlane.xlu0 %2619 }
 0x740   :  { %6672 = vset.pattern.permute.xlu1 %v10452_v62 }
 0x741   :  { %2932 = vperm.xlu1 %6672, %v9038_v55  }
 0x742   :  { %v2687_v28 = vpop.xlane.xlu0 %2686 }
 0x743   :  { %v2729_v5 = vsub.f32 %v8852_v32, %v2687_v28 }
 0x744   :  { %v2690_v12 = vpop.xlane.xlu1 %2689 }
 0x745   :  { %v9047_v63 = vsub.f32 %v8856_v4, %v2690_v12  ;;  %6673 = vset.pattern.permute.xlu1 %v10449_v7 }
 0x746   :  { %v9050_v14 = vpop.xlane.xlu0 %2622  ;;  %3080 = vperm.xlu1 %6673, %v9038_v55  }
 0x747   :  { %2796 = vperm.xlu0 %6667, %v9047_v63  }
 0x748   :  { %v9054_v30 = vpop.xlane.xlu1 %2625 }
 0x74a   :  { %v2693_v54 = vpop.xlane.xlu0 %2692  ;;  %6674 = vset.pattern.permute.xlu1 %v10451_v46 }
 0x74b   :  { %v2731_v58 = vsub.f32 %v8860_v61, %v2693_v54  ;;  %2791 = vperm.xlu1 %6674, %v2729_v5  }
 0x74c   :  { %v6664_v4 = vpop.permute.xlu1 %6663 }
 0x74d   :  { %v6666_v1 = vunpack.i.h.bf16 %v6664_v4  ;;  %v6665_v52 = vunpack.i.l.bf16 %v6664_v4  ;;  %2801 = vperm.xlu0 %6667, %v2731_v58  }
 0x74e   :  { %v9059_v29 = vpop.xlane.xlu0 %2628 }
 0x74f   :  { %6675 = vset.pattern.permute.xlu1 %v10452_v62  ;;  %v6236_v12 = vpack.c.bf16 %v6666_v1, %v6665_v52 }
 0x750   :  { %2936 = vperm.xlu1 %6675, %v2729_v5  }
 0x751   :  { %6237 = vmatprep.subr.bf16.mxu1 %v6236_v12 }
 0x752   :  { %6239 = vmatpush3.bf16.msra.mxu1 %v6236_v12  ;;  %v2699_v22 = vpop.xlane.xlu0 %2698 }
 0x754   :  { %6676 = vset.pattern.permute.xlu1 %v10449_v7 }
 0x755   :  { %3084 = vperm.xlu1 %6676, %v2729_v5  }
 0x756   :  { %v9063_v32 = vpop.xlane.xlu0 %2634 }
 0x759   :  { %6677 = vset.pattern.permute.xlu1 %v10450_v50 }
 0x75a   :  { %v2705_v61 = vpop.xlane.xlu0 %2704  ;;  %3232 = vperm.xlu1 %6677, %v2729_v5  }
 0x75e   :  { %v9066_v28 = vpop.xlane.xlu0 %2640  ;;  %6678 = vset.pattern.permute.xlu1 %v10452_v62 }
 0x75f   :  { %2940 = vperm.xlu1 %6678, %v9047_v63  }
 0x762   :  { %v9070_v54 = vpop.xlane.xlu0 %2710 }
 0x763   :  { %6679 = vset.pattern.permute.xlu1 %v10449_v7 }
 0x764   :  { %3088 = vperm.xlu1 %6679, %v9047_v63  }
 0x766   :  { %v9074_v4 = vpop.xlane.xlu0 %2646 }
 0x768   :  { %6680 = vset.pattern.permute.xlu1 %v10452_v62 }
 0x769   :  { %2944 = vperm.xlu1 %6680, %v2731_v58  }
 0x76a   :  { %v2717_v1 = vpop.xlane.xlu0 %2716 }
 0x76b   :  { %v9078_v5 = vsub.f32 %v8928_v15, %v2717_v1  ;;  %v2733_v15 = vsub.f32 %v8878_v18, %v2699_v22 }
 0x76d   :  { %6681 = vset.pattern.permute.xlu1 %v10449_v7 }
 0x76e   :  { %3092 = vperm.xlu1 %6681, %v2731_v58   ;;  %v9092_v1 = vpop.xlane.xlu0 %2652 }
 0x772   :  { %6682 = vset.pattern.permute.xlu1 %v10450_v50  ;;  %v2723_v18 = vpop.xlane.xlu0 %2722 }
 0x773   :  { %3240 = vperm.xlu1 %6682, %v2731_v58   ;;  %v9104_v56 = vsub.f32 %v8950_v48, %v2723_v18 }
 0x777   :  { %6683 = vset.pattern.permute.xlu1 %v10452_v62 }
 0x77d   :  { %v2696_v52 = vpop.xlane.xlu1 %2695 }
 0x77e   :  { %v9084_v12 = vsub.f32 %v8868_v21, %v2696_v52  ;;  %v9100_v52 = vsub.f32 %v8896_v19, %v2705_v61 }
 0x780   :  { %2806 = vperm.xlu0 %6667, %v9084_v12   ;;  %2948 = vperm.xlu1 %6683, %v9084_v12  }
 0x781   :  { %v9088_v25 = vpop.xlane.xlu1 %2631 }
 0x784   :  { %2811 = vperm.xlu0 %6667, %v2733_v15   ;;  %6684 = vset.pattern.permute.xlu1 %v10449_v7 }
 0x785   :  { %v2702_v58 = vpop.xlane.xlu1 %2701  ;;  %3096 = vperm.xlu1 %6684, %v9084_v12  }
 0x786   :  { %v2734_v53 = vsub.f32 %v8888_v20, %v2702_v58 }
 0x788   :  { %2816 = vperm.xlu0 %6667, %v2734_v53  }
 0x789   :  { %v9096_v21 = vpop.xlane.xlu1 %2637  ;;  %6685 = vset.pattern.permute.xlu1 %v10452_v62 }
 0x78a   :  { %2952 = vperm.xlu1 %6685, %v2733_v15  }
 0x78c   :  { %2821 = vperm.xlu0 %6667, %v9100_v52  }
 0x78d   :  { %v2708_v22 = vpop.xlane.xlu1 %2707 }
 0x78e   :  { %6686 = vset.pattern.permute.xlu1 %v10449_v7 }
 0x78f   :  { %3100 = vperm.xlu1 %6686, %v2733_v15  }
 0x790   :  { %2851 = vperm.xlu0 %6667, %v9104_v56  }
 0x791   :  { %v9108_v20 = vpop.xlane.xlu1 %2643 }
 0x793   :  { %6687 = vset.pattern.permute.xlu1 %v10450_v50 }
 0x794   :  { %6705 = vrot.lane.b32.xlu0 %v8886_v39, %s7236_s5  ;;  %3248 = vperm.xlu1 %6687, %v2733_v15   ;;  %v2736_v15 = vsub.f32 %v8904_v6, %v2708_v22  ;;  %v2737_v22 = vsub.f32 %v8912_v2, %v9070_v54 }
 0x795   :  { %v2714_v19 = vpop.xlane.xlu1 %2713 }
 0x798   :  { %6688 = vset.pattern.permute.xlu1 %v10452_v62 }
 0x799   :  { %v9114_v61 = vpop.xlane.xlu1 %2649  ;;  %2956 = vperm.xlu1 %6688, %v2734_v53  }
 0x79d   :  { %v2720_v48 = vpop.xlane.xlu1 %2719  ;;  %6689 = vset.pattern.permute.xlu1 %v10449_v7 }
 0x79e   :  { %3104 = vperm.xlu1 %6689, %v2734_v53  }
 0x7a1   :  { %v9117_v58 = vpop.xlane.xlu1 %2655 }
 0x7a2   :  { %6690 = vset.pattern.permute.xlu1 %v10450_v50 }
 0x7a3   :  { %3252 = vperm.xlu1 %6690, %v2734_v53   ;;  %v2738_v53 = vsub.f32 %v8920_v10, %v2714_v19 }
 0x7a5   :  { %v2726_v18 = vpop.xlane.xlu1 %2725 }
 0x7a6   :  { %v9121_v43 = vsub.f32 %v8970_v33, %v2726_v18  ;;  %v2740_v33 = vsub.f32 %v8940_v47, %v2720_v48 }
 0x7a7   :  { %6691 = vset.pattern.permute.xlu1 %v10452_v62 }
 0x7a8   :  { %2856 = vperm.xlu0 %6667, %v9121_v43   ;;  %2960 = vperm.xlu1 %6691, %v9100_v52  }
 0x7a9   :  { %v9133_v18 = vpop.xlane.xlu1 %2661 }
 0x7ac   :  { %6709 = vset.pattern.permute.xlu0 %v10452_v62  ;;  %6692 = vset.pattern.permute.xlu1 %v10449_v7 }
 0x7ad   :  { %2964 = vperm.xlu0 %6709, %v2736_v15   ;;  %3108 = vperm.xlu1 %6692, %v9100_v52   ;;  %v9136_v6 = vpop.permute.xlu1 %2928 }
 0x7b1   :  { %2972 = vperm.xlu0 %6709, %v2738_v53   ;;  %6693 = vset.pattern.permute.xlu1 %v10451_v46  ;;  %v9143_v10 = vpop.permute.xlu1 %3076 }
 0x7b2   :  { %2826 = vperm.xlu1 %6693, %v2736_v15  }
 0x7b5   :  { %2980 = vperm.xlu0 %6709, %v2740_v33  }
 0x7b6   :  { %6694 = vset.pattern.permute.xlu1 %v10450_v50  ;;  %v9147_v47 = vpop.permute.xlu1 %3224 }
 0x7b7   :  { %3260 = vperm.xlu1 %6694, %v2736_v15  }
 0x7b9   :  { %2984 = vperm.xlu0 %6709, %v9104_v56  }
 0x7bb   :  { %6695 = vset.pattern.permute.xlu1 %v10451_v46  ;;  %v9151_v2 = vpop.permute.xlu1 %2786 }
 0x7bc   :  { %2831 = vperm.xlu1 %6695, %v2737_v22  }
 0x7bd   :  { %2988 = vperm.xlu0 %6709, %v9121_v43  }
 0x7c0   :  { %6696 = vset.pattern.permute.xlu1 %v10452_v62  ;;  %v9155_v54 = vpop.permute.xlu1 %2932 }
 0x7c1   :  { %6710 = vset.pattern.permute.xlu0 %v10449_v7  ;;  %2968 = vperm.xlu1 %6696, %v2737_v22  }
 0x7c2   :  { %3112 = vperm.xlu0 %6710, %v2736_v15  }
 0x7c5   :  { %6697 = vset.pattern.permute.xlu1 %v10449_v7  ;;  %v9161_v19 = vpop.permute.xlu1 %3080 }
 0x7c6   :  { %3120 = vperm.xlu0 %6710, %v2738_v53   ;;  %3116 = vperm.xlu1 %6697, %v2737_v22  }
 0x7ca   :  { %3128 = vperm.xlu0 %6710, %v2740_v33   ;;  %6698 = vset.pattern.permute.xlu1 %v10451_v46  ;;  %v9167_v48 = vpop.permute.xlu1 %2791 }
 0x7cb   :  { %2836 = vperm.xlu1 %6698, %v2738_v53  }
 0x7ce   :  { %3132 = vperm.xlu0 %6710, %v9104_v56  }
 0x7cf   :  { %6699 = vset.pattern.permute.xlu1 %v10450_v50  ;;  %v9172_v15 = vpop.permute.xlu1 %2936 }
 0x7d0   :  { %3268 = vperm.xlu1 %6699, %v2738_v53  }
 0x7d2   :  { %3136 = vperm.xlu0 %6710, %v9121_v43  }
 0x7d4   :  { %6700 = vset.pattern.permute.xlu1 %v10451_v46 }
 0x7d5   :  { %2841 = vperm.xlu1 %6700, %v9078_v5  }
 0x7d6   :  { %6711 = vset.pattern.permute.xlu0 %v10450_v50  ;;  %v9176_v50 = vpop.permute.xlu1 %3084 }
 0x7d7   :  { %3228 = vperm.xlu0 %6711, %v9038_v55   ;;  %v9179_v55 = vpop.xlane.xlu0 %2658 }
 0x7d9   :  { %6701 = vset.pattern.permute.xlu1 %v10452_v62 }
 0x7da   :  { %2976 = vperm.xlu1 %6701, %v9078_v5   ;;  %v9181_v62 = vpop.permute.xlu1 %3232 }
 0x7db   :  { %3236 = vperm.xlu0 %6711, %v9047_v63  }
 0x7de   :  { %6702 = vset.pattern.permute.xlu1 %v10449_v7  ;;  %v9183_v7 = vpop.permute.xlu0 %2781  ;;  %v9186_v63 = vpop.permute.xlu1 %2940 }
 0x7df   :  { %3244 = vperm.xlu0 %6711, %v9084_v12   ;;  %3124 = vperm.xlu1 %6702, %v9078_v5  }
 0x7e2   :  { %v9188_v12 = vpop.permute.xlu0 %2796 }
 0x7e3   :  { %3256 = vperm.xlu0 %6711, %v9100_v52   ;;  %6703 = vset.pattern.permute.xlu1 %v10451_v46  ;;  %v9194_v52 = vpop.permute.xlu1 %3088 }
 0x7e4   :  { %2846 = vperm.xlu1 %6703, %v2740_v33  }
 0x7e6   :  { %v9192_v46 = vpop.permute.xlu0 %2801 }
 0x7e7   :  { %3264 = vperm.xlu0 %6711, %v2737_v22  }
 0x7e8   :  { %v9201_v53 = vpop.permute.xlu1 %2944 }
 0x7eb   :  { %3272 = vperm.xlu0 %6711, %v9078_v5  }
 0x7ef   :  { %3276 = vperm.xlu0 %6711, %v2740_v33   ;;  %v9207_v33 = vpop.permute.xlu1 %3092 }
 0x7f3   :  { %3280 = vperm.xlu0 %6711, %v9104_v56   ;;  %v9219_v26 = vpop.permute.xlu1 %3240 }
 0x7f4   :  { %10457 = vst [vmem:[#allocation28_spill] sm:$0xff] %v9219_v26 }
 0x7f7   :  { %6713 = vrot.lane.b32.xlu0 %v8902_v24, %s7236_s5 }
 0x7fb   :  { %3284 = vperm.xlu0 %6711, %v9121_v43   ;;  %v2663_v43 = vsub.f32 %v8838_v31, %v9023_v16  ;;  %v2665_v31 = vsub.f32 %v8958_v17, %v9050_v14  ;;  %v2667_v17 = vsub.f32 %v8864_v35, %v9059_v29  ;;  %v2670_v35 = vsub.f32 %v8894_v44, %v9096_v21 }
 0x7fc   :  { %v2672_v44 = vsub.f32 %v8910_v59, %v9108_v20  ;;  %v2674_v59 = vsub.f32 %v8926_v23, %v9114_v61  ;;  %v2676_v21 = vsub.f32 %v8946_v45, %v9117_v58 }
 0x7ff   :  { %v9197_v5 = vpop.permute.xlu0 %2806  ;;  %6718 = vrot.lane.b32.xlu0 %v8918_v49, %s7236_s5 }
 0x800   :  { %10453 = vst [vmem:[#allocation40_spill] sm:$0xff] %v9197_v5 }
 0x803   :  { %v9203_v56 = vpop.permute.xlu0 %2811  ;;  %6723 = vrot.lane.b32.xlu0 %v8938_v40, %s7236_s5 }
 0x804   :  { %10454 = vst [vmem:[#allocation22_spill] sm:$0xff] %v9203_v56  ;;  %v2664_v56 = vsub.f32 %v8936_v0, %v9042_v60  ;;  %v2666_v0 = vsub.f32 %v8964_v37, %v9054_v30 }
 0x807   :  { %v9209_v22 = vpop.permute.xlu0 %2816  ;;  %6728 = vrot.lane.b32.xlu0 %v8968_v41, %s7236_s5 }
 0x808   :  { %10455 = vst [vmem:[#allocation32_spill] sm:$0xff] %v9209_v22  ;;  %v9227_v22 = vpop.permute.xlu1 %2948 }
 0x80b   :  { %v9215_v11 = vpop.permute.xlu0 %2821  ;;  %6733 = vrot.lane.b32.xlu0 %v8844_v34, %s7240_s26 }
 0x80c   :  { %10456 = vst [vmem:[#allocation26_spill] sm:$0xff] %v9215_v11  ;;  %v9235_v60 = vpop.permute.xlu1 %3096 }
 0x80d   :  { %2743 = vxpose.xlu1.b32.start [1/16] (narrow) %v2663_v43, 8 }
 0x80f   :  { %v9223_v5 = vpop.permute.xlu0 %2851  ;;  %6743 = vrot.lane.b32.xlu0 %v8866_v36, %s7240_s26 }
 0x810   :  { %10458 = vst [vmem:[#allocation30_spill] sm:$0xff] %v9223_v5  ;;  %v9243_v14 = vpop.permute.xlu1 %2952 }
 0x811   :  { %2744 = vxpose.xlu1.b32.cont [2/16] (narrow) %v2664_v56, 8 }
 0x813   :  { %v6706_v16 = vpop.permute.xlu0 %6705  ;;  %6748 = vrot.lane.b32.xlu0 %v8886_v39, %s7240_s26 }
 0x814   :  { %v6708_v11 = vunpack.i.h.bf16 %v6706_v16  ;;  %v6707_v43 = vunpack.i.l.bf16 %v6706_v16  ;;  %v9251_v37 = vpop.permute.xlu1 %3100 }
 0x815   :  { %2745 = vxpose.xlu1.b32.cont [3/16] (narrow) %v2665_v31, 8 }
 0x816   :  { %v6240_v26 = vpack.c.bf16 %v6708_v11, %v6707_v43  ;;  %v2668_v11 = vsub.f32 %v8874_v9, %v9088_v25 }
 0x817   :  { %6753 = vrot.lane.b32.xlu0 %v8902_v24, %s7240_s26 }
 0x818   :  { %6241 = vmatprep.subr.bf16.mxu1 %v6240_v26  ;;  %v9261_v25 = vpop.permute.xlu1 %3248 }
 0x819   :  { %6243 = vmatpush3.bf16.msra.mxu1 %v6240_v26  ;;  %2746 = vxpose.xlu1.b32.cont [4/16] (narrow) %v2666_v0, 8  ;;  %v2669_v26 = vsub.f32 %v8882_v13, %v9063_v32  ;;  %v2671_v13 = vsub.f32 %v8900_v8, %v9066_v28  ;;  %v2673_v8 = vsub.f32 %v8916_v57, %v9074_v4 }
 0x81a   :  { %v2675_v57 = vsub.f32 %v8932_v38, %v9092_v1  ;;  %v2678_v38 = vsub.f32 %v8976_v42, %v9133_v18 }
 0x81b   :  { %6758 = vrot.lane.b32.xlu0 %v8918_v49, %s7240_s26 }
 0x81c   :  { %v9271_v29 = vpop.permute.xlu1 %2956 }
 0x81d   :  { %2747 = vxpose.xlu1.b32.cont [5/16] (narrow) %v2667_v17, 8 }
 0x81f   :  { %6763 = vrot.lane.b32.xlu0 %v8938_v40, %s7240_s26 }
 0x820   :  { %v9283_v28 = vpop.permute.xlu1 %3104 }
 0x821   :  { %2748 = vxpose.xlu1.b32.cont [6/16] (narrow) %v2668_v11, 8 }
 0x823   :  { %6768 = vrot.lane.b32.xlu0 %v8968_v41, %s7240_s26 }
 0x824   :  { %v9293_v4 = vpop.permute.xlu1 %3252 }
 0x825   :  { %2749 = vxpose.xlu1.b32.cont [7/16] (narrow) %v2669_v26, 8 }
 0x827   :  { %6773 = vrot.lane.b32.xlu0 %v8844_v34, %s7241_s27  ;;  %v9259_v9 = vpop.permute.xlu0 %2856 }
 0x828   :  { %10459 = vst [vmem:[#allocation34_spill] sm:$0xff] %v9259_v9  ;;  %v9299_v20 = vpop.permute.xlu1 %2960 }
 0x829   :  { %2750 = vxpose.xlu1.b32.cont [8/16] (narrow) %v2670_v35, 8 }
 0x82b   :  { %6778 = vrot.lane.b32.xlu0 %v8854_v3, %s7241_s27 }
 0x82c   :  { %v9267_v30 = vpop.permute.xlu0 %2964  ;;  %v9309_v1 = vpop.permute.xlu1 %3108 }
 0x82d   :  { %2751 = vxpose.xlu1.b32.cont [9/16] (narrow) %v2671_v13, 8 }
 0x82f   :  { %6788 = vrot.lane.b32.xlu0 %v8886_v39, %s7241_s27 }
 0x830   :  { %v9275_v34 = vpop.permute.xlu0 %2972 }
 0x831   :  { %2752 = vxpose.xlu1.b32.cont [10/16] (narrow) %v2672_v44, 8  ;;  %v9313_v45 = vpop.permute.xlu1 %2826 }
 0x833   :  { %6798 = vrot.lane.b32.xlu0 %v8918_v49, %s7241_s27 }
 0x834   :  { %v9281_v32 = vpop.permute.xlu0 %2980 }
 0x835   :  { %2753 = vxpose.xlu1.b32.cont [11/16] (narrow) %v2673_v8, 8 }
 0x836   :  { %v9319_v16 = vpop.permute.xlu1 %3260 }
 0x837   :  { %6808 = vrot.lane.b32.xlu0 %v8968_v41, %s7241_s27  ;;  %v2677_v41 = vsub.f32 %v8954_v51, %v9179_v55 }
 0x838   :  { %v9289_v39 = vpop.permute.xlu0 %2984 }
 0x839   :  { %10460 = vst [vmem:[#allocation25_spill] sm:$0xff] %v9289_v39  ;;  %2754 = vxpose.xlu1.b32.cont [12/16] (narrow) %v2674_v59, 8 }
 0x83b   :  { %v9323_v55 = vpop.permute.xlu1 %2831 }
 0x83c   :  { %v9295_v49 = vpop.permute.xlu0 %2988 }
 0x83d   :  { %10461 = vst [vmem:[#allocation41_spill] sm:$0xff] %v9295_v49  ;;  %2755 = vxpose.xlu1.b32.cont [13/16] (narrow) %v2675_v57, 8 }
 0x840   :  { %v9329_v18 = vpop.permute.xlu1 %2968 }
 0x841   :  { %v9301_v23 = vpop.permute.xlu0 %3112  ;;  %2756 = vxpose.xlu1.b32.cont [14/16] (narrow) %v2676_v21, 8 }
 0x845   :  { %v9305_v61 = vpop.permute.xlu0 %3120  ;;  %2757 = vxpose.xlu1.b32.cont [15/16] (narrow) %v2677_v41, 8  ;;  %v9333_v17 = vpop.permute.xlu1 %3116 }
 0x849   :  { %v9311_v56 = vpop.permute.xlu0 %3128  ;;  %2758 = vxpose.xlu1.b32.end [16/16] (narrow) %v2678_v38, 8 }
 0x84a   :  { %10462 = vst [vmem:[#allocation20_spill] sm:$0xff] %v9311_v56  ;;  %v9341_v35 = vpop.permute.xlu1 %2836 }
 0x84d   :  { %v9315_v58 = vpop.permute.xlu0 %3132 }
 0x84e   :  { %10463 = vst [vmem:[#allocation42_spill] sm:$0xff] %v9315_v58 }
 0x84f   :  { %v9349_v44 = vpop.permute.xlu1 %3268 }
 0x851   :  { %v9317_v31 = vpop.permute.xlu0 %3136 }
 0x852   :  { %10464 = vst [vmem:[#allocation36_spill] sm:$0xff] %v9317_v31 }
 0x854   :  { %v9355_v59 = vpop.permute.xlu1 %2841 }
 0x856   :  { %v9321_v51 = vpop.permute.xlu0 %3228 }
 0x85a   :  { %v9325_v43 = vpop.permute.xlu0 %3236 }
 0x85e   :  { %v9327_v42 = vpop.permute.xlu0 %3244 }
 0x862   :  { %v9331_v0 = vpop.permute.xlu0 %3256 }
 0x866   :  { %v9335_v11 = vpop.permute.xlu0 %3264 }
 0x867   :  { %6738 = vrot.lane.b32.xlu1 %v8854_v3, %s7240_s26 }
 0x86a   :  { %v9339_v26 = vpop.permute.xlu0 %3272 }
 0x86b   :  { %6783 = vrot.lane.b32.xlu1 %v8866_v36, %s7241_s27  ;;  %v9359_v36 = vpop.permute.xlu1 %2976 }
 0x86e   :  { %v9345_v13 = vpop.permute.xlu0 %3276 }
 0x86f   :  { %10465 = vst [vmem:[#allocation13_spill] sm:$0xff] %v9345_v13  ;;  %6793 = vrot.lane.b32.xlu1 %v8902_v24, %s7241_s27  ;;  %v9361_v58 = vpop.permute.xlu1 %3124 }
 0x872   :  { %v9351_v8 = vpop.permute.xlu0 %3280 }
 0x873   :  { %10466 = vst [vmem:[#allocation37_spill] sm:$0xff] %v9351_v8  ;;  %6803 = vrot.lane.b32.xlu1 %v8938_v40, %s7241_s27 }
 0x876   :  { %v6714_v3 = vpop.permute.xlu0 %6713 }
 0x877   :  { %v6716_v57 = vunpack.i.h.bf16 %v6714_v3  ;;  %v6715_v21 = vunpack.i.l.bf16 %v6714_v3 }
 0x879   :  { %v6244_v41 = vpack.c.bf16 %v6716_v57, %v6715_v21 }
 0x87a   :  { %v9357_v38 = vpop.permute.xlu0 %3284 }
 0x87b   :  { %10467 = vst [vmem:[#allocation33_spill] sm:$0xff] %v9357_v38  ;;  %6245 = vmatprep.subr.bf16.mxu1 %v6244_v41 }
 0x87c   :  { %6247 = vmatpush3.bf16.msra.mxu1 %v6244_v41  ;;  %v9363_v41 = vpop.permute.xlu1 %2846 }
 0x87e   :  { %v6719_v24 = vpop.permute.xlu0 %6718 }
 0x87f   :  { %v6721_v31 = vunpack.i.h.bf16 %v6719_v24  ;;  %v6720_v49 = vunpack.i.l.bf16 %v6719_v24 }
 0x881   :  { %v6248_v9 = vpack.c.bf16 %v6721_v31, %v6720_v49  ;;  %v10468_v31 = vld [vmem:[#allocation35_spill] sm:$0xff] }
 0x882   :  { %v6724_v8 = vpop.permute.xlu0 %6723  ;;  %v10469_v24 = vsub.s32 0, %v10468_v31 }
 0x883   :  { %v6726_v40 = vunpack.i.h.bf16 %v6724_v8  ;;  %v6725_v39 = vunpack.i.l.bf16 %v6724_v8  ;;  %6249 = vmatprep.subr.bf16.mxu1 %v6248_v9  ;;  %v10471_v8 = vsub.s32 2, %v10468_v31 }
 0x884   :  { %6251 = vmatpush3.bf16.msra.mxu1 %v6248_v9  ;;  %v10470_v9 = vsub.s32 1, %v10468_v31 }
 0x885   :  { %v6252_v5 = vpack.c.bf16 %v6726_v40, %v6725_v39 }
 0x886   :  { %v6729_v3 = vpop.permute.xlu0 %6728 }
 0x887   :  { %v6731_v57 = vunpack.i.h.bf16 %v6729_v3  ;;  %v6730_v21 = vunpack.i.l.bf16 %v6729_v3  ;;  %6253 = vmatprep.subr.bf16.mxu1 %v6252_v5 }
 0x888   :  { %6255 = vmatpush3.bf16.msra.mxu1 %v6252_v5  ;;  %v10472_v5 = vsub.s32 3, %v10468_v31 }
 0x889   :  { %v6256_v38 = vpack.c.bf16 %v6731_v57, %v6730_v21 }
 0x88b   :  { %6257 = vmatprep.subr.bf16.mxu1 %v6256_v38 }
 0x88c   :  { %6259 = vmatpush3.bf16.msra.mxu1 %v6256_v38 }
 0x88d   :  { %6261 = vmatprep.subr.bf16.mxu1 %v8848_v27  ;;  %v2759_v49 = vpop.trf.xlu1 }
 0x88e   :  { %v9368_v13 = vrot.slane %v2759_v49, %v10469_v24  ;;  %v9372_v39 = vrot.slane %v2759_v49, %v10470_v9  ;;  %v9376_v40 = vrot.slane %v2759_v49, %v10471_v8  ;;  %v9380_v3 = vrot.slane %v2759_v49, %v10472_v5 }
 0x890   :  { %v2859_v38 = vsub.f32 %v9368_v13, %v9183_v7  ;;  %v2991_v57 = vsub.f32 %v9372_v39, %v9136_v6  ;;  %v3139_v21 = vsub.f32 %v9376_v40, %v9143_v10  ;;  %v3287_v24 = vsub.f32 %v9380_v3, %v9147_v47 }
 0x891   :  { %v2860_v9 = vsub.f32 %v9368_v13, %v9151_v2  ;;  %v2992_v31 = vsub.f32 %v9372_v39, %v9155_v54  ;;  %v3140_v7 = vsub.f32 %v9376_v40, %v9161_v19  ;;  %v3288_v6 = vsub.f32 %v9380_v3, %v9321_v51 }
 0x892   :  { %v2875_v49 = vmul.f32 1.442695, %v2859_v38  ;;  %v3007_v8 = vmul.f32 1.442695, %v2991_v57  ;;  %v3155_v5 = vmul.f32 1.442695, %v3139_v21  ;;  %v2861_v2 = vsub.f32 %v9368_v13, %v9167_v48 }
 0x893   :  { %v3303_v56 = vmul.f32 1.442695, %v3287_v24  ;;  %v2877_v10 = vmul.f32 1.442695, %v2860_v9  ;;  %v3009_v47 = vmul.f32 1.442695, %v2992_v31  ;;  %v2993_v54 = vsub.f32 %v9372_v39, %v9172_v15 }
 0x894   :  { %6972 = vpow2.f32 %v2875_v49  ;;  %v3157_v38 = vmul.f32 1.442695, %v3140_v7  ;;  %v3141_v57 = vsub.f32 %v9376_v40, %v9176_v50  ;;  %v3305_v19 = vmul.f32 1.442695, %v3288_v6  ;;  %v10473_v6 = vld [vmem:[#allocation28_spill] sm:$0xff] }
 0x895   :  { %6974 = vpow2.f32 %v3007_v8  ;;  %v3289_v51 = vsub.f32 %v9380_v3, %v9181_v62  ;;  %v2879_v21 = vmul.f32 1.442695, %v2861_v2  ;;  %v2862_v24 = vsub.f32 %v9368_v13, %v9188_v12 }
 0x896   :  { %6976 = vpow2.f32 %v3155_v5  ;;  %v3011_v48 = vmul.f32 1.442695, %v2993_v54  ;;  %v2994_v15 = vsub.f32 %v9372_v39, %v9186_v63  ;;  %v3159_v9 = vmul.f32 1.442695, %v3141_v57 }
 0x897   :  { %6978 = vpow2.f32 %v3303_v56  ;;  %v3142_v50 = vsub.f32 %v9376_v40, %v9194_v52  ;;  %v3307_v56 = vmul.f32 1.442695, %v3289_v51  ;;  %v3290_v62 = vsub.f32 %v9380_v3, %v9325_v43 }
 0x898   :  { %6980 = vpow2.f32 %v2877_v10  ;;  %v2881_v31 = vmul.f32 1.442695, %v2862_v24  ;;  %v2863_v12 = vsub.f32 %v9368_v13, %v9192_v46  ;;  %v3013_v49 = vmul.f32 1.442695, %v2994_v15 }
 0x899   :  { %6982 = vpow2.f32 %v3009_v47  ;;  %v2995_v63 = vsub.f32 %v9372_v39, %v9201_v53  ;;  %v3161_v5 = vmul.f32 1.442695, %v3142_v50  ;;  %v3309_v7 = vmul.f32 1.442695, %v3290_v62 }
 0x89a   :  { %6984 = vpow2.f32 %v3157_v38  ;;  %v3143_v43 = vsub.f32 %v9376_v40, %v9207_v33  ;;  %v3291_v10 = vsub.f32 %v9380_v3, %v10473_v6  ;;  %v2883_v53 = vmul.f32 1.442695, %v2863_v12  ;;  %v10476_v38 = vld [vmem:[#allocation40_spill] sm:$0xff] }
 0x89b   :  { %6986 = vpow2.f32 %v3305_v19  ;;  %v3015_v54 = vmul.f32 1.442695, %v2995_v63  ;;  %v2864_v57 = vsub.f32 %v9368_v13, %v10476_v38  ;;  %v3292_v12 = vsub.f32 %v9380_v3, %v9327_v42 }
 0x89c   :  { %6988 = vpow2.f32 %v2879_v21  ;;  %v3163_v21 = vmul.f32 1.442695, %v3143_v43  ;;  %v3311_v24 = vmul.f32 1.442695, %v3291_v10  ;;  %v3145_v38 = vsub.f32 %v9376_v40, %v9251_v37 }
 0x89d   :  { %6990 = vpow2.f32 %v3011_v48  ;;  %v2996_v48 = vsub.f32 %v9372_v39, %v9227_v22 }
 0x89e   :  { %v9418_v8 = vpop.eup %6972  ;;  %6992 = vpow2.f32 %v3159_v9 }
 0x89f   :  { %v9420_v52 = vpop.eup %6974  ;;  %6994 = vpow2.f32 %v3307_v56  ;;  %v3144_v56 = vsub.f32 %v9376_v40, %v9235_v60  ;;  %v2997_v60 = vsub.f32 %v9372_v39, %v9243_v14 }
 0x8a0   :  { %v9426_v46 = vpop.eup %6976  ;;  %v3055_v47 = vadd.f32 %v9420_v52, %v9418_v8  ;;  %6996 = vpow2.f32 %v2881_v31  ;;  %v2885_v31 = vmul.f32 1.442695, %v2864_v57 }
 0x8a1   :  { %10474 = vst [vmem:[#allocation17_spill] sm:$0xff] %v9426_v46  ;;  %v9430_v2 = vpop.eup %6978  ;;  %6998 = vpow2.f32 %v3013_v49 }
 0x8a2   :  { %10475 = vst [vmem:[#allocation27_spill] sm:$0xff] %v9430_v2  ;;  %v9434_v19 = vpop.eup %6980  ;;  %v3203_v33 = vadd.f32 %v9426_v46, %v3055_v47  ;;  %7000 = vpow2.f32 %v3161_v5  ;;  %v3017_v5 = vmul.f32 1.442695, %v2996_v48  ;;  %v3165_v47 = vmul.f32 1.442695, %v3144_v56 }
 0x8a3   :  { %v9437_v51 = vpop.eup %6982  ;;  %7002 = vpow2.f32 %v3309_v7  ;;  %v10479_v7 = vld [vmem:[#allocation22_spill] sm:$0xff]  ;;  %v3019_v48 = vmul.f32 1.442695, %v2997_v60 }
 0x8a4   :  { %v9441_v15 = vpop.eup %6984  ;;  %v3351_v9 = vadd.f32 %v9430_v2, %v3203_v33  ;;  %v3056_v50 = vadd.f32 %v9437_v51, %v9434_v19  ;;  %7004 = vpow2.f32 %v2883_v53  ;;  %v2865_v43 = vsub.f32 %v9368_v13, %v10479_v7 }
 0x8a5   :  { %10477 = vst [vmem:[#allocation18_spill] sm:$0xff] %v9441_v15  ;;  %v9448_v62 = vpop.eup %6986  ;;  %7006 = vpow2.f32 %v3015_v54  ;;  %v3313_v54 = vmul.f32 1.442695, %v3292_v12  ;;  %v2998_v7 = vsub.f32 %v9372_v39, %v9271_v29  ;;  %v3294_v2 = vsub.f32 %v9380_v3, %v9293_v4 }
 0x8a6   :  { %10478 = vst [vmem:[#allocation29_spill] sm:$0xff] %v9448_v62  ;;  %v9452_v49 = vpop.eup %6988  ;;  %7008 = vrcp.f32 %v3351_v9  ;;  %v3204_v22 = vadd.f32 %v9441_v15, %v3056_v50  ;;  %v10486_v15 = vld [vmem:[#allocation26_spill] sm:$0xff] }
 0x8a7   :  { %v9455_v63 = vpop.eup %6990  ;;  %7010 = vpow2.f32 %v3163_v21  ;;  %v2887_v21 = vmul.f32 1.442695, %v2865_v43  ;;  %v9492_v43 = vpop.permute.xlu0 %6733 }
 0x8a8   :  { %v9461_v6 = vpop.eup %6992  ;;  %v3352_v10 = vadd.f32 %v9448_v62, %v3204_v22  ;;  %v3057_v42 = vadd.f32 %v9455_v63, %v9452_v49  ;;  %7012 = vpow2.f32 %v3311_v24  ;;  %v3293_v24 = vsub.f32 %v9380_v3, %v9261_v25 }
 0x8a9   :  { %v9466_v53 = vpop.eup %6994  ;;  %7014 = vpow2.f32 %v2885_v31  ;;  %v10482_v31 = vld [vmem:[#allocation32_spill] sm:$0xff] }
 0x8aa   :  { %10480 = vst [vmem:[#allocation31_spill] sm:$0xff] %v9466_v53  ;;  %v9470_v57 = vpop.eup %6996  ;;  %7016 = vrcp.f32 %v3352_v10  ;;  %v3205_v14 = vadd.f32 %v9461_v6, %v3057_v42  ;;  %v2866_v12 = vsub.f32 %v9368_v13, %v10482_v31 }
 0x8ab   :  { %v9473_v33 = vpop.eup %6998  ;;  %7018 = vpow2.f32 %v3017_v5  ;;  %v3167_v5 = vmul.f32 1.442695, %v3145_v38 }
 0x8ac   :  { %v9477_v50 = vpop.eup %7000  ;;  %v9480_v56 = vadd.f32 %v9466_v53, %v3205_v14  ;;  %v3058_v37 = vadd.f32 %v9473_v33, %v9470_v57  ;;  %7020 = vpow2.f32 %v3165_v47  ;;  %v3315_v47 = vmul.f32 1.442695, %v3293_v24 }
 0x8ad   :  { %10481 = vst [vmem:[#allocation19_spill] sm:$0xff] %v9477_v50  ;;  %v9486_v22 = vpop.eup %7002  ;;  %7022 = vpow2.f32 %v3313_v54  ;;  %v3146_v14 = vsub.f32 %v9376_v40, %v9283_v28  ;;  %v2889_v31 = vmul.f32 1.442695, %v2866_v12 }
 0x8ae   :  { %10483 = vst [vmem:[#allocation21_spill] sm:$0xff] %v9486_v22  ;;  %v9490_v25 = vpop.eup %7004  ;;  %7024 = vrcp.f32 %v9480_v56  ;;  %v3206_v60 = vadd.f32 %v9477_v50, %v3058_v37  ;;  %v3431_v37 = vld [vmem:[%s10242_s1] sm:$0xff] }
 0x8af   :  { %v9496_v42 = vpop.eup %7006  ;;  %7026 = vpow2.f32 %v2887_v21  ;;  %v3021_v21 = vmul.f32 1.442695, %v2998_v7  ;;  %v3169_v4 = vmul.f32 1.442695, %v3146_v14  ;;  %v2868_v14 = vsub.f32 %v9368_v13, %v9313_v45 }
 0x8b0   :  { %v7009_v54 = vpop.eup %7008  ;;  %v9501_v38 = vadd.f32 %v9486_v22, %v3206_v60  ;;  %v3059_v29 = vadd.f32 %v9496_v42, %v9490_v25  ;;  %7028 = vpow2.f32 %v3019_v48 }
 0x8b1   :  { %v9505_v53 = vpop.eup %7010  ;;  %v3383_v62 = vmul.f32 %v7009_v54, %v3351_v9  ;;  %7030 = vpow2.f32 %v3167_v5  ;;  %v2867_v9 = vsub.f32 %v9368_v13, %v10486_v15  ;;  %v2999_v5 = vsub.f32 %v9372_v39, %v9299_v20 }
 0x8b2   :  { %10484 = vst [vmem:[#allocation35_spill] sm:$0xff] %v9505_v53  ;;  %v9508_v24 = vpop.eup %7012  ;;  %7032 = vrcp.f32 %v9501_v38  ;;  %v3207_v60 = vadd.f32 %v9505_v53, %v3059_v29  ;;  %v3295_v20 = vsub.f32 %v9380_v3, %v9331_v0  ;;  %v3432_v0 = vld [vmem:[%s10242_s1 + $0x8] sm:$0xff] }
 0x8b3   :  { %10485 = vst [vmem:[#allocation28_spill] sm:$0xff] %v9508_v24  ;;  %v9515_v48 = vpop.eup %7014  ;;  %v3399_v12 = vsub.f32 2.0, %v3383_v62  ;;  %7034 = vpow2.f32 %v3315_v47  ;;  %v3147_v62 = vsub.f32 %v9376_v40, %v9309_v1 }
 0x8b4   :  { %v7017_v7 = vpop.eup %7016  ;;  %v9525_v29 = vadd.f32 %v9508_v24, %v3207_v60  ;;  %7036 = vpow2.f32 %v2889_v31  ;;  %v3317_v31 = vmul.f32 1.442695, %v3294_v2  ;;  %v3000_v2 = vsub.f32 %v9372_v39, %v9267_v30 }
 0x8b5   :  { %v9529_v47 = vpop.eup %7018  ;;  %v3415_v28 = vmul.f32 %v7009_v54, %v3399_v12  ;;  %v3384_v15 = vmul.f32 %v7017_v7, %v3352_v10  ;;  %7038 = vpow2.f32 %v3021_v21  ;;  %v2891_v54 = vmul.f32 1.442695, %v2867_v9 }
 0x8b6   :  { %v9533_v46 = vpop.eup %7020  ;;  %7040 = vrcp.f32 %v9525_v29  ;;  %v3060_v60 = vadd.f32 %v9529_v47, %v9515_v48  ;;  %v3023_v21 = vmul.f32 1.442695, %v2999_v5  ;;  %v3171_v53 = vmul.f32 1.442695, %v3147_v62 }
 0x8b7   :  { %v9540_v1 = vpop.eup %7022  ;;  %v9542_v24 = vmul.f32 %v3431_v37, %v3415_v28  ;;  %v3400_v10 = vsub.f32 2.0, %v3384_v15  ;;  %7042 = vpow2.f32 %v3169_v4  ;;  %v3319_v5 = vmul.f32 1.442695, %v3295_v20 }
 0x8b8   :  { %10487 = vst [vmem:[#allocation40_spill] sm:$0xff] %v9540_v1  ;;  %v7025_v12 = vpop.eup %7024  ;;  %v3208_v22 = vadd.f32 %v9533_v46, %v3060_v60  ;;  %7044 = vpow2.f32 %v3317_v31  ;;  %v2893_v4 = vmul.f32 1.442695, %v2868_v14  ;;  %v3148_v62 = vsub.f32 %v9376_v40, %v9301_v23 }
 0x8b9   :  { %10488 = vst [vmem:[#allocation22_spill] sm:$0xff] %v9542_v24  ;;  %v9550_v45 = vpop.eup %7026  ;;  %v3511_v37 = vmul.f32 %v9420_v52, %v9542_v24  ;;  %v3416_v28 = vmul.f32 %v7017_v7, %v3400_v10  ;;  %v3385_v9 = vmul.f32 %v7025_v12, %v9480_v56  ;;  %7046 = vpow2.f32 %v2891_v54 }
 0x8ba   :  { %10489 = vst [vmem:[#allocation32_spill] sm:$0xff] %v9550_v45  ;;  %v9555_v15 = vpop.eup %7028  ;;  %v9558_v50 = vadd.f32 %v9540_v1, %v3208_v22  ;;  %v3433_v22 = vld [vmem:[%s10242_s1 + $0x10] sm:$0xff]  ;;  %v3025_v20 = vmul.f32 1.442695, %v3000_v2  ;;  %v3296_v23 = vsub.f32 %v9380_v3, %v9319_v16  ;;  %v2869_v31 = vsub.f32 %v9368_v13, %v9323_v55 }
 0x8bb   :  { %v9562_v30 = vpop.eup %7030  ;;  %5792 = vmatprep.mubr.f32.mxu1 %v3511_v37  ;;  %v9564_v60 = vmul.f32 %v3432_v0, %v3416_v28  ;;  %v3401_v52 = vsub.f32 2.0, %v3385_v9  ;;  %v3061_v56 = vadd.f32 %v9555_v15, %v9550_v45  ;;  %v3173_v2 = vmul.f32 1.442695, %v3148_v62 }
 0x8bc   :  { %v7033_v7 = vpop.eup %7032  ;;  %7048 = vrcp.f32 %v9558_v50  ;;  %v3321_v9 = vmul.f32 1.442695, %v3296_v23  ;;  %v3001_v16 = vsub.f32 %v9372_v39, %v9329_v18  ;;  %v3149_v62 = vsub.f32 %v9376_v40, %v9333_v17 }
 0x8bd   :  { %10490 = vst [vmem:[#allocation26_spill] sm:$0xff] %v9564_v60  ;;  %v9576_v14 = vpop.eup %7034  ;;  %v3512_v10 = vmul.f32 %v9437_v51, %v9564_v60  ;;  %v3417_v54 = vmul.f32 %v7025_v12, %v3401_v52  ;;  %v3386_v0 = vmul.f32 %v7033_v7, %v9501_v38  ;;  %v3209_v37 = vadd.f32 %v9562_v30, %v3061_v56  ;;  %v10492_v56 = vld [vmem:[#allocation23_spill] sm:$0xff] }
 0x8be   :  { %v9582_v28 = vpop.eup %7036  ;;  %7050 = vpow2.f32 %v3023_v21  ;;  %v3434_v21 = vld [vmem:[%s10242_s1 + $0x18] sm:$0xff]  ;;  %v2895_v12 = vmul.f32 1.442695, %v2869_v31  ;;  %v3027_v23 = vmul.f32 1.442695, %v3001_v16  ;;  %v2870_v17 = vsub.f32 %v9368_v13, %v9341_v35 }
 0x8bf   :  { %v9586_v45 = vpop.eup %7038  ;;  %5793 = vmatmul.mubr.f32.vlgmr.msra.gmra.mrb[64].mxu1 %v3512_v10  ;;  %v9588_v55 = vmul.f32 %v3433_v22, %v3417_v54  ;;  %v3402_v1 = vsub.f32 2.0, %v3386_v0  ;;  %v9591_v51 = vadd.f32 %v9576_v14, %v3209_v37  ;;  %7052 = vpow2.f32 %v3171_v53  ;;  %v10493_v0 = vld [vmem:[#allocation24_spill] sm:$0xff] }
 0x8c0   :  { %v7041_v38 = vpop.eup %7040  ;;  %6263 = vmatpush3.bf16.msra.mxu1 %v8848_v27  ;;  %v3062_v18 = vadd.f32 %v9586_v45, %v9582_v28  ;;  %7054 = vpow2.f32 %v3319_v5  ;;  %v3297_v5 = vsub.f32 %v9380_v3, %v9335_v11  ;;  %v3175_v11 = vmul.f32 1.442695, %v3149_v62 }
 0x8c1   :  { %10491 = vst [vmem:[#allocation43_spill] sm:$0xff] %v9588_v55  ;;  %v3513_v52 = vmul.f32 %v9455_v63, %v9588_v55  ;;  %6265 = vmatprep.subr.bf16.mxu1 %v10492_v56  ;;  %v3418_v53 = vmul.f32 %v7033_v7, %v3402_v1  ;;  %v3387_v27 = vmul.f32 %v7041_v38, %v9525_v29  ;;  %7056 = vrcp.f32 %v9591_v51  ;;  %v9606_v22 = vpop.eup %7042 }
 0x8c2   :  { %7058 = vpow2.f32 %v2893_v4  ;;  %v3210_v1 = vadd.f32 %v9606_v22, %v3062_v18  ;;  %v9615_v29 = vpop.eup %7044  ;;  %v3435_v4 = vld [vmem:[%s10242_s1 + $0x20] sm:$0xff]  ;;  %v3323_v7 = vmul.f32 1.442695, %v3297_v5  ;;  %v3002_v35 = vsub.f32 %v9372_v39, %v9275_v34 }
 0x8c3   :  { %5795 = vmatprep.mubr.f32.mxu1 %v3513_v52  ;;  %v9612_v31 = vmul.f32 %v3434_v21, %v3418_v53  ;;  %v3403_v63 = vsub.f32 2.0, %v3387_v27  ;;  %7060 = vpow2.f32 %v3025_v20  ;;  %v9623_v10 = vpop.eup %7046  ;;  %v3150_v21 = vsub.f32 %v9376_v40, %v9305_v61  ;;  %v3436_v27 = vld [vmem:[%s10242_s1 + $0x28] sm:$0xff] }
 0x8c4   :  { %6267 = vmatpush3.bf16.msra.mxu1 %v10492_v56  ;;  %7062 = vpow2.f32 %v3173_v2  ;;  %v9629_v37 = vadd.f32 %v9615_v29, %v3210_v1  ;;  %v2897_v2 = vmul.f32 1.442695, %v2870_v17  ;;  %v3298_v34 = vsub.f32 %v9380_v3, %v9349_v44  ;;  %v10494_v56 = vld [vmem:[#allocation39_spill] sm:$0xff] }
 0x8c5   :  { %v3514_v54 = vmul.f32 %v9473_v33, %v9612_v31  ;;  %v3419_v20 = vmul.f32 %v7041_v38, %v3403_v63  ;;  %6269 = vmatprep.subr.bf16.mxu1 %v10493_v0  ;;  %7064 = vpow2.f32 %v3321_v9  ;;  %v2871_v38 = vsub.f32 %v9368_v13, %v9355_v59 }
 0x8c6   :  { %v7049_v16 = vpop.eup %7048  ;;  %7066 = vpow2.f32 %v2895_v12  ;;  %v3029_v12 = vmul.f32 1.442695, %v3002_v35  ;;  %v3177_v61 = vmul.f32 1.442695, %v3150_v21  ;;  %v3003_v44 = vsub.f32 %v9372_v39, %v9359_v36 }
 0x8c7   :  { %5796 = vmatmul.mubr.f32.gmra.mrb[66].mxu1 %v3514_v54  ;;  %v9635_v18 = vmul.f32 %v3435_v4, %v3419_v20  ;;  %v3388_v33 = vmul.f32 %v7049_v16, %v9558_v50  ;;  %7068 = vrcp.f32 %v9629_v37  ;;  %v3325_v36 = vmul.f32 1.442695, %v3298_v34 }
 0x8c8   :  { %v9641_v9 = vpop.eup %7050  ;;  %6271 = vmatpush3.bf16.msra.mxu1 %v10493_v0  ;;  %7070 = vpow2.f32 %v3027_v23  ;;  %v2899_v23 = vmul.f32 1.442695, %v2871_v38  ;;  %v3151_v5 = vsub.f32 %v9376_v40, %v9361_v58  ;;  %v3299_v1 = vsub.f32 %v9380_v3, %v9339_v26  ;;  %v10495_v0 = vld [vmem:[#allocation38_spill] sm:$0xff]  ;;  %v3437_v38 = vld [vmem:[%s10242_s1 + $0x30] sm:$0xff] }
 0x8c9   :  { %v9646_v62 = vpop.eup %7052  ;;  %v3515_v50 = vmul.f32 %v9496_v42, %v9635_v18  ;;  %v3404_v52 = vsub.f32 2.0, %v3388_v33  ;;  %6273 = vmatprep.subr.bf16.mxu1 %v10494_v56  ;;  %v3063_v59 = vadd.f32 %v9641_v9, %v9623_v10  ;;  %7072 = vpow2.f32 %v3175_v11 }
 0x8ca   :  { %v9653_v53 = vpop.eup %7054  ;;  %7074 = vpow2.f32 %v3323_v7  ;;  %v3031_v7 = vmul.f32 1.442695, %v3003_v44  ;;  %v3179_v35 = vmul.f32 1.442695, %v3151_v5  ;;  %v2872_v26 = vsub.f32 %v9368_v13, %v9363_v41  ;;  %v10499_v5 = vld [vmem:[#allocation30_spill] sm:$0xff] }
 0x8cb   :  { %v7057_v42 = vpop.eup %7056  ;;  %5798 = vmatprep.mubr.f32.mxu1 %v3515_v50  ;;  %v3420_v17 = vmul.f32 %v7049_v16, %v3404_v52  ;;  %v3211_v63 = vadd.f32 %v9646_v62, %v3063_v59  ;;  %7076 = vpow2.f32 %v2897_v2  ;;  %v3327_v21 = vmul.f32 1.442695, %v3299_v1 }
 0x8cc   :  { %v9663_v4 = vpop.eup %7058  ;;  %v3389_v11 = vmul.f32 %v7057_v42, %v9591_v51  ;;  %6275 = vmatpush3.bf16.msra.mxu1 %v10494_v56  ;;  %7078 = vpow2.f32 %v3029_v12  ;;  %v3004_v41 = vsub.f32 %v9372_v39, %v9281_v32  ;;  %v10496_v12 = vld [vmem:[#allocation20_spill] sm:$0xff]  ;;  %v2901_v32 = vmul.f32 1.442695, %v2872_v26 }
 0x8cd   :  { %v9667_v54 = vpop.eup %7060  ;;  %v9669_v58 = vmul.f32 %v3436_v27, %v3420_v17  ;;  %v9672_v20 = vadd.f32 %v9653_v53, %v3211_v63  ;;  %6277 = vmatprep.subr.bf16.mxu1 %v10495_v0  ;;  %7080 = vpow2.f32 %v3177_v61  ;;  %v3152_v61 = vsub.f32 %v9376_v40, %v10496_v12  ;;  %v10498_v27 = vld [vmem:[#allocation14_spill] sm:$0xff]  ;;  %v10502_v12 = vld [vmem:[#allocation15_spill] sm:$0xff] }
 0x8ce   :  { %v9677_v16 = vpop.eup %7062  ;;  %v3405_v51 = vsub.f32 2.0, %v3389_v11  ;;  %v3064_v2 = vadd.f32 %v9667_v54, %v9663_v4  ;;  %7082 = vpow2.f32 %v3325_v36  ;;  %v3033_v36 = vmul.f32 1.442695, %v3004_v41 }
 0x8cf   :  { %v9681_v34 = vpop.eup %7064  ;;  %v3516_v33 = vmul.f32 %v9529_v47, %v9669_v58  ;;  %7084 = vrcp.f32 %v9672_v20  ;;  %v10497_v47 = vld [vmem:[#allocation13_spill] sm:$0xff]  ;;  %v2873_v17 = vsub.f32 %v9368_v13, %v10499_v5 }
 0x8d0   :  { %v9693_v44 = vpop.eup %7066  ;;  %v3421_v50 = vmul.f32 %v7057_v42, %v3405_v51  ;;  %v3212_v52 = vadd.f32 %v9677_v16, %v3064_v2  ;;  %6279 = vmatpush3.bf16.msra.mxu1 %v10495_v0  ;;  %7086 = vpow2.f32 %v2899_v23  ;;  %v3300_v56 = vsub.f32 %v9380_v3, %v10497_v47 }
 0x8d1   :  { %v7069_v59 = vpop.eup %7068  ;;  %5799 = vmatmul.mubr.f32.gmra.mrb[68].mxu1 %v3516_v33  ;;  %6281 = vmatprep.subr.bf16.mxu1 %v10498_v27  ;;  %7088 = vpow2.f32 %v3031_v7  ;;  %v3181_v0 = vmul.f32 1.442695, %v3152_v61  ;;  %v10503_v61 = vld [vmem:[#allocation42_spill] sm:$0xff] }
 0x8d2   :  { %v9702_v63 = vpop.eup %7070  ;;  %v9704_v42 = vmul.f32 %v3437_v38, %v3421_v50  ;;  %v3390_v1 = vmul.f32 %v7069_v59, %v9629_v37  ;;  %v9708_v23 = vadd.f32 %v9681_v34, %v3212_v52  ;;  %7090 = vpow2.f32 %v3179_v35  ;;  %v10500_v37 = vld [vmem:[#allocation25_spill] sm:$0xff] }
 0x8d3   :  { %v9710_v11 = vpop.eup %7072  ;;  %v3065_v7 = vadd.f32 %v9702_v63, %v9693_v44  ;;  %7092 = vpow2.f32 %v3327_v21  ;;  %v3329_v26 = vmul.f32 1.442695, %v3300_v56  ;;  %v3005_v35 = vsub.f32 %v9372_v39, %v10500_v37  ;;  %v3438_v21 = vld [vmem:[%s10242_s1 + $0x38] sm:$0xff] }
 0x8d4   :  { %v9714_v51 = vpop.eup %7074  ;;  %v3517_v2 = vmul.f32 %v9555_v15, %v9704_v42  ;;  %v3406_v33 = vsub.f32 2.0, %v3390_v1  ;;  %7094 = vrcp.f32 %v9708_v23  ;;  %6283 = vmatpush3.bf16.msra.mxu1 %v10498_v27  ;;  %v2903_v15 = vmul.f32 1.442695, %v2873_v17  ;;  %v10504_v27 = vld [vmem:[#allocation37_spill] sm:$0xff]  ;;  %v10505_v17 = vld [vmem:[#allocation34_spill] sm:$0xff] }
 0x8d5   :  { %v9722_v38 = vpop.eup %7076  ;;  %v3213_v41 = vadd.f32 %v9710_v11, %v3065_v7  ;;  %6285 = vmatprep.subr.bf16.mxu1 %v10502_v12  ;;  %7096 = vpow2.f32 %v2901_v32  ;;  %v3153_v50 = vsub.f32 %v9376_v40, %v10503_v61  ;;  %v3035_v56 = vmul.f32 1.442695, %v3005_v35 }
 0x8d6   :  { %10501 = vst [vmem:[#allocation23_spill] sm:$0xff] %v9722_v38  ;;  %v9731_v52 = vpop.eup %7078  ;;  %5801 = vmatprep.mubr.f32.mxu1 %v3517_v2  ;;  %v3422_v47 = vmul.f32 %v7069_v59, %v3406_v33  ;;  %7098 = vpow2.f32 %v3033_v36  ;;  %v3301_v5 = vsub.f32 %v9380_v3, %v10504_v27  ;;  %v2874_v37 = vsub.f32 %v9368_v13, %v10505_v17  ;;  %v10508_v13 = vld [vmem:[#allocation16_spill] sm:$0xff]  ;;  %v10509_v27 = vld [vmem:[#allocation41_spill] sm:$0xff] }
 0x8d7   :  { %v9735_v1 = vpop.eup %7080  ;;  %v9738_v7 = vadd.f32 %v9714_v51, %v3213_v41  ;;  %v3066_v32 = vadd.f32 %v9731_v52, %v9722_v38  ;;  %7100 = vpow2.f32 %v3181_v0  ;;  %v10506_v59 = vunpack.i.l.bf16 %v9492_v43  ;;  %v10510_v38 = vld [vmem:[#allocation36_spill] sm:$0xff] }
 0x8d8   :  { %v9744_v61 = vpop.eup %7082  ;;  %v10507_v36 = vunpack.i.h.bf16 %v9492_v43  ;;  %v9752_v33 = vmul.f32 %v3438_v21, %v3422_v47  ;;  %7102 = vpow2.f32 %v3329_v26  ;;  %6287 = vmatpush3.bf16.msra.mxu1 %v10502_v12  ;;  %v3183_v35 = vmul.f32 1.442695, %v3153_v50 }
 0x8d9   :  { %v7085_v41 = vpop.eup %7084  ;;  %7104 = vrcp.f32 %v9738_v7  ;;  %v3214_v0 = vadd.f32 %v9735_v1, %v3066_v32  ;;  %6289 = vmatprep.subr.bf16.mxu1 %v10508_v13  ;;  %v3006_v17 = vsub.f32 %v9372_v39, %v10509_v27  ;;  %v3154_v43 = vsub.f32 %v9376_v40, %v10510_v38 }
 0x8da   :  { %v9750_v2 = vpack.c.bf16 %v10507_v36, %v10506_v59  ;;  %v9762_v59 = vpop.eup %7086  ;;  %v3518_v26 = vmul.f32 %v9586_v45, %v9752_v33  ;;  %v3391_v21 = vmul.f32 %v7085_v41, %v9672_v20  ;;  %7106 = vpow2.f32 %v2903_v15  ;;  %v10512_v36 = vld [vmem:[#allocation33_spill] sm:$0xff]  ;;  %v3439_v15 = vld [vmem:[%s10242_s1 + $0x40] sm:$0xff] }
 0x8db   :  { %10511 = vst [vmem:[#allocation24_spill] sm:$0xff] %v9762_v59  ;;  %v3331_v12 = vmul.f32 1.442695, %v3301_v5  ;;  %v9767_v50 = vpop.eup %7088  ;;  %v3362_v47 = vadd.f32 %v9744_v61, %v3214_v0  ;;  %7108 = vpow2.f32 %v3035_v56  ;;  %v2905_v32 = vmul.f32 1.442695, %v2874_v37 }
 0x8dc   :  { %v3302_v39 = vsub.f32 %v9380_v3, %v10512_v36  ;;  %v9772_v27 = vpop.eup %7090  ;;  %5802 = vmatmul.mubr.f32.gmra.mrb[70].mxu1 %v3518_v26  ;;  %v3407_v40 = vsub.f32 2.0, %v3391_v21  ;;  %v3067_v45 = vadd.f32 %v9767_v50, %v9762_v59  ;;  %7110 = vpow2.f32 %v3183_v35  ;;  %v10514_v59 = vld [vmem:[#allocation19_spill] sm:$0xff] }
 0x8dd   :  { %v3037_v20 = vmul.f32 1.442695, %v3006_v17  ;;  %v9776_v38 = vpop.eup %7092  ;;  %7112 = vrcp.f32 %v3362_v47  ;;  %v3185_v56 = vmul.f32 1.442695, %v3154_v43  ;;  %6291 = vmatpush3.bf16.msra.mxu1 %v10508_v13  ;;  %v9784_v3 = vmul.f32 %v9418_v8, %v9542_v24 }
 0x8de   :  { %v7095_v5 = vpop.eup %7094  ;;  %v3423_v37 = vmul.f32 %v7085_v41, %v3407_v40  ;;  %v3215_v0 = vadd.f32 %v9772_v27, %v3067_v45  ;;  %7114 = vpow2.f32 %v3331_v12  ;;  %6293 = vmatprep.subr.bf16.mxu1 %v9750_v2  ;;  %v9790_v35 = vmul.f32 %v9434_v19, %v9564_v60 }
 0x8df   :  { %v9792_v17 = vpop.eup %7096  ;;  %v3392_v43 = vmul.f32 %v7095_v5, %v9708_v23  ;;  %7116 = vpow2.f32 %v2905_v32  ;;  %v9797_v8 = vmul.f32 %v9452_v49, %v9588_v55  ;;  %v3333_v21 = vmul.f32 1.442695, %v3302_v39  ;;  %v3440_v32 = vld [vmem:[%s10242_s1 + $0x48] sm:$0xff] }
 0x8e0   :  { %v9799_v13 = vpop.eup %7098  ;;  %v9801_v41 = vmul.f32 %v3439_v15, %v3423_v37  ;;  %v3363_v26 = vadd.f32 %v9776_v38, %v3215_v0  ;;  %7118 = vpow2.f32 %v3037_v20  ;;  %v9817_v39 = vmul.f32 %v9470_v57, %v9612_v31 }
 0x8e1   :  { %v9804_v12 = vpop.eup %7100  ;;  %v3408_v19 = vsub.f32 2.0, %v3392_v43  ;;  %v3068_v36 = vadd.f32 %v9799_v13, %v9792_v17  ;;  %7120 = vpow2.f32 %v3185_v56  ;;  %v9821_v40 = vmul.f32 %v9490_v25, %v9635_v18 }
 0x8e2   :  { %v9808_v23 = vpop.eup %7102  ;;  %v3519_v49 = vmul.f32 %v9641_v9, %v9801_v41  ;;  %7122 = vrcp.f32 %v3363_v26  ;;  %v9829_v37 = vmul.f32 %v9515_v48, %v9669_v58  ;;  %v3441_v48 = vld [vmem:[%s10242_s1 + $0x50] sm:$0xff] }
 0x8e3   :  { %v7105_v45 = vpop.eup %7104  ;;  %v3424_v20 = vmul.f32 %v7095_v5, %v3408_v19  ;;  %v3216_v15 = vadd.f32 %v9804_v12, %v3068_v36  ;;  %7124 = vpow2.f32 %v3333_v21 }
 0x8e4   :  { %v9824_v56 = vpop.eup %7106  ;;  %5804 = vmatprep.mubr.f32.mxu1 %v3519_v49  ;;  %v3393_v9 = vmul.f32 %v7105_v45, %v9738_v7 }
 0x8e5   :  { %10513 = vst [vmem:[#allocation39_spill] sm:$0xff] %v9824_v56  ;;  %v9831_v57 = vpop.eup %7108  ;;  %v9833_v0 = vmul.f32 %v3440_v32, %v3424_v20  ;;  %v3364_v25 = vadd.f32 %v9808_v23, %v3216_v15 }
 0x8e6   :  { %v9836_v43 = vpop.eup %7110  ;;  %v3409_v5 = vsub.f32 2.0, %v3393_v9  ;;  %v3069_v19 = vadd.f32 %v9831_v57, %v9824_v56  ;;  %v9852_v9 = vmul.f32 %v9461_v6, %v9588_v55 }
 0x8e7   :  { %v7113_v36 = vpop.eup %7112  ;;  %v3520_v7 = vmul.f32 %v9667_v54, %v9833_v0  ;;  %7126 = vrcp.f32 %v3364_v25 }
 0x8e8   :  { %v9845_v21 = vpop.eup %7114  ;;  %v3425_v49 = vmul.f32 %v7105_v45, %v3409_v5  ;;  %v3394_v32 = vmul.f32 %v7113_v36, %v3362_v47  ;;  %v3217_v20 = vadd.f32 %v9836_v43, %v3069_v19  ;;  %v9861_v45 = vmul.f32 %v10514_v59, %v9612_v31  ;;  %v3442_v5 = vld [vmem:[%s10242_s1 + $0x58] sm:$0xff]  ;;  %v10516_v19 = vld [vmem:[#allocation35_spill] sm:$0xff] }
 0x8e9   :  { %v9848_v15 = vpop.eup %7116  ;;  %5805 = vmatmul.mubr.f32.gmra.mrb[72].mxu1 %v3520_v7  ;;  %v9872_v7 = vmul.f32 %v10516_v19, %v9635_v18  ;;  %v9880_v59 = vmul.f32 %v9562_v30, %v9704_v42  ;;  %v9887_v19 = vmul.f32 %v9606_v22, %v9752_v33 }
 0x8ea   :  { %v9854_v60 = vpop.eup %7118  ;;  %v9856_v54 = vmul.f32 %v3441_v48, %v3425_v49  ;;  %v3410_v24 = vsub.f32 2.0, %v3394_v32  ;;  %v3365_v56 = vadd.f32 %v9845_v21, %v3217_v20  ;;  %10515 = vst [vmem:[#allocation38_spill] sm:$0xff] %v9861_v45  ;;  %v9876_v48 = vmul.f32 %v9533_v46, %v9669_v58 }
 0x8eb   :  { %v9863_v47 = vpop.eup %7120  ;;  %v3070_v6 = vadd.f32 %v9854_v60, %v9848_v15  ;;  %v9891_v46 = vmul.f32 %v9646_v62, %v9801_v41 }
 0x8ec   :  { %10517 = vst [vmem:[#allocation20_spill] sm:$0xff] %v9876_v48  ;;  %v7123_v49 = vpop.eup %7122  ;;  %v3521_v32 = vmul.f32 %v9702_v63, %v9856_v54  ;;  %v3426_v20 = vmul.f32 %v7113_v36, %v3410_v24  ;;  %7128 = vrcp.f32 %v3365_v56  ;;  %v9899_v24 = vmul.f32 %v9677_v16, %v9833_v0  ;;  %v3443_v36 = vld [vmem:[%s10242_s1 + $0x60] sm:$0xff]  ;;  %v10522_v16 = vld [vmem:[#allocation21_spill] sm:$0xff] }
 0x8ed   :  { %v3395_v55 = vmul.f32 %v7123_v49, %v3363_v26  ;;  %v3218_v45 = vadd.f32 %v9863_v47, %v3070_v6  ;;  %10518 = vst [vmem:[#allocation13_spill] sm:$0xff] %v9891_v46  ;;  %v9893_v48 = vpop.eup %7124  ;;  %v9903_v63 = vmul.f32 %v9710_v11, %v9856_v54  ;;  %v9917_v6 = vmul.f32 %v10522_v16, %v9612_v31  ;;  %v4402_v11 = vld [vmem:[#allocation7] sm:$0xff]  ;;  %v4404_v46 = vld [vmem:[#allocation7 + $0x10] sm:$0xff] }
 0x8ee   :  { %5807 = vmatprep.mubr.f32.mxu1 %v3521_v32  ;;  %v9895_v30 = vmul.f32 %v3442_v5, %v3426_v20  ;;  %10519 = vst [vmem:[#allocation14_spill] sm:$0xff] %v9899_v24  ;;  %v4403_v24 = vld [vmem:[#allocation7 + $0x8] sm:$0xff]  ;;  %v9929_v31 = vmul.f32 %v9576_v14, %v9704_v42 }
 0x8ef   :  { %10520 = vst [vmem:[#allocation30_spill] sm:$0xff] %v9903_v63  ;;  %v3411_v26 = vsub.f32 2.0, %v3395_v55  ;;  %v3366_v22 = vadd.f32 %v9893_v48, %v3218_v45  ;;  %v10523_v45 = vld [vmem:[#allocation28_spill] sm:$0xff] }
 0x8f0   :  { %v3522_v62 = vmul.f32 %v9731_v52, %v9895_v30  ;;  %v9913_v5 = vmul.f32 %v9735_v1, %v9895_v30  ;;  %v9921_v20 = vmul.f32 %v10523_v45, %v9635_v18  ;;  %v10524_v52 = vld [vmem:[#allocation40_spill] sm:$0xff]  ;;  %v9937_v18 = vmul.f32 %v9653_v53, %v9801_v41 }
 0x8f1   :  { %v7127_v32 = vpop.eup %7126  ;;  %v3427_v55 = vmul.f32 %v7123_v49, %v3411_v26  ;;  %7130 = vrcp.f32 %v3366_v22  ;;  %v9925_v63 = vmul.f32 %v10524_v52, %v9669_v58  ;;  %v4405_v1 = vld [vmem:[#allocation7 + $0x18] sm:$0xff]  ;;  %v9933_v49 = vmul.f32 %v9615_v29, %v9752_v33 }
 0x8f2   :  { %10521 = vst [vmem:[#allocation25_spill] sm:$0xff] %v9913_v5  ;;  %5808 = vmatmul.mubr.f32.gmra.mrb[74].mxu1 %v3522_v62  ;;  %v3396_v5 = vmul.f32 %v7127_v32, %v3364_v25  ;;  %v9943_v58 = vmul.f32 %v9681_v34, %v9833_v0  ;;  %v9947_v25 = vmul.f32 %v9714_v51, %v9856_v54 }
 0x8f3   :  { %v9939_v26 = vmul.f32 %v3443_v36, %v3427_v55  ;;  %v9951_v14 = vmul.f32 %v9744_v61, %v9895_v30  ;;  %v6356_v62 = vpack.c.bf16 %v4403_v24, %v4402_v11  ;;  %v6360_v16 = vpack.c.bf16 %v4405_v1, %v4404_v46  ;;  %v3444_v36 = vld [vmem:[%s10242_s1 + $0x68] sm:$0xff] }
 0x8f4   :  { %v3412_v29 = vsub.f32 2.0, %v3396_v5 }
 0x8f5   :  { %v3523_v53 = vmul.f32 %v9767_v50, %v9939_v26  ;;  %v9960_v34 = vmul.f32 %v9772_v27, %v9939_v26  ;;  %v9964_v51 = vmul.f32 %v9776_v38, %v9939_v26  ;;  %6357 = vmatprep.subr.bf16.mxu0 %v6356_v62  ;;  %v6744_v50 = vpop.permute.xlu0 %6743  ;;  %v3445_v27 = vld [vmem:[%s10242_s1 + $0x70] sm:$0xff] }
 0x8f6   :  { %v7129_v61 = vpop.eup %7128  ;;  %v3428_v55 = vmul.f32 %v7127_v32, %v3412_v29  ;;  %6359 = vmatpush3.bf16.msra.mxu0 %v6356_v62 }
 0x8f7   :  { %5810 = vmatprep.mubr.f32.mxu1 %v3523_v53  ;;  %v3397_v46 = vmul.f32 %v7129_v61, %v3365_v56  ;;  %6361 = vmatprep.subr.bf16.mxu0 %v6360_v16 }
 0x8f8   :  { %v3460_v24 = vmul.f32 %v3444_v36, %v3428_v55 }
 0x8f9   :  { %v3413_v5 = vsub.f32 2.0, %v3397_v46  ;;  %v6749_v62 = vpop.permute.xlu0 %6748 }
 0x8fa   :  { %v3524_v11 = vmul.f32 %v9799_v13, %v3460_v24  ;;  %v9971_v45 = vmul.f32 %v9792_v17, %v3460_v24  ;;  %v9974_v38 = vmul.f32 %v9804_v12, %v3460_v24  ;;  %v9977_v32 = vmul.f32 %v9808_v23, %v3460_v24  ;;  %6363 = vmatpush3.bf16.msra.mxu0 %v6360_v16  ;;  %v3446_v17 = vld [vmem:[%s10242_s1 + $0x78] sm:$0xff]  ;;  %v6739_v16 = vpop.permute.xlu1 %6738 }
 0x8fb   :  { %v7131_v56 = vpop.eup %7130  ;;  %v3429_v52 = vmul.f32 %v7129_v61, %v3413_v5  ;;  %v6741_v61 = vunpack.i.h.bf16 %v6739_v16  ;;  %v6740_v55 = vunpack.i.l.bf16 %v6739_v16  ;;  %v6746_v5 = vunpack.i.h.bf16 %v6744_v50 }
 0x8fc   :  { %5811 = vmatmul.mubr.f32.gmra.mrb[76].mxu1 %v3524_v11  ;;  %v3398_v1 = vmul.f32 %v7131_v56, %v3366_v22  ;;  %v6745_v11 = vunpack.i.l.bf16 %v6744_v50 }
 0x8fd   :  { %v9979_v29 = vmul.f32 %v3445_v27, %v3429_v52  ;;  %v6296_v24 = vpack.c.bf16 %v6741_v61, %v6740_v55 }
 0x8fe   :  { %v3414_v13 = vsub.f32 2.0, %v3398_v1 }
 0x8ff   :  { %v3525_v53 = vmul.f32 %v9831_v57, %v9979_v29  ;;  %v9988_v12 = vmul.f32 %v9836_v43, %v9979_v29  ;;  %v9992_v23 = vmul.f32 %v9845_v21, %v9979_v29  ;;  %v6754_v21 = vpop.permute.xlu0 %6753 }
 0x900   :  { %v3430_v22 = vmul.f32 %v7131_v56, %v3414_v13  ;;  %v6750_v56 = vunpack.i.l.bf16 %v6749_v62  ;;  %v6756_v52 = vunpack.i.h.bf16 %v6754_v21  ;;  %v6755_v1 = vunpack.i.l.bf16 %v6754_v21 }
 0x901   :  { %5813 = vmatprep.mubr.f32.mxu1 %v3525_v53 }
 0x902   :  { %v9994_v36 = vmul.f32 %v3446_v17, %v3430_v22  ;;  %v10527_v22 = vld [vmem:[#allocation24_spill] sm:$0xff] }
 0x903   :  { %v6759_v27 = vpop.permute.xlu0 %6758  ;;  %v3491_v16 = vmul.f32 %v10527_v22, %v9939_v26 }
 0x904   :  { %v3526_v57 = vmul.f32 %v9854_v60, %v9994_v36  ;;  %v10000_v46 = vmul.f32 %v9863_v47, %v9994_v36  ;;  %v10004_v43 = vmul.f32 %v9893_v48, %v9994_v36  ;;  %v6300_v60 = vpack.c.bf16 %v6746_v5, %v6745_v11  ;;  %v10525_v48 = vld [vmem:[#allocation32_spill] sm:$0xff]  ;;  %v10530_v5 = vld [vmem:[#allocation17_spill] sm:$0xff] }
 0x905   :  { %v6751_v47 = vunpack.i.h.bf16 %v6749_v62  ;;  %v3485_v50 = vmul.f32 %v10525_v48, %v9704_v42  ;;  %v6760_v13 = vunpack.i.l.bf16 %v6759_v27  ;;  %v3488_v42 = vmul.f32 %v9663_v4, %v9833_v0 }
 0x906   :  { %5814 = vmatmul.mubr.f32.gmra.mrb[78].mxu1 %v3526_v57  ;;  %v3494_v26 = vmul.f32 %v9848_v15, %v9994_v36 }
 0x907   :  { %5848 = vmatprep.mubr.f32.mxu1 %v9784_v3  ;;  %v6764_v3 = vpop.permute.xlu0 %6763 }
 0x908   :  { %v6766_v17 = vunpack.i.h.bf16 %v6764_v3 }
 0x90a   :  { %5849 = vmatmul.mubr.f32.vlgmr.msra.gmra.mrb[64].mxu1 %v9790_v35  ;;  %v6304_v35 = vpack.c.bf16 %v6751_v47, %v6750_v56  ;;  %v10531_v56 = vld [vmem:[#allocation26_spill] sm:$0xff] }
 0x90b   :  { %6295 = vmatpush3.bf16.msra.mxu1 %v9750_v2  ;;  %5851 = vmatprep.mubr.f32.mxu1 %v9797_v8  ;;  %v3486_v2 = vmul.f32 %v9582_v28, %v9752_v33  ;;  %v3487_v8 = vmul.f32 %v9623_v10, %v9801_v41  ;;  %v6769_v62 = vpop.permute.xlu0 %6768  ;;  %v6765_v28 = vunpack.i.l.bf16 %v6764_v3  ;;  %v10526_v10 = vld [vmem:[#allocation23_spill] sm:$0xff] }
 0x90c   :  { %6297 = vmatprep.subr.bf16.mxu1 %v6296_v24  ;;  %v3490_v33 = vmul.f32 %v10526_v10, %v9895_v30  ;;  %v6771_v57 = vunpack.i.h.bf16 %v6769_v62  ;;  %v6770_v4 = vunpack.i.l.bf16 %v6769_v62  ;;  %v10534_v62 = vld [vmem:[#allocation20_spill] sm:$0xff] }
 0x90d   :  { %v6316_v61 = vpack.c.bf16 %v6766_v17, %v6765_v28  ;;  %v10535_v28 = vld [vmem:[#allocation13_spill] sm:$0xff] }
 0x90e   :  { %5852 = vmatmul.mubr.f32.gmra.mrb[66].mxu1 %v9817_v39  ;;  %v6308_v39 = vpack.c.bf16 %v6756_v52, %v6755_v1 }
 0x90f   :  { %6299 = vmatpush3.bf16.msra.mxu1 %v6296_v24  ;;  %5854 = vmatprep.mubr.f32.mxu1 %v9821_v40  ;;  %v6761_v40 = vunpack.i.h.bf16 %v6759_v27  ;;  %v6774_v41 = vpop.permute.xlu0 %6773  ;;  %v10529_v24 = vld [vmem:[#allocation22_spill] sm:$0xff] }
 0x910   :  { %6301 = vmatprep.subr.bf16.mxu1 %v6300_v60  ;;  %v6776_v55 = vunpack.i.h.bf16 %v6774_v41  ;;  %v6775_v21 = vunpack.i.l.bf16 %v6774_v41  ;;  %v3897_v11 = vmul.f32 %v10530_v5, %v10529_v24  ;;  %v10536_v41 = vld [vmem:[#allocation14_spill] sm:$0xff] }
 0x911   :  { %v6312_v53 = vpack.c.bf16 %v6761_v40, %v6760_v13 }
 0x912   :  { %5855 = vmatmul.mubr.f32.gmra.mrb[68].mxu1 %v9829_v37  ;;  %v3489_v37 = vmul.f32 %v9693_v44, %v9856_v54  ;;  %v10528_v44 = vld [vmem:[#allocation39_spill] sm:$0xff]  ;;  %v6320_v54 = vpack.c.bf16 %v6771_v57, %v6770_v4  ;;  %v6324_v27 = vpack.c.bf16 %v6776_v55, %v6775_v21  ;;  %v10538_v4 = vld [vmem:[#allocation25_spill] sm:$0xff] }
 0x913   :  { %6303 = vmatpush3.bf16.msra.mxu1 %v6300_v60  ;;  %5857 = vmatprep.mubr.f32.mxu1 %v3485_v50  ;;  %v3493_v0 = vmul.f32 %v10528_v44, %v9979_v29  ;;  %v6779_v30 = vpop.permute.xlu0 %6778  ;;  %v6784_v29 = vpop.permute.xlu1 %6783  ;;  %v10539_v44 = vld [vmem:[#allocation27_spill] sm:$0xff] }
 0x914   :  { %6305 = vmatprep.subr.bf16.mxu1 %v6304_v35  ;;  %v6781_v60 = vunpack.i.h.bf16 %v6779_v30  ;;  %v6780_v47 = vunpack.i.l.bf16 %v6779_v30  ;;  %v6786_v50 = vunpack.i.h.bf16 %v6784_v29  ;;  %v10541_v21 = vld [vmem:[#allocation43_spill] sm:$0xff] }
 0x916   :  { %5858 = vmatmul.mubr.f32.gmra.mrb[70].mxu1 %v3486_v2  ;;  %v6328_v48 = vpack.c.bf16 %v6781_v60, %v6780_v47  ;;  %v10533_v2 = vld [vmem:[#allocation38_spill] sm:$0xff] }
 0x917   :  { %6307 = vmatpush3.bf16.msra.mxu1 %v6304_v35  ;;  %5860 = vmatprep.mubr.f32.mxu1 %v3487_v8  ;;  %v6785_v35 = vunpack.i.l.bf16 %v6784_v29  ;;  %v6789_v52 = vpop.permute.xlu0 %6788  ;;  %v6794_v8 = vpop.permute.xlu1 %6793 }
 0x918   :  { %6309 = vmatprep.subr.bf16.mxu1 %v6308_v39  ;;  %v6791_v15 = vunpack.i.h.bf16 %v6789_v52  ;;  %v6790_v36 = vunpack.i.l.bf16 %v6789_v52  ;;  %v6796_v40 = vunpack.i.h.bf16 %v6794_v8  ;;  %v6795_v13 = vunpack.i.l.bf16 %v6794_v8 }
 0x919   :  { %v6332_v1 = vpack.c.bf16 %v6786_v50, %v6785_v35 }
 0x91a   :  { %5861 = vmatmul.mubr.f32.gmra.mrb[72].mxu1 %v3488_v42 }
 0x91b   :  { %6311 = vmatpush3.bf16.msra.mxu1 %v6308_v39  ;;  %5863 = vmatprep.mubr.f32.mxu1 %v3489_v37  ;;  %v6336_v39 = vpack.c.bf16 %v6791_v15, %v6790_v36  ;;  %v6799_v42 = vpop.permute.xlu0 %6798  ;;  %v6804_v17 = vpop.permute.xlu1 %6803 }
 0x91c   :  { %6313 = vmatprep.subr.bf16.mxu1 %v6312_v53  ;;  %v6800_v37 = vunpack.i.l.bf16 %v6799_v42  ;;  %v6806_v10 = vunpack.i.h.bf16 %v6804_v17 }
 0x91e   :  { %5864 = vmatmul.mubr.f32.gmra.mrb[74].mxu1 %v3490_v33  ;;  %v6805_v33 = vunpack.i.l.bf16 %v6804_v17 }
 0x91f   :  { %6315 = vmatpush3.bf16.msra.mxu1 %v6312_v53  ;;  %5866 = vmatprep.mubr.f32.mxu1 %v3491_v16  ;;  %v6340_v53 = vpack.c.bf16 %v6796_v40, %v6795_v13  ;;  %v6809_v22 = vpop.permute.xlu0 %6808  ;;  %v10537_v16 = vld [vmem:[#allocation30_spill] sm:$0xff] }
 0x920   :  { %6317 = vmatprep.subr.bf16.mxu1 %v6316_v61  ;;  %v6348_v57 = vpack.c.bf16 %v6806_v10, %v6805_v33 }
 0x922   :  { %5867 = vmatmul.mubr.f32.gmra.mrb[76].mxu1 %v9971_v45  ;;  %v10532_v45 = vld [vmem:[#allocation18_spill] sm:$0xff] }
 0x923   :  { %6319 = vmatpush3.bf16.msra.mxu1 %v6316_v61  ;;  %5869 = vmatprep.mubr.f32.mxu1 %v3493_v0  ;;  %v3898_v3 = vmul.f32 %v10532_v45, %v10531_v56  ;;  %v6810_v61 = vunpack.i.l.bf16 %v6809_v22  ;;  %v4138_v0 = vmul.f32 %v10539_v44, %v10529_v24 }
 0x924   :  { %6321 = vmatprep.subr.bf16.mxu1 %v6320_v54 }
 0x926   :  { %5870 = vmatmul.mubr.f32.gmra.mrb[78].mxu1 %v3494_v26 }
 0x927   :  { %6323 = vmatpush3.bf16.msra.mxu1 %v6320_v54  ;;  %5904 = vmatprep.mubr.f32.mxu1 %v3897_v11  ;;  %v10540_v54 = vld [vmem:[#allocation29_spill] sm:$0xff] }
 0x928   :  { %6325 = vmatprep.subr.bf16.mxu1 %v6324_v27  ;;  %v4139_v55 = vmul.f32 %v10540_v54, %v10531_v56 }
 0x92a   :  { %5905 = vmatmul.mubr.f32.vlgmr.msra.gmra.mrb[64].mxu1 %v3898_v3 }
 0x92b   :  { %6327 = vmatpush3.bf16.msra.mxu1 %v6324_v27  ;;  %5907 = vmatprep.mubr.f32.mxu1 %v9852_v9  ;;  %v6801_v9 = vunpack.i.h.bf16 %v6799_v42 }
 0x92c   :  { %6329 = vmatprep.subr.bf16.mxu1 %v6328_v48 }
 0x92e   :  { %5908 = vmatmul.mubr.f32.gmra.mrb[66].mxu1 %v10533_v2 }
 0x92f   :  { %6331 = vmatpush3.bf16.msra.mxu1 %v6328_v48  ;;  %5910 = vmatprep.mubr.f32.mxu1 %v9872_v7  ;;  %v6344_v7 = vpack.c.bf16 %v6801_v9, %v6800_v37 }
 0x930   :  { %6333 = vmatprep.subr.bf16.mxu1 %v6332_v1 }
 0x932   :  { %5911 = vmatmul.mubr.f32.gmra.mrb[68].mxu1 %v10534_v62 }
 0x933   :  { %6335 = vmatpush3.bf16.msra.mxu1 %v6332_v1  ;;  %5913 = vmatprep.mubr.f32.mxu1 %v9880_v59  ;;  %v6811_v59 = vunpack.i.h.bf16 %v6809_v22 }
 0x934   :  { %6337 = vmatprep.subr.bf16.mxu1 %v6336_v39 }
 0x936   :  { %5914 = vmatmul.mubr.f32.gmra.mrb[70].mxu1 %v9887_v19  ;;  %v6352_v19 = vpack.c.bf16 %v6811_v59, %v6810_v61 }
 0x937   :  { %6339 = vmatpush3.bf16.msra.mxu1 %v6336_v39  ;;  %5916 = vmatprep.mubr.f32.mxu1 %v10535_v28 }
 0x938   :  { %6341 = vmatprep.subr.bf16.mxu1 %v6340_v53 }
 0x93a   :  { %5917 = vmatmul.mubr.f32.gmra.mrb[72].mxu1 %v10536_v41 }
 0x93b   :  { %6343 = vmatpush3.bf16.msra.mxu1 %v6340_v53  ;;  %5919 = vmatprep.mubr.f32.mxu1 %v10537_v16 }
 0x93c   :  { %6345 = vmatprep.subr.bf16.mxu1 %v6344_v7 }
 0x93e   :  { %5920 = vmatmul.mubr.f32.gmra.mrb[74].mxu1 %v10538_v4  ;;  %v4842_v4 = vld [vmem:[%s10255_s14] sm:$0xff] }
 0x93f   :  { %6347 = vmatpush3.bf16.msra.mxu1 %v6344_v7  ;;  %5922 = vmatprep.mubr.f32.mxu1 %v9960_v34  ;;  %v10542_v34 = vld [vmem:[#allocation31_spill] sm:$0xff] }
 0x940   :  { %6349 = vmatprep.subr.bf16.mxu1 %v6348_v57  ;;  %v4140_v30 = vmul.f32 %v10542_v34, %v10541_v21 }
 0x942   :  { %5923 = vmatmul.mubr.f32.gmra.mrb[76].mxu1 %v9974_v38 }
 0x943   :  { %6351 = vmatpush3.bf16.msra.mxu1 %v6348_v57  ;;  %5925 = vmatprep.mubr.f32.mxu1 %v9988_v12 }
 0x944   :  { %6353 = vmatprep.subr.bf16.mxu1 %v6352_v19 }
 0x946   :  { %5926 = vmatmul.mubr.f32.gmra.mrb[78].mxu1 %v10000_v46 }
 0x947   :  { %6355 = vmatpush3.bf16.msra.mxu1 %v6352_v19  ;;  %5960 = vmatprep.mubr.f32.mxu1 %v4138_v0  ;;  %v4843_v19 = vld [vmem:[%s10255_s14 + $0x8] sm:$0xff]  ;;  %v10115_v0 = vld [vmem:[%s10252_s11] ss:$0 sm:$0xff] }
 0x948   :  { %v6372_v44 = vpack.c.bf16 %v4843_v19, %v4842_v4 }
 0x94a   :  { %5961 = vmatmul.mubr.f32.vlgmr.msra.gmra.mrb[64].mxu1 %v4139_v55 }
 0x94b   :  { %5963 = vmatprep.mubr.f32.mxu1 %v4140_v30  ;;  %v4844_v30 = vld [vmem:[%s10255_s14 + $0x10] sm:$0xff] }
 0x94e   :  { %5964 = vmatmul.mubr.f32.gmra.mrb[66].mxu1 %v9917_v6  ;;  %v4623_v6 = vld [vmem:[#allocation8 + $0x8] sm:$0xff] }
 0x94f   :  { %5966 = vmatprep.mubr.f32.mxu1 %v9921_v20 }
 0x952   :  { %5967 = vmatmul.mubr.f32.gmra.mrb[68].mxu1 %v9925_v63  ;;  %v4622_v63 = vld [vmem:[#allocation8] sm:$0xff] }
 0x953   :  { %5969 = vmatprep.mubr.f32.mxu1 %v9929_v31  ;;  %v6364_v20 = vpack.c.bf16 %v4623_v6, %v4622_v63  ;;  %v10072_v31 = vld [vmem:[%s10250_s9] ss:$0 sm:$0xff]  ;;  %v4845_v63 = vld [vmem:[%s10255_s14 + $0x18] sm:$0xff] }
 0x955   :  { %6365 = vmatprep.subr.bf16.mxu0 %v6364_v20 }
 0x956   :  { %5970 = vmatmul.mubr.f32.gmra.mrb[70].mxu1 %v9933_v49 }
 0x957   :  { %5972 = vmatprep.mubr.f32.mxu1 %v9937_v18 }
 0x95a   :  { %5973 = vmatmul.mubr.f32.gmra.mrb[72].mxu1 %v9943_v58 }
 0x95b   :  { %5975 = vmatprep.mubr.f32.mxu1 %v9947_v25 }
 0x95e   :  { %5976 = vmatmul.mubr.f32.gmra.mrb[74].mxu1 %v9951_v14  ;;  %v4624_v14 = vld [vmem:[#allocation8 + $0x10] sm:$0xff] }
 0x95f   :  { %5978 = vmatprep.mubr.f32.mxu1 %v9964_v51  ;;  %v4625_v51 = vld [vmem:[#allocation8 + $0x18] sm:$0xff] }
 0x962   :  { %5979 = vmatmul.mubr.f32.gmra.mrb[76].mxu1 %v9977_v32 }
 0x963   :  { %5981 = vmatprep.mubr.f32.mxu1 %v9992_v23 }
 0x966   :  { %5982 = vmatmul.mubr.f32.gmra.mrb[78].mxu1 %v10004_v43  ;;  %v6368_v43 = vpack.c.bf16 %v4625_v51, %v4624_v14 }
 0xa1d   :  { %v5962_v49 = vpop.f32.mrb[64].mxu1 }
 0xa1e   :  { %v4371_v18 = vadd.f32 %v5962_v49, %v10072_v31  ;;  %v4268_v58 = vpop.f32.mrb[65].mxu1 }
 0xa1f   :  { %v4370_v25 = vadd.f32 %v10072_v31, %v4268_v58  ;;  %v6376_v58 = vpack.c.bf16 %v4845_v63, %v4844_v30 }
 0xa20   :  { %v4387_v12 = vmax.f32 %v4371_v18, 0.0 }
 0xa21   :  { %v4386_v38 = vmax.f32 %v4370_v25, 0.0  ;;  %v5965_v32 = vpop.f32.mrb[66].mxu1 }
 0xa22   :  { %v4373_v23 = vadd.f32 %v5965_v32, %v10072_v31  ;;  %v4278_v46 = vpop.f32.mrb[67].mxu1 }
 0xa23   :  { %v4372_v26 = vadd.f32 %v10072_v31, %v4278_v46  ;;  %5992 = vmatprep.mubr.msk.f32.mxu0 %vm351_vm1, %v4386_v38 }
 0xa24   :  { %5993 = vmatmul.mubr.msk.f32.vlgmr.msra.gmra.mrb[32].mxu0 %vm351_vm1, %v4387_v12  ;;  %v4389_v11 = vmax.f32 %v4373_v23, 0.0 }
 0xa25   :  { %v4388_v24 = vmax.f32 %v4372_v26, 0.0  ;;  %v5968_v5 = vpop.f32.mrb[68].mxu1  ;;  %6367 = vmatpush3.bf16.msra.mxu0 %v6364_v20 }
 0xa26   :  { %v4375_v27 = vadd.f32 %v5968_v5, %v10072_v31  ;;  %v4288_v60 = vpop.f32.mrb[69].mxu1  ;;  %6369 = vmatprep.subr.bf16.mxu0 %v6368_v43 }
 0xa27   :  { %v4374_v47 = vadd.f32 %v10072_v31, %v4288_v60  ;;  %5995 = vmatprep.mubr.msk.f32.mxu0 %vm351_vm1, %v4388_v24 }
 0xa28   :  { %5996 = vmatmul.mubr.msk.f32.gmra.mrb[34].mxu0 %vm351_vm1, %v4389_v11  ;;  %v4391_v45 = vmax.f32 %v4375_v27, 0.0 }
 0xa29   :  { %v4390_v29 = vmax.f32 %v4374_v47, 0.0  ;;  %v5971_v56 = vpop.f32.mrb[70].mxu1  ;;  %6371 = vmatpush3.bf16.msra.mxu0 %v6368_v43 }
 0xa2a   :  { %v4377_v3 = vadd.f32 %v5971_v56, %v10072_v31  ;;  %v4298_v48 = vpop.f32.mrb[71].mxu1  ;;  %6373 = vmatprep.subr.bf16.mxu0 %v6372_v44 }
 0xa2b   :  { %v4376_v50 = vadd.f32 %v10072_v31, %v4298_v48  ;;  %5998 = vmatprep.mubr.msk.f32.mxu0 %vm351_vm1, %v4390_v29 }
 0xa2c   :  { %5999 = vmatmul.mubr.msk.f32.gmra.mrb[36].mxu0 %vm351_vm1, %v4391_v45  ;;  %v4393_v15 = vmax.f32 %v4377_v3, 0.0 }
 0xa2d   :  { %v4392_v35 = vmax.f32 %v4376_v50, 0.0  ;;  %v5974_v52 = vpop.f32.mrb[72].mxu1 }
 0xa2e   :  { %v4379_v36 = vadd.f32 %v5974_v52, %v10072_v31  ;;  %v4308_v1 = vpop.f32.mrb[73].mxu1 }
 0xa2f   :  { %v4378_v2 = vadd.f32 %v10072_v31, %v4308_v1  ;;  %6001 = vmatprep.mubr.msk.f32.mxu0 %vm351_vm1, %v4392_v35 }
 0xa30   :  { %6002 = vmatmul.mubr.msk.f32.gmra.mrb[38].mxu0 %vm351_vm1, %v4393_v15  ;;  %v4395_v40 = vmax.f32 %v4379_v36, 0.0 }
 0xa31   :  { %v4394_v8 = vmax.f32 %v4378_v2, 0.0  ;;  %v5977_v39 = vpop.f32.mrb[74].mxu1 }
 0xa32   :  { %v4381_v13 = vadd.f32 %v5977_v39, %v10072_v31  ;;  %v4318_v62 = vpop.f32.mrb[75].mxu1 }
 0xa33   :  { %v4380_v42 = vadd.f32 %v10072_v31, %v4318_v62  ;;  %6004 = vmatprep.mubr.msk.f32.mxu0 %vm351_vm1, %v4394_v8 }
 0xa34   :  { %6005 = vmatmul.mubr.msk.f32.gmra.mrb[40].mxu0 %vm351_vm1, %v4395_v40  ;;  %v4397_v53 = vmax.f32 %v4381_v13, 0.0 }
 0xa35   :  { %v4396_v9 = vmax.f32 %v4380_v42, 0.0  ;;  %v5980_v37 = vpop.f32.mrb[76].mxu1 }
 0xa36   :  { %v4383_v17 = vadd.f32 %v5980_v37, %v10072_v31  ;;  %v4328_v28 = vpop.f32.mrb[77].mxu1 }
 0xa37   :  { %v4382_v7 = vadd.f32 %v10072_v31, %v4328_v28  ;;  %6007 = vmatprep.mubr.msk.f32.mxu0 %vm351_vm1, %v4396_v9 }
 0xa38   :  { %6008 = vmatmul.mubr.msk.f32.gmra.mrb[42].mxu0 %vm351_vm1, %v4397_v53  ;;  %v4399_v41 = vmax.f32 %v4383_v17, 0.0 }
 0xa39   :  { %v4398_v10 = vmax.f32 %v4382_v7, 0.0  ;;  %v5983_v33 = vpop.f32.mrb[78].mxu1  ;;  %v5140_v7 = vld [vmem:[%s10254_s13] ss:$0 sm:$0xff] }
 0xa3a   :  { %v4385_v22 = vadd.f32 %v5983_v33, %v10072_v31  ;;  %v4338_v16 = vpop.f32.mrb[79].mxu1 }
 0xa3b   :  { %v4384_v59 = vadd.f32 %v10072_v31, %v4338_v16  ;;  %6010 = vmatprep.mubr.msk.f32.mxu0 %vm351_vm1, %v4398_v10 }
 0xa3c   :  { %6011 = vmatmul.mubr.msk.f32.gmra.mrb[44].mxu0 %vm351_vm1, %v4399_v41  ;;  %v4401_v57 = vmax.f32 %v4385_v22, 0.0 }
 0xa3d   :  { %v4400_v61 = vmax.f32 %v4384_v59, 0.0 }
 0xa3f   :  { %6013 = vmatprep.mubr.msk.f32.mxu0 %vm351_vm1, %v4400_v61 }
 0xa40   :  { %6014 = vmatmul.mubr.msk.f32.gmra.mrb[46].mxu0 %vm351_vm1, %v4401_v57 }
 0xaf7   :  { %v5994_v54 = vpop.f32.mrb[32].mxu0 }
 0xaf8   :  { %v4533_v55 = vadd.f32 %v5994_v54, %v10115_v0  ;;  %v4527_v21 = vpop.f32.mrb[33].mxu0 }
 0xaf9   :  { %v4528_v34 = vadd.f32 %v10115_v0, %v4527_v21 }
 0xafa   :  { %v4607_v31 = vmax.f32 %v4533_v55, 0.0 }
 0xafb   :  { %v4606_v6 = vmax.f32 %v4528_v34, 0.0  ;;  %v5997_v20 = vpop.f32.mrb[34].mxu0 }
 0xafc   :  { %v4543_v49 = vadd.f32 %v5997_v20, %v10115_v0  ;;  %v4537_v18 = vpop.f32.mrb[35].mxu0 }
 0xafd   :  { %v4538_v25 = vadd.f32 %v10115_v0, %v4537_v18  ;;  %6024 = vmatprep.mubr.msk.f32.mxu0 %vm351_vm1, %v4606_v6 }
 0xafe   :  { %6025 = vmatmul.mubr.msk.f32.vlgmr.msra.gmra.mrb[48].mxu0 %vm351_vm1, %v4607_v31  ;;  %v4609_v38 = vmax.f32 %v4543_v49, 0.0 }
 0xaff   :  { %v4608_v14 = vmax.f32 %v4538_v25, 0.0  ;;  %v6000_v51 = vpop.f32.mrb[36].mxu0  ;;  %6375 = vmatpush3.bf16.msra.mxu0 %v6372_v44 }
 0xb00   :  { %v4553_v32 = vadd.f32 %v6000_v51, %v10115_v0  ;;  %v4547_v12 = vpop.f32.mrb[37].mxu0  ;;  %6377 = vmatprep.subr.bf16.mxu0 %v6376_v58 }
 0xb01   :  { %v4548_v23 = vadd.f32 %v10115_v0, %v4547_v12  ;;  %6027 = vmatprep.mubr.msk.f32.mxu0 %vm351_vm1, %v4608_v14 }
 0xb02   :  { %6028 = vmatmul.mubr.msk.f32.gmra.mrb[50].mxu0 %vm351_vm1, %v4609_v38  ;;  %v4611_v26 = vmax.f32 %v4553_v32, 0.0 }
 0xb03   :  { %v4610_v46 = vmax.f32 %v4548_v23, 0.0  ;;  %v6003_v43 = vpop.f32.mrb[38].mxu0  ;;  %6379 = vmatpush3.bf16.msra.mxu0 %v6376_v58 }
 0xb04   :  { %v4563_v24 = vadd.f32 %v6003_v43, %v10115_v0  ;;  %v4557_v5 = vpop.f32.mrb[39].mxu0 }
 0xb05   :  { %v4558_v11 = vadd.f32 %v10115_v0, %v4557_v5  ;;  %6030 = vmatprep.mubr.msk.f32.mxu0 %vm351_vm1, %v4610_v46 }
 0xb06   :  { %6031 = vmatmul.mubr.msk.f32.gmra.mrb[52].mxu0 %vm351_vm1, %v4611_v26  ;;  %v4613_v47 = vmax.f32 %v4563_v24, 0.0 }
 0xb07   :  { %v4612_v27 = vmax.f32 %v4558_v11, 0.0  ;;  %v6006_v60 = vpop.f32.mrb[40].mxu0 }
 0xb08   :  { %v4573_v29 = vadd.f32 %v6006_v60, %v10115_v0  ;;  %v4567_v56 = vpop.f32.mrb[41].mxu0 }
 0xb09   :  { %v4568_v45 = vadd.f32 %v10115_v0, %v4567_v56  ;;  %6033 = vmatprep.mubr.msk.f32.mxu0 %vm351_vm1, %v4612_v27 }
 0xb0a   :  { %6034 = vmatmul.mubr.msk.f32.gmra.mrb[54].mxu0 %vm351_vm1, %v4613_v47  ;;  %v4615_v50 = vmax.f32 %v4573_v29, 0.0 }
 0xb0b   :  { %v4614_v3 = vmax.f32 %v4568_v45, 0.0  ;;  %v6009_v48 = vpop.f32.mrb[42].mxu0 }
 0xb0c   :  { %v4583_v35 = vadd.f32 %v6009_v48, %v10115_v0  ;;  %v4577_v52 = vpop.f32.mrb[43].mxu0 }
 0xb0d   :  { %v4578_v15 = vadd.f32 %v10115_v0, %v4577_v52  ;;  %6036 = vmatprep.mubr.msk.f32.mxu0 %vm351_vm1, %v4614_v3 }
 0xb0e   :  { %6037 = vmatmul.mubr.msk.f32.gmra.mrb[56].mxu0 %vm351_vm1, %v4615_v50  ;;  %v4617_v2 = vmax.f32 %v4583_v35, 0.0 }
 0xb0f   :  { %v4616_v36 = vmax.f32 %v4578_v15, 0.0  ;;  %v6012_v1 = vpop.f32.mrb[44].mxu0  ;;  %v5157_v15 = vld [vmem:[%s10256_s15] ss:$0 sm:$0xff] }
 0xb10   :  { %v4593_v8 = vadd.f32 %v6012_v1, %v10115_v0  ;;  %v4587_v39 = vpop.f32.mrb[45].mxu0 }
 0xb11   :  { %v4588_v40 = vadd.f32 %v10115_v0, %v4587_v39  ;;  %6039 = vmatprep.mubr.msk.f32.mxu0 %vm351_vm1, %v4616_v36 }
 0xb12   :  { %6040 = vmatmul.mubr.msk.f32.gmra.mrb[58].mxu0 %vm351_vm1, %v4617_v2  ;;  %v4619_v42 = vmax.f32 %v4593_v8, 0.0 }
 0xb13   :  { %v4618_v13 = vmax.f32 %v4588_v40, 0.0  ;;  %v6015_v62 = vpop.f32.mrb[46].mxu0 }
 0xb14   :  { %v4603_v9 = vadd.f32 %v6015_v62, %v10115_v0  ;;  %v4597_v37 = vpop.f32.mrb[47].mxu0 }
 0xb15   :  { %v4598_v53 = vadd.f32 %v10115_v0, %v4597_v37  ;;  %6042 = vmatprep.mubr.msk.f32.mxu0 %vm351_vm1, %v4618_v13 }
 0xb16   :  { %6043 = vmatmul.mubr.msk.f32.gmra.mrb[60].mxu0 %vm351_vm1, %v4619_v42  ;;  %v4621_v28 = vmax.f32 %v4603_v9, 0.0 }
 0xb17   :  { %v4620_v17 = vmax.f32 %v4598_v53, 0.0 }
 0xb19   :  { %6045 = vmatprep.mubr.msk.f32.mxu0 %vm351_vm1, %v4620_v17 }
 0xb1a   :  { %6046 = vmatmul.mubr.msk.f32.gmra.mrb[62].mxu0 %vm351_vm1, %v4621_v28 }
 0xbd1   :  { %v6026_v10 = vpop.f32.mrb[48].mxu0 }
 0xbd2   :  { %v4753_v33 = vadd.f32 %v6026_v10, %v5140_v7  ;;  %v4747_v41 = vpop.f32.mrb[49].mxu0 }
 0xbd3   :  { %v4748_v22 = vadd.f32 %v5140_v7, %v4747_v41 }
 0xbd4   :  { %v4827_v61 = vmax.f32 %v4753_v33, 0.0 }
 0xbd5   :  { %v4826_v16 = vmax.f32 %v4748_v22, 0.0  ;;  %v6029_v59 = vpop.f32.mrb[50].mxu0 }
 0xbd6   :  { %v4763_v57 = vadd.f32 %v6029_v59, %v5140_v7  ;;  %v4757_v4 = vpop.f32.mrb[51].mxu0 }
 0xbd7   :  { %v4758_v19 = vadd.f32 %v5140_v7, %v4757_v4  ;;  %6056 = vmatprep.mubr.msk.f32.mxu0 %vm351_vm1, %v4826_v16 }
 0xbd8   :  { %6057 = vmatmul.mubr.msk.f32.vlgmr.msra.gmra.mrb[64].mxu0 %vm351_vm1, %v4827_v61  ;;  %v4829_v54 = vmax.f32 %v4763_v57, 0.0 }
 0xbd9   :  { %v4828_v44 = vmax.f32 %v4758_v19, 0.0  ;;  %v6032_v0 = vpop.f32.mrb[52].mxu0 }
 0xbda   :  { %v4773_v55 = vadd.f32 %v6032_v0, %v5140_v7  ;;  %v4767_v21 = vpop.f32.mrb[53].mxu0 }
 0xbdb   :  { %v4768_v34 = vadd.f32 %v5140_v7, %v4767_v21  ;;  %6059 = vmatprep.mubr.msk.f32.mxu0 %vm351_vm1, %v4828_v44 }
 0xbdc   :  { %6060 = vmatmul.mubr.msk.f32.gmra.mrb[66].mxu0 %vm351_vm1, %v4829_v54  ;;  %v4831_v6 = vmax.f32 %v4773_v55, 0.0 }
 0xbdd   :  { %v4830_v30 = vmax.f32 %v4768_v34, 0.0  ;;  %v6035_v63 = vpop.f32.mrb[54].mxu0 }
 0xbde   :  { %v4783_v20 = vadd.f32 %v6035_v63, %v5140_v7  ;;  %v4777_v31 = vpop.f32.mrb[55].mxu0 }
 0xbdf   :  { %v4778_v49 = vadd.f32 %v5140_v7, %v4777_v31  ;;  %6062 = vmatprep.mubr.msk.f32.mxu0 %vm351_vm1, %v4830_v30 }
 0xbe0   :  { %6063 = vmatmul.mubr.msk.f32.gmra.mrb[68].mxu0 %vm351_vm1, %v4831_v6  ;;  %v4833_v25 = vmax.f32 %v4783_v20, 0.0 }
 0xbe1   :  { %v4832_v18 = vmax.f32 %v4778_v49, 0.0  ;;  %v6038_v58 = vpop.f32.mrb[56].mxu0 }
 0xbe2   :  { %v4793_v14 = vadd.f32 %v6038_v58, %v5140_v7  ;;  %v4787_v51 = vpop.f32.mrb[57].mxu0 }
 0xbe3   :  { %v4788_v38 = vadd.f32 %v5140_v7, %v4787_v51  ;;  %6065 = vmatprep.mubr.msk.f32.mxu0 %vm351_vm1, %v4832_v18 }
 0xbe4   :  { %6066 = vmatmul.mubr.msk.f32.gmra.mrb[70].mxu0 %vm351_vm1, %v4833_v25  ;;  %v4835_v23 = vmax.f32 %v4793_v14, 0.0 }
 0xbe5   :  { %v4834_v32 = vmax.f32 %v4788_v38, 0.0  ;;  %v6041_v12 = vpop.f32.mrb[58].mxu0 }
 0xbe6   :  { %v4803_v46 = vadd.f32 %v6041_v12, %v5140_v7  ;;  %v4797_v43 = vpop.f32.mrb[59].mxu0 }
 0xbe7   :  { %v4798_v26 = vadd.f32 %v5140_v7, %v4797_v43  ;;  %6068 = vmatprep.mubr.msk.f32.mxu0 %vm351_vm1, %v4834_v32 }
 0xbe8   :  { %6069 = vmatmul.mubr.msk.f32.gmra.mrb[72].mxu0 %vm351_vm1, %v4835_v23  ;;  %v4837_v11 = vmax.f32 %v4803_v46, 0.0 }
 0xbe9   :  { %v4836_v24 = vmax.f32 %v4798_v26, 0.0  ;;  %v6044_v5 = vpop.f32.mrb[60].mxu0 }
 0xbea   :  { %v4813_v27 = vadd.f32 %v6044_v5, %v5140_v7  ;;  %v4807_v60 = vpop.f32.mrb[61].mxu0 }
 0xbeb   :  { %v4808_v47 = vadd.f32 %v5140_v7, %v4807_v60  ;;  %6071 = vmatprep.mubr.msk.f32.mxu0 %vm351_vm1, %v4836_v24 }
 0xbec   :  { %6072 = vmatmul.mubr.msk.f32.gmra.mrb[74].mxu0 %vm351_vm1, %v4837_v11  ;;  %v4839_v45 = vmax.f32 %v4813_v27, 0.0 }
 0xbed   :  { %v4838_v29 = vmax.f32 %v4808_v47, 0.0  ;;  %v6047_v56 = vpop.f32.mrb[62].mxu0 }
 0xbee   :  { %v4823_v3 = vadd.f32 %v6047_v56, %v5140_v7  ;;  %v4817_v48 = vpop.f32.mrb[63].mxu0 }
 0xbef   :  { %v4818_v50 = vadd.f32 %v5140_v7, %v4817_v48  ;;  %6074 = vmatprep.mubr.msk.f32.mxu0 %vm351_vm1, %v4838_v29 }
 0xbf0   :  { %6075 = vmatmul.mubr.msk.f32.gmra.mrb[76].mxu0 %vm351_vm1, %v4839_v45  ;;  %v4841_v52 = vmax.f32 %v4823_v3, 0.0 }
 0xbf1   :  { %v4840_v35 = vmax.f32 %v4818_v50, 0.0 }
 0xbf3   :  { %6077 = vmatprep.mubr.msk.f32.mxu0 %vm351_vm1, %v4840_v35 }
 0xbf4   :  { %6078 = vmatmul.mubr.msk.f32.gmra.mrb[78].mxu0 %vm351_vm1, %v4841_v52 }
 0xcab   :  { %v6058_v36 = vpop.f32.mrb[64].mxu0 }
 0xcac   :  { %v4973_v1 = vadd.f32 %v6058_v36, %v5157_v15  ;;  %v4967_v2 = vpop.f32.mrb[65].mxu0 }
 0xcad   :  { %v4968_v8 = vadd.f32 %v5157_v15, %v4967_v2 }
 0xcae   :  { %5048 = vst.msk [vmem:[%s10257_s16 + $0x8] sm:$0xff] %vm5046_vm3, %v4973_v1 }
 0xcaf   :  { %5047 = vst.msk [vmem:[%s10257_s16] sm:$0xff] %vm5046_vm3, %v4968_v8  ;;  %v6061_v39 = vpop.f32.mrb[66].mxu0 }
 0xcb0   :  { %v4983_v40 = vadd.f32 %v6061_v39, %v5157_v15  ;;  %v4977_v13 = vpop.f32.mrb[67].mxu0 }
 0xcb1   :  { %v4978_v62 = vadd.f32 %v5157_v15, %v4977_v13 }
 0xcb2   :  { %5050 = vst.msk [vmem:[%s10257_s16 + $0x18] sm:$0xff] %vm5046_vm3, %v4983_v40 }
 0xcb3   :  { %5049 = vst.msk [vmem:[%s10257_s16 + $0x10] sm:$0xff] %vm5046_vm3, %v4978_v62  ;;  %v6064_v42 = vpop.f32.mrb[68].mxu0 }
 0xcb4   :  { %v4993_v9 = vadd.f32 %v6064_v42, %v5157_v15  ;;  %v4987_v37 = vpop.f32.mrb[69].mxu0 }
 0xcb5   :  { %v4988_v53 = vadd.f32 %v5157_v15, %v4987_v37 }
 0xcb6   :  { %5052 = vst.msk [vmem:[%s10257_s16 + $0x28] sm:$0xff] %vm5046_vm3, %v4993_v9 }
 0xcb7   :  { %5051 = vst.msk [vmem:[%s10257_s16 + $0x20] sm:$0xff] %vm5046_vm3, %v4988_v53  ;;  %v6067_v17 = vpop.f32.mrb[70].mxu0 }
 0xcb8   :  { %v5003_v28 = vadd.f32 %v6067_v17, %v5157_v15  ;;  %v4997_v7 = vpop.f32.mrb[71].mxu0 }
 0xcb9   :  { %v4998_v10 = vadd.f32 %v5157_v15, %v4997_v7 }
 0xcba   :  { %5054 = vst.msk [vmem:[%s10257_s16 + $0x38] sm:$0xff] %vm5046_vm3, %v5003_v28 }
 0xcbb   :  { %5053 = vst.msk [vmem:[%s10257_s16 + $0x30] sm:$0xff] %vm5046_vm3, %v4998_v10  ;;  %v6070_v33 = vpop.f32.mrb[72].mxu0 }
 0xcbc   :  { %v5013_v41 = vadd.f32 %v6070_v33, %v5157_v15  ;;  %v5007_v22 = vpop.f32.mrb[73].mxu0 }
 0xcbd   :  { %v5008_v16 = vadd.f32 %v5157_v15, %v5007_v22 }
 0xcbe   :  { %5056 = vst.msk [vmem:[%s10257_s16 + $0x48] sm:$0xff] %vm5046_vm3, %v5013_v41 }
 0xcbf   :  { %5055 = vst.msk [vmem:[%s10257_s16 + $0x40] sm:$0xff] %vm5046_vm3, %v5008_v16  ;;  %v6073_v59 = vpop.f32.mrb[74].mxu0 }
 0xcc0   :  { %v5023_v61 = vadd.f32 %v6073_v59, %v5157_v15  ;;  %v5017_v57 = vpop.f32.mrb[75].mxu0 }
 0xcc1   :  { %v5018_v4 = vadd.f32 %v5157_v15, %v5017_v57 }
 0xcc2   :  { %5058 = vst.msk [vmem:[%s10257_s16 + $0x58] sm:$0xff] %vm5046_vm3, %v5023_v61 }
 0xcc3   :  { %5057 = vst.msk [vmem:[%s10257_s16 + $0x50] sm:$0xff] %vm5046_vm3, %v5018_v4  ;;  %v6076_v19 = vpop.f32.mrb[76].mxu0 }
 0xcc4   :  { %v5033_v44 = vadd.f32 %v6076_v19, %v5157_v15  ;;  %v5027_v0 = vpop.f32.mrb[77].mxu0 }
 0xcc5   :  { %v5028_v54 = vadd.f32 %v5157_v15, %v5027_v0 }
 0xcc6   :  { %5060 = vst.msk [vmem:[%s10257_s16 + $0x68] sm:$0xff] %vm5046_vm3, %v5033_v44 }
 0xcc7   :  { %5059 = vst.msk [vmem:[%s10257_s16 + $0x60] sm:$0xff] %vm5046_vm3, %v5028_v54  ;;  %v6079_v55 = vpop.f32.mrb[78].mxu0 }
 0xcc8   :  { %v5043_v21 = vadd.f32 %v6079_v55, %v5157_v15  ;;  %v5037_v34 = vpop.f32.mrb[79].mxu0 }
 0xcc9   :  { %v5038_v30 = vadd.f32 %v5157_v15, %v5037_v34 }
 0xcca   :  { %5062 = vst.msk [vmem:[%s10257_s16 + $0x78] sm:$0xff] %vm5046_vm3, %v5043_v21 }
 0xccb   :  { %5061 = vst.msk [vmem:[%s10257_s16 + $0x70] sm:$0xff] %vm5046_vm3, %v5038_v30 }
 0xccc   :  { %5067 = vsyncpa [#allocation4], 1 }
 0xccd   :  { %5068 = vsyncpa [#allocation6], 1 }
 0xcce   :  { %5069 = vsyncpa [#allocation9], 1 }

</bundles_post_ra>
